<compile_context>
chip_gen: v5e
topology: v5e:2x2
jax: 0.10.0
libtpu: 0.0.40
codegen_flags: <defaults>
</compile_context>

<pallas_src>
import functools

import jax
import jax.numpy as jnp
from jax.experimental import pallas as pl
from jax.experimental.pallas import tpu as pltpu


def _round_up(x, m):
    return (x + m - 1) // m * m


# ---------------------------------------------------------------------------
# Pallas kernels
# ---------------------------------------------------------------------------
def _conv3x3_kernel(x_ref, xh_ref, w_ref, b_ref, o_ref, *, offsets, relu):
    """3x3 same-conv tile: in-kernel patch extraction + one MXU pass.

    x_ref : (Cin_p, M_tile)  main window (bf16)
    xh_ref: (Cin_p, HALO)    right halo of the same slab (bf16)
    w_ref : (Cout_p, 9*Cin_p) weights (bf16)
    b_ref : (Cout_p, 1)       bias (f32)
    o_ref : (Cout_p, M_tile)  lane-dense output
    """
    m = o_ref.shape[-1]
    win = jnp.concatenate([x_ref[...], xh_ref[...]], axis=-1)        # (Cin_p, M+HALO)
    patch = jnp.concatenate([win[:, off:off + m] for off in offsets], axis=0)
    acc = jnp.dot(w_ref[...], patch, preferred_element_type=jnp.float32)
    acc = acc + b_ref[...]
    if relu:
        acc = jnp.maximum(acc, 0.0)
    o_ref[...] = acc.astype(o_ref.dtype)


def _conv3x3_interp_kernel(x_ref, xh_ref, s_ref, sh_ref, w_ref, b_ref, a_ref,
                           o_ref, *, offsets, center, relu):
    """Same conv + fused spatial-interpolation epilogue:
       out[c] = alpha[c] * src[c] + (1 - alpha[c]) * conv[c]
    alpha[c] = rate on image channels, 0 elsewhere (mask / pad channels)."""
    m = o_ref.shape[-1]
    win = jnp.concatenate([x_ref[...], xh_ref[...]], axis=-1)
    patch = jnp.concatenate([win[:, off:off + m] for off in offsets], axis=0)
    acc = jnp.dot(w_ref[...], patch, preferred_element_type=jnp.float32)
    acc = acc + b_ref[...]
    if relu:
        acc = jnp.maximum(acc, 0.0)
    swin = jnp.concatenate([s_ref[...], sh_ref[...]], axis=-1)
    src = swin[:, center:center + m].astype(jnp.float32)             # x aligned to out
    a = a_ref[...]                                                   # (Cout_p, 1)
    acc = a * src + (1.0 - a) * acc
    o_ref[...] = acc.astype(o_ref.dtype)


# ---------------------------------------------------------------------------
# Layout plumbing (pad + transpose only, ~1x activation traffic)
# ---------------------------------------------------------------------------
def _to_padded_flat(x, c_pad, total_len, dtype):
    """NCHW -> (c_pad, total_len): channels zero-padded to c_pad, spatial
    zero-padded by 1 ('same' conv halo), flattened over (N, H+2, W+2) and
    zero-extended on the lane dim to total_len."""
    n, c, h, w = x.shape
    xp = jnp.pad(x, ((0, 0), (0, c_pad - c), (1, 1), (1, 1)))
    xf = jnp.transpose(xp, (1, 0, 2, 3)).reshape(c_pad, n * (h + 2) * (w + 2))
    xf = jnp.pad(xf, ((0, 0), (0, total_len - xf.shape[1])))
    return xf.astype(dtype)


def _from_padded_flat(o_pf, n, cout, h, w):
    """(Cout_p, L_out_pad) padded-flat conv output -> (N, Cout, H, W)."""
    hp, wp = h + 2, w + 2
    o = o_pf[:, : n * hp * wp].reshape(-1, n, hp, wp)
    return jnp.transpose(o[:cout, :, :h, :w], (1, 0, 2, 3))


# ---------------------------------------------------------------------------
# Conv wrapper
# ---------------------------------------------------------------------------
def conv3x3(x, w, b, *, relu, interp_src=None, rate=None,
            out_dtype=jnp.float32, m_tile_cap=2048):
    """x: (N, Cin, H, W); w: (Cout, Cin, 3, 3) (PyTorch layout); b: (Cout,).

    If `interp_src`/`rate` are given, the epilogue computes
    rate * interp_src + (1 - rate) * conv on the first interp_src-channels."""
    n, cin, h, wd = x.shape
    cout = w.shape[0]
    hp, wp = h + 2, wd + 2
    cin_p = _round_up(cin, 8)
    cout_p = _round_up(cout, 8)
    halo = _round_up(2 * wp + 2, 128)              # covers max tap offset
    L = n * hp * wp                                # output positions (padded-flat)
    m_tile = min(_round_up(m_tile_cap, halo), _round_up(L, halo))
    l_out = _round_up(L, m_tile)
    num_tiles = l_out // m_tile
    l_in = l_out + halo
    bpt = m_tile // halo                           # halo blocks per main tile

    # Activations: padded-flat slab, bf16 (halves DMA traffic; f32 accumulate).
    x_pf = _to_padded_flat(x, cin_p, l_in, jnp.bfloat16)

    # Weights: (Cout, Cin, 3, 3) -> (Cout_p, 9*Cin_p), rows ordered as
    # (tap row-major, channel) to match the in-kernel patch concatenation.
    wk = jnp.zeros((cout_p, 3, 3, cin_p), jnp.float32)
    wk = wk.at[:cout, :, :, :cin].set(jnp.transpose(w, (0, 2, 3, 1)))
    wk = wk.reshape(cout_p, 9 * cin_p).astype(jnp.bfloat16)
    bk = jnp.zeros((cout_p, 1), jnp.float32).at[:cout, 0].set(b)

    # Tap offsets in padded-flat space: (dh, dw) -> dh*Wp + dw (all < halo).
    offsets = tuple(dh * wp + dw for dh in range(3) for dw in range(3))

    x_main = pl.BlockSpec((cin_p, m_tile), lambda i: (0, i))
    x_halo = pl.BlockSpec((cin_p, halo), lambda i: (0, (i + 1) * bpt))
    w_spec = pl.BlockSpec((cout_p, 9 * cin_p), lambda i: (0, 0))
    b_spec = pl.BlockSpec((cout_p, 1), lambda i: (0, 0))
    o_spec = pl.BlockSpec((cout_p, m_tile), lambda i: (0, i))

    if interp_src is None:
        kern = functools.partial(_conv3x3_kernel, offsets=offsets, relu=relu)
        in_specs = [x_main, x_halo, w_spec, b_spec]
        args = (x_pf, x_pf, wk, bk)
    else:
        n_img = interp_src.shape[1]
        assert n_img <= cout_p
        s_pf = _to_padded_flat(interp_src, cout_p, l_in, jnp.float32)
        alpha = jnp.zeros((cout_p, 1), jnp.float32).at[:n_img, 0].set(rate)
        s_main = pl.BlockSpec((cout_p, m_tile), lambda i: (0, i))
        s_halo = pl.BlockSpec((cout_p, halo), lambda i: (0, (i + 1) * bpt))
        a_spec = pl.BlockSpec((cout_p, 1), lambda i: (0, 0))
        kern = functools.partial(_conv3x3_interp_kernel, offsets=offsets,
                                 center=wp + 1, relu=relu)
        in_specs = [x_main, x_halo, s_main, s_halo, w_spec, b_spec, a_spec]
        args = (x_pf, x_pf, s_pf, s_pf, wk, bk, alpha)

    out_pf = pl.pallas_call(
        kern,
        out_shape=jax.ShapeDtypeStruct((cout_p, l_out), out_dtype),
        grid=(num_tiles,),
        in_specs=in_specs,
        out_specs=o_spec,
        compiler_params=pltpu.CompilerParams(
            dimension_semantics=("parallel",)),
    )(*args)

    return _from_padded_flat(out_pf, n, cout, h, wd)


# ---------------------------------------------------------------------------
# Deterministic parameter setup (synthetic stand-ins for the checkpointed nets)
# ---------------------------------------------------------------------------
def init_params(key):
    def conv_init(k, cout, cin):
        fan_in = cin * 9
        w = jax.random.normal(k, (cout, cin, 3, 3), jnp.float32) / jnp.sqrt(fan_in)
        b = jnp.zeros((cout,), jnp.float32)
        return w, b

    ks = jax.random.split(key, 4)
    return {
        # generator stand-in: unet_withoutskip(in=3, out=5)
        "gen_conv1": conv_init(ks[0], 8, 3),
        "gen_conv2": conv_init(ks[1], 5, 8),
        # segmentor stand-in: UNet(in=3, out=2)
        "seg_conv1": conv_init(ks[2], 16, 3),
        "seg_conv2": conv_init(ks[3], 2, 16),
    }


# ---------------------------------------------------------------------------
# Forward pass (mirrors ExpandMani_AE_SpatialInterpolate.forward)
# ---------------------------------------------------------------------------
def expandmani_ae_spatial_interpolate_forward(params, x, truth_masks, rate,
                                              z_vectors=None, *, phase):
    # z_vectors is a dummy, as in the reference.
    # TODO(synk): the reference loads a pretrained 5-block unet_withoutskip generator and
    # a 4-block UNet segmentor from a .pt checkpoint; they are replaced by deterministic
    # 2-layer conv stacks with the same I/O channel counts (gen: 3->5, seg: 3->2).
    hg = conv3x3(x, *params["gen_conv1"], relu=True, out_dtype=jnp.bfloat16)

    if phase == "train":
        # generator head with the spatial interpolation rate*x + (1-rate)*gen fused
        # into the conv epilogue (applied to the 3 image channels only).
        gen5 = conv3x3(hg, *params["gen_conv2"], relu=False,
                       interp_src=x, rate=rate)
        generated_images = gen5[:, :3]                 # already interpolated
        # x = catOrSplit([generated_images, x]) -> torch.cat(dim=0)
        x_seg = jnp.concatenate([generated_images, x], axis=0)
        truth_masks = jnp.concatenate([truth_masks, truth_masks], axis=0)
    else:
        gen5 = conv3x3(hg, *params["gen_conv2"], relu=False)
        generated_images = gen5[:, :3]
        x_seg = x

    hs = conv3x3(x_seg, *params["seg_conv1"], relu=True, out_dtype=jnp.bfloat16)
    predicted_masks = conv3x3(hs, *params["seg_conv2"], relu=False)

    return generated_images, predicted_masks, truth_masks


# ---------------------------------------------------------------------------
if __name__ == "__main__":
    key = jax.random.PRNGKey(0)
    kp, kx, km = jax.random.split(key, 3)

    params = init_params(kp)

    # small shapes consistent with the module's NCHW image inputs
    x = jax.random.normal(kx, (2, 3, 16, 16), jnp.float32)            # images, in_channels=3
    truth_masks = (jax.random.uniform(km, (2, 1, 16, 16)) > 0.5).astype(jnp.float32)
    rate = 0.3

    fwd = jax.jit(expandmani_ae_spatial_interpolate_forward,
                  static_argnames=("phase",))
    gen_imgs, pred_masks, out_masks = fwd(params, x, truth_masks, rate,
                                          phase="train")

    jax.block_until_ready(gen_imgs)
    jax.block_until_ready(pred_masks)
    jax.block_until_ready(out_masks)

    assert gen_imgs.shape == (2, 3, 16, 16)
    assert pred_masks.shape == (4, 2, 16, 16)     # batch doubled by cat in train phase
    assert out_masks.shape == (4, 1, 16, 16)

    print("KERNEL_OK")
</pallas_src>

<mosaic_0001>
module attributes {stable_mosaic.version = 11 : i64} {
  func.func @_conv3x3_kernel(%arg0: i32, %arg1: memref<8x768xbf16, #tpu.memory_space<vmem>>, %arg2: memref<8x128xbf16, #tpu.memory_space<vmem>>, %arg3: memref<8x72xbf16, #tpu.memory_space<vmem>>, %arg4: memref<8x1xf32, #tpu.memory_space<vmem>>, %arg5: memref<8x768xbf16, #tpu.memory_space<vmem>>) attributes {dimension_semantics = [#tpu.dimension_semantics<parallel>], iteration_bounds = array<i64: 1>, scalar_prefetch = 0 : i64, scratch_operands = 0 : i64, tpu.core_type = #tpu.core_type<tc>, window_params = [{transform_indices = @transform_0, window_bounds = array<i64: 8, 768>}, {transform_indices = @transform_1, window_bounds = array<i64: 8, 128>}, {pipeline_mode = #tpu.pipeline_mode<synchronous>, transform_indices = @transform_2, window_bounds = array<i64: 8, 72>}, {pipeline_mode = #tpu.pipeline_mode<synchronous>, transform_indices = @transform_3, window_bounds = array<i64: 8, 1>}, {transform_indices = @transform_4, window_bounds = array<i64: 8, 768>}]} {
    %c0 = arith.constant 0 : index
    %c0_0 = arith.constant 0 : index
    %0 = vector.load %arg1[%c0, %c0_0] : memref<8x768xbf16, #tpu.memory_space<vmem>>, vector<8x768xbf16>
    %c0_1 = arith.constant 0 : index
    %c0_2 = arith.constant 0 : index
    %1 = vector.load %arg2[%c0_1, %c0_2] : memref<8x128xbf16, #tpu.memory_space<vmem>>, vector<8x128xbf16>
    %2 = tpu.concatenate %0, %1 in 1 : vector<8x768xbf16>, vector<8x128xbf16> -> vector<8x896xbf16>
    %3 = vector.extract_strided_slice %2 {offsets = [0, 0], sizes = [8, 768], strides = [1, 1]} : vector<8x896xbf16> to vector<8x768xbf16>
    %4 = vector.extract_strided_slice %2 {offsets = [0, 1], sizes = [8, 768], strides = [1, 1]} : vector<8x896xbf16> to vector<8x768xbf16>
    %5 = vector.extract_strided_slice %2 {offsets = [0, 2], sizes = [8, 768], strides = [1, 1]} : vector<8x896xbf16> to vector<8x768xbf16>
    %6 = vector.extract_strided_slice %2 {offsets = [0, 18], sizes = [8, 768], strides = [1, 1]} : vector<8x896xbf16> to vector<8x768xbf16>
    %7 = vector.extract_strided_slice %2 {offsets = [0, 19], sizes = [8, 768], strides = [1, 1]} : vector<8x896xbf16> to vector<8x768xbf16>
    %8 = vector.extract_strided_slice %2 {offsets = [0, 20], sizes = [8, 768], strides = [1, 1]} : vector<8x896xbf16> to vector<8x768xbf16>
    %9 = vector.extract_strided_slice %2 {offsets = [0, 36], sizes = [8, 768], strides = [1, 1]} : vector<8x896xbf16> to vector<8x768xbf16>
    %10 = vector.extract_strided_slice %2 {offsets = [0, 37], sizes = [8, 768], strides = [1, 1]} : vector<8x896xbf16> to vector<8x768xbf16>
    %11 = vector.extract_strided_slice %2 {offsets = [0, 38], sizes = [8, 768], strides = [1, 1]} : vector<8x896xbf16> to vector<8x768xbf16>
    %12 = tpu.concatenate %3, %4, %5, %6, %7, %8, %9, %10, %11 in 0 : vector<8x768xbf16>, vector<8x768xbf16>, vector<8x768xbf16>, vector<8x768xbf16>, vector<8x768xbf16>, vector<8x768xbf16>, vector<8x768xbf16>, vector<8x768xbf16>, vector<8x768xbf16> -> vector<72x768xbf16>
    %c0_3 = arith.constant 0 : index
    %c0_4 = arith.constant 0 : index
    %13 = vector.load %arg3[%c0_3, %c0_4] : memref<8x72xbf16, #tpu.memory_space<vmem>>, vector<8x72xbf16>
    %cst = arith.constant dense<0.000000e+00> : vector<8x768xf32>
    %14 = tpu.matmul %13, %12, %cst {dimension_numbers = #tpu.dot_dimension_numbers<[1], [0], [0], [1], [0, 0, 1, 1], [], []>} : vector<8x72xbf16>, vector<72x768xbf16>, vector<8x768xf32> -> vector<8x768xf32>
    %c0_5 = arith.constant 0 : index
    %c0_6 = arith.constant 0 : index
    %15 = vector.load %arg4[%c0_5, %c0_6] : memref<8x1xf32, #tpu.memory_space<vmem>>, vector<8x1xf32>
    %16 = vector.broadcast %15 : vector<8x1xf32> to vector<8x768xf32>
    %17 = arith.addf %14, %16 : vector<8x768xf32>
    %cst_7 = arith.constant 0.000000e+00 : f32
    %18 = vector.broadcast %cst_7 : f32 to vector<8x768xf32>
    %19 = arith.maximumf %17, %18 : vector<8x768xf32>
    %20 = arith.truncf %19 : vector<8x768xf32> to vector<8x768xbf16>
    %c0_8 = arith.constant 0 : index
    %c0_9 = arith.constant 0 : index
    %21 = vector.load %arg5[%c0_8, %c0_9] : memref<8x768xbf16, #tpu.memory_space<vmem>>, vector<8x768xbf16>
    tpu.vector_store %arg5[%c0_8, %c0_9], %20 {strides = array<i32>} : memref<8x768xbf16, #tpu.memory_space<vmem>>, vector<8x768xbf16>,
    return
  }
  func.func @transform_0(%arg0: i32) -> (i32, i32) {
    %c0_i32 = arith.constant 0 : i32
    %c0_i32_0 = arith.constant 0 : i32
    return %c0_i32, %arg0 : i32, i32
  }
  func.func @transform_1(%arg0: i32) -> (i32, i32) {
    %c1_i32 = arith.constant 1 : i32
    %0 = arith.addi %arg0, %c1_i32 : i32
    %c6_i32 = arith.constant 6 : i32
    %1 = arith.muli %0, %c6_i32 : i32
    %c0_i32 = arith.constant 0 : i32
    %c0_i32_0 = arith.constant 0 : i32
    return %c0_i32, %1 : i32, i32
  }
  func.func @transform_2(%arg0: i32) -> (i32, i32) {
    %c0_i32 = arith.constant 0 : i32
    %c0_i32_0 = arith.constant 0 : i32
    %c0_i32_1 = arith.constant 0 : i32
    return %c0_i32, %c0_i32_0 : i32, i32
  }
  func.func @transform_3(%arg0: i32) -> (i32, i32) {
    %c0_i32 = arith.constant 0 : i32
    %c0_i32_0 = arith.constant 0 : i32
    %c0_i32_1 = arith.constant 0 : i32
    return %c0_i32, %c0_i32_0 : i32, i32
  }
  func.func @transform_4(%arg0: i32) -> (i32, i32) {
    %c0_i32 = arith.constant 0 : i32
    %c0_i32_0 = arith.constant 0 : i32
    return %c0_i32, %arg0 : i32, i32
  }
}

module attributes {stable_mosaic.version = 11 : i64} {
  func.func @_conv3x3_interp_kernel(%arg0: i32, %arg1: memref<8x768xbf16, #tpu.memory_space<vmem>>, %arg2: memref<8x128xbf16, #tpu.memory_space<vmem>>, %arg3: memref<8x768xf32, #tpu.memory_space<vmem>>, %arg4: memref<8x128xf32, #tpu.memory_space<vmem>>, %arg5: memref<8x72xbf16, #tpu.memory_space<vmem>>, %arg6: memref<8x1xf32, #tpu.memory_space<vmem>>, %arg7: memref<8x1xf32, #tpu.memory_space<vmem>>, %arg8: memref<8x768xf32, #tpu.memory_space<vmem>>) attributes {dimension_semantics = [#tpu.dimension_semantics<parallel>], iteration_bounds = array<i64: 1>, scalar_prefetch = 0 : i64, scratch_operands = 0 : i64, tpu.core_type = #tpu.core_type<tc>, window_params = [{transform_indices = @transform_0, window_bounds = array<i64: 8, 768>}, {transform_indices = @transform_1, window_bounds = array<i64: 8, 128>}, {transform_indices = @transform_2, window_bounds = array<i64: 8, 768>}, {transform_indices = @transform_3, window_bounds = array<i64: 8, 128>}, {pipeline_mode = #tpu.pipeline_mode<synchronous>, transform_indices = @transform_4, window_bounds = array<i64: 8, 72>}, {pipeline_mode = #tpu.pipeline_mode<synchronous>, transform_indices = @transform_5, window_bounds = array<i64: 8, 1>}, {pipeline_mode = #tpu.pipeline_mode<synchronous>, transform_indices = @transform_6, window_bounds = array<i64: 8, 1>}, {transform_indices = @transform_7, window_bounds = array<i64: 8, 768>}]} {
    %c0 = arith.constant 0 : index
    %c0_0 = arith.constant 0 : index
    %0 = vector.load %arg1[%c0, %c0_0] : memref<8x768xbf16, #tpu.memory_space<vmem>>, vector<8x768xbf16>
    %c0_1 = arith.constant 0 : index
    %c0_2 = arith.constant 0 : index
    %1 = vector.load %arg2[%c0_1, %c0_2] : memref<8x128xbf16, #tpu.memory_space<vmem>>, vector<8x128xbf16>
    %2 = tpu.concatenate %0, %1 in 1 : vector<8x768xbf16>, vector<8x128xbf16> -> vector<8x896xbf16>
    %3 = vector.extract_strided_slice %2 {offsets = [0, 0], sizes = [8, 768], strides = [1, 1]} : vector<8x896xbf16> to vector<8x768xbf16>
    %4 = vector.extract_strided_slice %2 {offsets = [0, 1], sizes = [8, 768], strides = [1, 1]} : vector<8x896xbf16> to vector<8x768xbf16>
    %5 = vector.extract_strided_slice %2 {offsets = [0, 2], sizes = [8, 768], strides = [1, 1]} : vector<8x896xbf16> to vector<8x768xbf16>
    %6 = vector.extract_strided_slice %2 {offsets = [0, 18], sizes = [8, 768], strides = [1, 1]} : vector<8x896xbf16> to vector<8x768xbf16>
    %7 = vector.extract_strided_slice %2 {offsets = [0, 19], sizes = [8, 768], strides = [1, 1]} : vector<8x896xbf16> to vector<8x768xbf16>
    %8 = vector.extract_strided_slice %2 {offsets = [0, 20], sizes = [8, 768], strides = [1, 1]} : vector<8x896xbf16> to vector<8x768xbf16>
    %9 = vector.extract_strided_slice %2 {offsets = [0, 36], sizes = [8, 768], strides = [1, 1]} : vector<8x896xbf16> to vector<8x768xbf16>
    %10 = vector.extract_strided_slice %2 {offsets = [0, 37], sizes = [8, 768], strides = [1, 1]} : vector<8x896xbf16> to vector<8x768xbf16>
    %11 = vector.extract_strided_slice %2 {offsets = [0, 38], sizes = [8, 768], strides = [1, 1]} : vector<8x896xbf16> to vector<8x768xbf16>
    %12 = tpu.concatenate %3, %4, %5, %6, %7, %8, %9, %10, %11 in 0 : vector<8x768xbf16>, vector<8x768xbf16>, vector<8x768xbf16>, vector<8x768xbf16>, vector<8x768xbf16>, vector<8x768xbf16>, vector<8x768xbf16>, vector<8x768xbf16>, vector<8x768xbf16> -> vector<72x768xbf16>
    %c0_3 = arith.constant 0 : index
    %c0_4 = arith.constant 0 : index
    %13 = vector.load %arg5[%c0_3, %c0_4] : memref<8x72xbf16, #tpu.memory_space<vmem>>, vector<8x72xbf16>
    %cst = arith.constant dense<0.000000e+00> : vector<8x768xf32>
    %14 = tpu.matmul %13, %12, %cst {dimension_numbers = #tpu.dot_dimension_numbers<[1], [0], [0], [1], [0, 0, 1, 1], [], []>} : vector<8x72xbf16>, vector<72x768xbf16>, vector<8x768xf32> -> vector<8x768xf32>
    %c0_5 = arith.constant 0 : index
    %c0_6 = arith.constant 0 : index
    %15 = vector.load %arg6[%c0_5, %c0_6] : memref<8x1xf32, #tpu.memory_space<vmem>>, vector<8x1xf32>
    %16 = vector.broadcast %15 : vector<8x1xf32> to vector<8x768xf32>
    %17 = arith.addf %14, %16 : vector<8x768xf32>
    %c0_7 = arith.constant 0 : index
    %c0_8 = arith.constant 0 : index
    %18 = vector.load %arg3[%c0_7, %c0_8] : memref<8x768xf32, #tpu.memory_space<vmem>>, vector<8x768xf32>
    %c0_9 = arith.constant 0 : index
    %c0_10 = arith.constant 0 : index
    %19 = vector.load %arg4[%c0_9, %c0_10] : memref<8x128xf32, #tpu.memory_space<vmem>>, vector<8x128xf32>
    %20 = tpu.concatenate %18, %19 in 1 : vector<8x768xf32>, vector<8x128xf32> -> vector<8x896xf32>
    %21 = vector.extract_strided_slice %20 {offsets = [0, 19], sizes = [8, 768], strides = [1, 1]} : vector<8x896xf32> to vector<8x768xf32>
    %c0_11 = arith.constant 0 : index
    %c0_12 = arith.constant 0 : index
    %22 = vector.load %arg7[%c0_11, %c0_12] : memref<8x1xf32, #tpu.memory_space<vmem>>, vector<8x1xf32>
    %23 = vector.broadcast %22 : vector<8x1xf32> to vector<8x768xf32>
    %24 = arith.mulf %23, %21 : vector<8x768xf32>
    %cst_13 = arith.constant 1.000000e+00 : f32
    %25 = vector.broadcast %cst_13 : f32 to vector<8x1xf32>
    %26 = arith.subf %25, %22 : vector<8x1xf32>
    %27 = vector.broadcast %26 : vector<8x1xf32> to vector<8x768xf32>
    %28 = arith.mulf %27, %17 : vector<8x768xf32>
    %29 = arith.addf %24, %28 : vector<8x768xf32>
    %c0_14 = arith.constant 0 : index
    %c0_15 = arith.constant 0 : index
    %30 = vector.load %arg8[%c0_14, %c0_15] : memref<8x768xf32, #tpu.memory_space<vmem>>, vector<8x768xf32>
    tpu.vector_store %arg8[%c0_14, %c0_15], %29 {strides = array<i32>} : memref<8x768xf32, #tpu.memory_space<vmem>>, vector<8x768xf32>,
    return
  }
  func.func @transform_0(%arg0: i32) -> (i32, i32) {
    %c0_i32 = arith.constant 0 : i32
    %c0_i32_0 = arith.constant 0 : i32
    return %c0_i32, %arg0 : i32, i32
  }
  func.func @transform_1(%arg0: i32) -> (i32, i32) {
    %c1_i32 = arith.constant 1 : i32
    %0 = arith.addi %arg0, %c1_i32 : i32
    %c6_i32 = arith.constant 6 : i32
    %1 = arith.muli %0, %c6_i32 : i32
    %c0_i32 = arith.constant 0 : i32
    %c0_i32_0 = arith.constant 0 : i32
    return %c0_i32, %1 : i32, i32
  }
  func.func @transform_2(%arg0: i32) -> (i32, i32) {
    %c0_i32 = arith.constant 0 : i32
    %c0_i32_0 = arith.constant 0 : i32
    return %c0_i32, %arg0 : i32, i32
  }
  func.func @transform_3(%arg0: i32) -> (i32, i32) {
    %c1_i32 = arith.constant 1 : i32
    %0 = arith.addi %arg0, %c1_i32 : i32
    %c6_i32 = arith.constant 6 : i32
    %1 = arith.muli %0, %c6_i32 : i32
    %c0_i32 = arith.constant 0 : i32
    %c0_i32_0 = arith.constant 0 : i32
    return %c0_i32, %1 : i32, i32
  }
  func.func @transform_4(%arg0: i32) -> (i32, i32) {
    %c0_i32 = arith.constant 0 : i32
    %c0_i32_0 = arith.constant 0 : i32
    %c0_i32_1 = arith.constant 0 : i32
    return %c0_i32, %c0_i32_0 : i32, i32
  }
  func.func @transform_5(%arg0: i32) -> (i32, i32) {
    %c0_i32 = arith.constant 0 : i32
    %c0_i32_0 = arith.constant 0 : i32
    %c0_i32_1 = arith.constant 0 : i32
    return %c0_i32, %c0_i32_0 : i32, i32
  }
  func.func @transform_6(%arg0: i32) -> (i32, i32) {
    %c0_i32 = arith.constant 0 : i32
    %c0_i32_0 = arith.constant 0 : i32
    %c0_i32_1 = arith.constant 0 : i32
    return %c0_i32, %c0_i32_0 : i32, i32
  }
  func.func @transform_7(%arg0: i32) -> (i32, i32) {
    %c0_i32 = arith.constant 0 : i32
    %c0_i32_0 = arith.constant 0 : i32
    return %c0_i32, %arg0 : i32, i32
  }
}

module attributes {stable_mosaic.version = 11 : i64} {
  func.func @_conv3x3_kernel(%arg0: i32, %arg1: memref<8x1408xbf16, #tpu.memory_space<vmem>>, %arg2: memref<8x128xbf16, #tpu.memory_space<vmem>>, %arg3: memref<16x72xbf16, #tpu.memory_space<vmem>>, %arg4: memref<16x1xf32, #tpu.memory_space<vmem>>, %arg5: memref<16x1408xbf16, #tpu.memory_space<vmem>>) attributes {dimension_semantics = [#tpu.dimension_semantics<parallel>], iteration_bounds = array<i64: 1>, scalar_prefetch = 0 : i64, scratch_operands = 0 : i64, tpu.core_type = #tpu.core_type<tc>, window_params = [{transform_indices = @transform_0, window_bounds = array<i64: 8, 1408>}, {transform_indices = @transform_1, window_bounds = array<i64: 8, 128>}, {pipeline_mode = #tpu.pipeline_mode<synchronous>, transform_indices = @transform_2, window_bounds = array<i64: 16, 72>}, {pipeline_mode = #tpu.pipeline_mode<synchronous>, transform_indices = @transform_3, window_bounds = array<i64: 16, 1>}, {transform_indices = @transform_4, window_bounds = array<i64: 16, 1408>}]} {
    %c0 = arith.constant 0 : index
    %c0_0 = arith.constant 0 : index
    %0 = vector.load %arg1[%c0, %c0_0] : memref<8x1408xbf16, #tpu.memory_space<vmem>>, vector<8x1408xbf16>
    %c0_1 = arith.constant 0 : index
    %c0_2 = arith.constant 0 : index
    %1 = vector.load %arg2[%c0_1, %c0_2] : memref<8x128xbf16, #tpu.memory_space<vmem>>, vector<8x128xbf16>
    %2 = tpu.concatenate %0, %1 in 1 : vector<8x1408xbf16>, vector<8x128xbf16> -> vector<8x1536xbf16>
    %3 = vector.extract_strided_slice %2 {offsets = [0, 0], sizes = [8, 1408], strides = [1, 1]} : vector<8x1536xbf16> to vector<8x1408xbf16>
    %4 = vector.extract_strided_slice %2 {offsets = [0, 1], sizes = [8, 1408], strides = [1, 1]} : vector<8x1536xbf16> to vector<8x1408xbf16>
    %5 = vector.extract_strided_slice %2 {offsets = [0, 2], sizes = [8, 1408], strides = [1, 1]} : vector<8x1536xbf16> to vector<8x1408xbf16>
    %6 = vector.extract_strided_slice %2 {offsets = [0, 18], sizes = [8, 1408], strides = [1, 1]} : vector<8x1536xbf16> to vector<8x1408xbf16>
    %7 = vector.extract_strided_slice %2 {offsets = [0, 19], sizes = [8, 1408], strides = [1, 1]} : vector<8x1536xbf16> to vector<8x1408xbf16>
    %8 = vector.extract_strided_slice %2 {offsets = [0, 20], sizes = [8, 1408], strides = [1, 1]} : vector<8x1536xbf16> to vector<8x1408xbf16>
    %9 = vector.extract_strided_slice %2 {offsets = [0, 36], sizes = [8, 1408], strides = [1, 1]} : vector<8x1536xbf16> to vector<8x1408xbf16>
    %10 = vector.extract_strided_slice %2 {offsets = [0, 37], sizes = [8, 1408], strides = [1, 1]} : vector<8x1536xbf16> to vector<8x1408xbf16>
    %11 = vector.extract_strided_slice %2 {offsets = [0, 38], sizes = [8, 1408], strides = [1, 1]} : vector<8x1536xbf16> to vector<8x1408xbf16>
    %12 = tpu.concatenate %3, %4, %5, %6, %7, %8, %9, %10, %11 in 0 : vector<8x1408xbf16>, vector<8x1408xbf16>, vector<8x1408xbf16>, vector<8x1408xbf16>, vector<8x1408xbf16>, vector<8x1408xbf16>, vector<8x1408xbf16>, vector<8x1408xbf16>, vector<8x1408xbf16> -> vector<72x1408xbf16>
    %c0_3 = arith.constant 0 : index
    %c0_4 = arith.constant 0 : index
    %13 = vector.load %arg3[%c0_3, %c0_4] : memref<16x72xbf16, #tpu.memory_space<vmem>>, vector<16x72xbf16>
    %cst = arith.constant dense<0.000000e+00> : vector<16x1408xf32>
    %14 = tpu.matmul %13, %12, %cst {dimension_numbers = #tpu.dot_dimension_numbers<[1], [0], [0], [1], [0, 0, 1, 1], [], []>} : vector<16x72xbf16>, vector<72x1408xbf16>, vector<16x1408xf32> -> vector<16x1408xf32>
    %c0_5 = arith.constant 0 : index
    %c0_6 = arith.constant 0 : index
    %15 = vector.load %arg4[%c0_5, %c0_6] : memref<16x1xf32, #tpu.memory_space<vmem>>, vector<16x1xf32>
    %16 = vector.broadcast %15 : vector<16x1xf32> to vector<16x1408xf32>
    %17 = arith.addf %14, %16 : vector<16x1408xf32>
    %cst_7 = arith.constant 0.000000e+00 : f32
    %18 = vector.broadcast %cst_7 : f32 to vector<16x1408xf32>
    %19 = arith.maximumf %17, %18 : vector<16x1408xf32>
    %20 = arith.truncf %19 : vector<16x1408xf32> to vector<16x1408xbf16>
    %c0_8 = arith.constant 0 : index
    %c0_9 = arith.constant 0 : index
    %21 = vector.load %arg5[%c0_8, %c0_9] : memref<16x1408xbf16, #tpu.memory_space<vmem>>, vector<16x1408xbf16>
    tpu.vector_store %arg5[%c0_8, %c0_9], %20 {strides = array<i32>} : memref<16x1408xbf16, #tpu.memory_space<vmem>>, vector<16x1408xbf16>,
    return
  }
  func.func @transform_0(%arg0: i32) -> (i32, i32) {
    %c0_i32 = arith.constant 0 : i32
    %c0_i32_0 = arith.constant 0 : i32
    return %c0_i32, %arg0 : i32, i32
  }
  func.func @transform_1(%arg0: i32) -> (i32, i32) {
    %c1_i32 = arith.constant 1 : i32
    %0 = arith.addi %arg0, %c1_i32 : i32
    %c11_i32 = arith.constant 11 : i32
    %1 = arith.muli %0, %c11_i32 : i32
    %c0_i32 = arith.constant 0 : i32
    %c0_i32_0 = arith.constant 0 : i32
    return %c0_i32, %1 : i32, i32
  }
  func.func @transform_2(%arg0: i32) -> (i32, i32) {
    %c0_i32 = arith.constant 0 : i32
    %c0_i32_0 = arith.constant 0 : i32
    %c0_i32_1 = arith.constant 0 : i32
    return %c0_i32, %c0_i32_0 : i32, i32
  }
  func.func @transform_3(%arg0: i32) -> (i32, i32) {
    %c0_i32 = arith.constant 0 : i32
    %c0_i32_0 = arith.constant 0 : i32
    %c0_i32_1 = arith.constant 0 : i32
    return %c0_i32, %c0_i32_0 : i32, i32
  }
  func.func @transform_4(%arg0: i32) -> (i32, i32) {
    %c0_i32 = arith.constant 0 : i32
    %c0_i32_0 = arith.constant 0 : i32
    return %c0_i32, %arg0 : i32, i32
  }
}

module attributes {stable_mosaic.version = 11 : i64} {
  func.func @_conv3x3_kernel(%arg0: i32, %arg1: memref<16x1408xbf16, #tpu.memory_space<vmem>>, %arg2: memref<16x128xbf16, #tpu.memory_space<vmem>>, %arg3: memref<8x144xbf16, #tpu.memory_space<vmem>>, %arg4: memref<8x1xf32, #tpu.memory_space<vmem>>, %arg5: memref<8x1408xf32, #tpu.memory_space<vmem>>) attributes {dimension_semantics = [#tpu.dimension_semantics<parallel>], iteration_bounds = array<i64: 1>, scalar_prefetch = 0 : i64, scratch_operands = 0 : i64, tpu.core_type = #tpu.core_type<tc>, window_params = [{transform_indices = @transform_0, window_bounds = array<i64: 16, 1408>}, {transform_indices = @transform_1, window_bounds = array<i64: 16, 128>}, {pipeline_mode = #tpu.pipeline_mode<synchronous>, transform_indices = @transform_2, window_bounds = array<i64: 8, 144>}, {pipeline_mode = #tpu.pipeline_mode<synchronous>, transform_indices = @transform_3, window_bounds = array<i64: 8, 1>}, {transform_indices = @transform_4, window_bounds = array<i64: 8, 1408>}]} {
    %c0 = arith.constant 0 : index
    %c0_0 = arith.constant 0 : index
    %0 = vector.load %arg1[%c0, %c0_0] : memref<16x1408xbf16, #tpu.memory_space<vmem>>, vector<16x1408xbf16>
    %c0_1 = arith.constant 0 : index
    %c0_2 = arith.constant 0 : index
    %1 = vector.load %arg2[%c0_1, %c0_2] : memref<16x128xbf16, #tpu.memory_space<vmem>>, vector<16x128xbf16>
    %2 = tpu.concatenate %0, %1 in 1 : vector<16x1408xbf16>, vector<16x128xbf16> -> vector<16x1536xbf16>
    %3 = vector.extract_strided_slice %2 {offsets = [0, 0], sizes = [16, 1408], strides = [1, 1]} : vector<16x1536xbf16> to vector<16x1408xbf16>
    %4 = vector.extract_strided_slice %2 {offsets = [0, 1], sizes = [16, 1408], strides = [1, 1]} : vector<16x1536xbf16> to vector<16x1408xbf16>
    %5 = vector.extract_strided_slice %2 {offsets = [0, 2], sizes = [16, 1408], strides = [1, 1]} : vector<16x1536xbf16> to vector<16x1408xbf16>
    %6 = vector.extract_strided_slice %2 {offsets = [0, 18], sizes = [16, 1408], strides = [1, 1]} : vector<16x1536xbf16> to vector<16x1408xbf16>
    %7 = vector.extract_strided_slice %2 {offsets = [0, 19], sizes = [16, 1408], strides = [1, 1]} : vector<16x1536xbf16> to vector<16x1408xbf16>
    %8 = vector.extract_strided_slice %2 {offsets = [0, 20], sizes = [16, 1408], strides = [1, 1]} : vector<16x1536xbf16> to vector<16x1408xbf16>
    %9 = vector.extract_strided_slice %2 {offsets = [0, 36], sizes = [16, 1408], strides = [1, 1]} : vector<16x1536xbf16> to vector<16x1408xbf16>
    %10 = vector.extract_strided_slice %2 {offsets = [0, 37], sizes = [16, 1408], strides = [1, 1]} : vector<16x1536xbf16> to vector<16x1408xbf16>
    %11 = vector.extract_strided_slice %2 {offsets = [0, 38], sizes = [16, 1408], strides = [1, 1]} : vector<16x1536xbf16> to vector<16x1408xbf16>
    %12 = tpu.concatenate %3, %4, %5, %6, %7, %8, %9, %10, %11 in 0 : vector<16x1408xbf16>, vector<16x1408xbf16>, vector<16x1408xbf16>, vector<16x1408xbf16>, vector<16x1408xbf16>, vector<16x1408xbf16>, vector<16x1408xbf16>, vector<16x1408xbf16>, vector<16x1408xbf16> -> vector<144x1408xbf16>
    %c0_3 = arith.constant 0 : index
    %c0_4 = arith.constant 0 : index
    %13 = vector.load %arg3[%c0_3, %c0_4] : memref<8x144xbf16, #tpu.memory_space<vmem>>, vector<8x144xbf16>
    %cst = arith.constant dense<0.000000e+00> : vector<8x1408xf32>
    %14 = tpu.matmul %13, %12, %cst {dimension_numbers = #tpu.dot_dimension_numbers<[1], [0], [0], [1], [0, 0, 1, 1], [], []>} : vector<8x144xbf16>, vector<144x1408xbf16>, vector<8x1408xf32> -> vector<8x1408xf32>
    %c0_5 = arith.constant 0 : index
    %c0_6 = arith.constant 0 : index
    %15 = vector.load %arg4[%c0_5, %c0_6] : memref<8x1xf32, #tpu.memory_space<vmem>>, vector<8x1xf32>
    %16 = vector.broadcast %15 : vector<8x1xf32> to vector<8x1408xf32>
    %17 = arith.addf %14, %16 : vector<8x1408xf32>
    %c0_7 = arith.constant 0 : index
    %c0_8 = arith.constant 0 : index
    %18 = vector.load %arg5[%c0_7, %c0_8] : memref<8x1408xf32, #tpu.memory_space<vmem>>, vector<8x1408xf32>
    tpu.vector_store %arg5[%c0_7, %c0_8], %17 {strides = array<i32>} : memref<8x1408xf32, #tpu.memory_space<vmem>>, vector<8x1408xf32>,
    return
  }
  func.func @transform_0(%arg0: i32) -> (i32, i32) {
    %c0_i32 = arith.constant 0 : i32
    %c0_i32_0 = arith.constant 0 : i32
    return %c0_i32, %arg0 : i32, i32
  }
  func.func @transform_1(%arg0: i32) -> (i32, i32) {
    %c1_i32 = arith.constant 1 : i32
    %0 = arith.addi %arg0, %c1_i32 : i32
    %c11_i32 = arith.constant 11 : i32
    %1 = arith.muli %0, %c11_i32 : i32
    %c0_i32 = arith.constant 0 : i32
    %c0_i32_0 = arith.constant 0 : i32
    return %c0_i32, %1 : i32, i32
  }
  func.func @transform_2(%arg0: i32) -> (i32, i32) {
    %c0_i32 = arith.constant 0 : i32
    %c0_i32_0 = arith.constant 0 : i32
    %c0_i32_1 = arith.constant 0 : i32
    return %c0_i32, %c0_i32_0 : i32, i32
  }
  func.func @transform_3(%arg0: i32) -> (i32, i32) {
    %c0_i32 = arith.constant 0 : i32
    %c0_i32_0 = arith.constant 0 : i32
    %c0_i32_1 = arith.constant 0 : i32
    return %c0_i32, %c0_i32_0 : i32, i32
  }
  func.func @transform_4(%arg0: i32) -> (i32, i32) {
    %c0_i32 = arith.constant 0 : i32
    %c0_i32_0 = arith.constant 0 : i32
    return %c0_i32, %arg0 : i32, i32
  }
}

</mosaic_0001>

<bundles_post_ra>
// kernel: expandmani_ae_spatial_interpolate_forward.4
= control target key start
LH: loop header
LB: loop body
LE: loop exit
PB: predicated region body
PF: predicated region fallthrough
CT: control target
= control target key end

     0   :  { %s479_s19 = smov 90   ;;  %s480_s20 = smov 92   ;;  %vm228_vm0 = vcmask 736256   ;;  %vm235_vm1 = vcmask 1043456   ;;  %vm186_vm2 = vcmask 752640   ;;  %vm207_vm3 = vcmask 744448   ;;  %s768_s0 = inlined_call_operand.vmem [shape: bf16[8,896], index: 0, kind: input, shape index: {}, may-alias: {0,1}]   ;;  %s769_s1 = inlined_call_operand.vmem [shape: bf16[8,896], index: 1, kind: input, shape index: {}, may-alias: {0,1}]   ;;  %s770_s2 = inlined_call_operand.vmem [shape: bf16[8,72], index: 2, kind: input, shape index: {}]   ;;  %s771_s3 = inlined_call_operand.vmem [shape: f32[8,1], index: 3, kind: input, shape index: {}]   ;;  %s772_s4 = inlined_call_operand.vmem [shape: bf16[8,768], index: 4, kind: output, shape index: {}]  }
   0x1   :  { %v41_v0 = vld [vmem:[%s768_s0 + $0x8] sm:$0xff]  ;;  %v40_v1 = vld [vmem:[%s768_s0] sm:$0xff]  ;;  %s481_s21 = smov 91   ;;  %s482_s22 = smov 109   ;;  %v42_v11 = vld [vmem:[%s768_s0 + $0x10] sm:$0xff]  ;;  %vm144_vm4 = vcmask 891904  }
   0x2   :  { %v49_v2 = vunpack.c.l.b16 %v41_v0  ;;  %v48_v3 = vunpack.c.h.b16 %v40_v1  ;;  %v47_v4 = vunpack.c.l.b16 %v40_v1  ;;  %s483_s25 = smov 108   ;;  %v51_v12 = vunpack.c.l.b16 %v42_v11  ;;  %s484_s26 = smov 126   ;;  %v461_v19 = vld [vmem:[%s769_s1 + $0x18] sm:$0xf] }
   0x3   :  { %v50_v13 = vunpack.c.h.b16 %v41_v0  ;;  %s485_s0 = smov 110   ;;  %s486_s27 = smov 127   ;;  %v52_v18 = vunpack.c.h.b16 %v42_v11  ;;  %v66_v24 = vrot.slane %v461_v19, 4  ;;  %vm165_vm5 = vcmask 883712  }
   0x4   :  { %v519_v5 = vpack.c.b16 %v49_v2, %v49_v2  ;;  %v521_v6 = vpack.c.b16 %v48_v3, %v48_v3  ;;  %v523_v7 = vpack.c.b16 %v47_v4, %v47_v4  ;;  %v555_v14 = vpack.c.b16 %v51_v12, %v51_v12 }
   0x5   :  { %v557_v15 = vpack.c.b16 %v50_v13, %v50_v13  ;;  %v586_v20 = vpack.c.b16 %v52_v18, %v52_v18  ;;  %vm102_vm6 = vcmask 1031168   ;;  %vm123_vm7 = vcmask 900096  }
   0x6   :  { %218 = vrot.lane.b32.xlu1 %v519_v5, %s479_s19  ;;  %174 = vrot.lane.b32.xlu2 %v521_v6, %s480_s20  ;;  %v62_v8 = vrot.slane %v519_v5, 4  ;;  %v61_v9 = vrot.slane %v521_v6, 4  ;;  %v60_v10 = vrot.slane %v523_v7, 4  ;;  %v64_v17 = vrot.slane %v555_v14, 4 }
   0x7   :  { %214 = vrot.lane.b32.xlu0 %v523_v7, %s479_s19  ;;  %v63_v16 = vrot.slane %v557_v15, 4  ;;  %v65_v22 = vrot.slane %v586_v20, 4  ;;  %vm81_vm8 = vcmask 1039360   ;;  %vm339_vm9 = vcmask 588800  }
   0xe   :  { %176 = vrot.lane.b32.xlu2 %v519_v5, %s480_s20  ;;  %172 = vrot.lane.b32.xlu1 %v523_v7, %s480_s20 }
   0xf   :  { %216 = vrot.lane.b32.xlu0 %v521_v6, %s479_s19 }
  0x16   :  { %197 = vrot.lane.b32.xlu2 %v62_v8, %s481_s21  ;;  %195 = vrot.lane.b32.xlu1 %v61_v9, %s481_s21 }
  0x17   :  { %193 = vrot.lane.b32.xlu0 %v60_v10, %s481_s21 }
  0x1e   :  { %134 = vrot.lane.b32.xlu2 %v519_v5, %s482_s22  ;;  %132 = vrot.lane.b32.xlu1 %v521_v6, %s482_s22 }
  0x1f   :  { %130 = vrot.lane.b32.xlu0 %v523_v7, %s482_s22 }
  0x26   :  { %155 = vrot.lane.b32.xlu2 %v62_v8, %s483_s25  ;;  %153 = vrot.lane.b32.xlu1 %v61_v9, %s483_s25 }
  0x27   :  { %151 = vrot.lane.b32.xlu0 %v60_v10, %s483_s25 }
  0x2e   :  { %88 = vrot.lane.b32.xlu2 %v523_v7, %s484_s26  ;;  %222 = vrot.lane.b32.xlu1 %v555_v14, %s479_s19 }
  0x2f   :  { %220 = vrot.lane.b32.xlu0 %v557_v15, %s479_s19 }
  0x36   :  { %92 = vrot.lane.b32.xlu1 %v519_v5, %s484_s26  ;;  %109 = vrot.lane.b32.xlu2 %v60_v10, %s485_s0 }
  0x37   :  { %90 = vrot.lane.b32.xlu0 %v521_v6, %s484_s26 }
  0x3e   :  { %113 = vrot.lane.b32.xlu1 %v62_v8, %s485_s0  ;;  %178 = vrot.lane.b32.xlu2 %v557_v15, %s480_s20 }
  0x3f   :  { %111 = vrot.lane.b32.xlu0 %v61_v9, %s485_s0 }
  0x46   :  { %199 = vrot.lane.b32.xlu1 %v63_v16, %s481_s21  ;;  %201 = vrot.lane.b32.xlu2 %v64_v17, %s481_s21 }
  0x47   :  { %180 = vrot.lane.b32.xlu0 %v555_v14, %s480_s20 }
  0x4e   :  { %69 = vrot.lane.b32.xlu1 %v61_v9, %s486_s27  ;;  %71 = vrot.lane.b32.xlu2 %v62_v8, %s486_s27 }
  0x4f   :  { %67 = vrot.lane.b32.xlu0 %v60_v10, %s486_s27 }
  0x56   :  { %226 = vrot.lane.b32.xlu1 %v461_v19, %s479_s19  ;;  %136 = vrot.lane.b32.xlu2 %v557_v15, %s482_s22 }
  0x57   :  { %224 = vrot.lane.b32.xlu0 %v586_v20, %s479_s19 }
  0x5e   :  { %157 = vrot.lane.b32.xlu1 %v63_v16, %s483_s25  ;;  %159 = vrot.lane.b32.xlu2 %v64_v17, %s483_s25 }
  0x5f   :  { %138 = vrot.lane.b32.xlu0 %v555_v14, %s482_s22 }
  0x60   :  { %v175_v21 = vpop.permute.xlu2 %174 }
  0x66   :  { %184 = vrot.lane.b32.xlu1 %v461_v19, %s480_s20  ;;  %203 = vrot.lane.b32.xlu2 %v65_v22, %s481_s21 }
  0x67   :  { %182 = vrot.lane.b32.xlu0 %v586_v20, %s480_s20 }
  0x68   :  { %v602_v23 = vpop.permute.xlu2 %176 }
  0x69   :  { %v188_v37 = vsel %vm186_vm2, %v175_v21, %v602_v23 }
  0x6e   :  { %94 = vrot.lane.b32.xlu1 %v557_v15, %s484_s26  ;;  %96 = vrot.lane.b32.xlu2 %v555_v14, %s484_s26 }
  0x6f   :  { %205 = vrot.lane.b32.xlu0 %v66_v24, %s481_s21 }
  0x70   :  { %v609_v25 = vpop.permute.xlu2 %197 }
  0x76   :  { %117 = vrot.lane.b32.xlu1 %v64_v17, %s485_s0  ;;  %140 = vrot.lane.b32.xlu2 %v586_v20, %s482_s22 }
  0x77   :  { %115 = vrot.lane.b32.xlu0 %v63_v16, %s485_s0 }
  0x78   :  { %v219_v26 = vpop.permute.xlu1 %218  ;;  %v615_v27 = vpop.permute.xlu2 %134 }
  0x79   :  { %v215_v28 = vpop.permute.xlu0 %214 }
  0x7e   :  { %161 = vrot.lane.b32.xlu1 %v65_v22, %s483_s25  ;;  %163 = vrot.lane.b32.xlu2 %v66_v24, %s483_s25 }
  0x7f   :  { %142 = vrot.lane.b32.xlu0 %v461_v19, %s482_s22 }
  0x80   :  { %v620_v29 = vpop.permute.xlu2 %155  ;;  %v173_v30 = vpop.permute.xlu1 %172 }
  0x81   :  { %v217_v31 = vpop.permute.xlu0 %216  ;;  %v187_v40 = vsel %vm186_vm2, %v173_v30, %v175_v21 }
  0x82   :  { %v229_v32 = vsel %vm228_vm0, %v215_v28, %v217_v31  ;;  %v230_v33 = vsel %vm228_vm0, %v217_v31, %v219_v26 }
  0x83   :  { %v344_v34 = vsel %vm235_vm1, %v229_v32, 0  ;;  %v347_v35 = vsel %vm235_vm1, %v230_v33, 0 }
  0x84   :  { %364 = vmatpush.bf16.msra.mxu0 %v344_v34  ;;  %377 = vmatpush.bf16.msra.mxu1 %v347_v35 }
  0x86   :  { %75 = vrot.lane.b32.xlu1 %v64_v17, %s486_s27  ;;  %98 = vrot.lane.b32.xlu2 %v586_v20, %s484_s26 }
  0x87   :  { %73 = vrot.lane.b32.xlu0 %v63_v16, %s486_s27 }
  0x88   :  { %v196_v36 = vpop.permute.xlu1 %195  ;;  %v89_v41 = vpop.permute.xlu2 %88 }
  0x89   :  { %v209_v38 = vsel %vm207_vm3, %v196_v36, %v609_v25  ;;  %v194_v39 = vpop.permute.xlu0 %193 }
  0x8a   :  { %v208_v42 = vsel %vm207_vm3, %v194_v39, %v196_v36  ;;  %v314_v43 = vsel %vm235_vm1, %v188_v37, %v209_v38 }
  0x8b   :  { %v310_v44 = vsel %vm235_vm1, %v187_v40, %v208_v42  ;;  %378 = vmatpush.bf16.msra.mxu1 %v314_v43 }
  0x8c   :  { %365 = vmatpush.bf16.msra.mxu0 %v310_v44 }
  0x8e   :  { %119 = vrot.lane.b32.xlu1 %v65_v22, %s485_s0  ;;  %121 = vrot.lane.b32.xlu2 %v66_v24, %s485_s0 }
  0x8f   :  { %100 = vrot.lane.b32.xlu0 %v461_v19, %s484_s26 }
  0x90   :  { %v133_v45 = vpop.permute.xlu1 %132  ;;  %v110_v47 = vpop.permute.xlu2 %109 }
  0x91   :  { %v131_v46 = vpop.permute.xlu0 %130  ;;  %v146_v49 = vsel %vm144_vm4, %v133_v45, %v615_v27 }
  0x92   :  { %v145_v52 = vsel %vm144_vm4, %v131_v46, %v133_v45 }
  0x96   :  { %79 = vrot.lane.b32.xlu1 %v66_v24, %s486_s27 }
  0x97   :  { %77 = vrot.lane.b32.xlu0 %v65_v22, %s486_s27 }
  0x98   :  { %v154_v48 = vpop.permute.xlu1 %153  ;;  %v179_v56 = vpop.permute.xlu2 %178 }
  0x99   :  { %v167_v50 = vsel %vm165_vm5, %v154_v48, %v620_v29  ;;  %v152_v51 = vpop.permute.xlu0 %151  ;;  %v189_v17 = vsel %vm186_vm2, %v602_v23, %v179_v56 }
  0x9a   :  { %v166_v53 = vsel %vm165_vm5, %v152_v51, %v154_v48  ;;  %v290_v54 = vsel %vm235_vm1, %v146_v49, %v167_v50  ;;  %v702_v48 = vld [vmem:[%s770_s2] sm:$0xf] }
  0x9b   :  { %v286_v55 = vsel %vm235_vm1, %v145_v52, %v166_v53  ;;  %379 = vmatpush.bf16.msra.mxu1 %v290_v54 }
  0x9c   :  { %366 = vmatpush.bf16.msra.mxu0 %v286_v55 }
  0xa0   :  { %v223_v57 = vpop.permute.xlu1 %222  ;;  %v655_v63 = vpop.permute.xlu2 %201 }
  0xa1   :  { %v221_v58 = vpop.permute.xlu0 %220 }
  0xa2   :  { %v231_v59 = vsel %vm228_vm0, %v219_v26, %v221_v58  ;;  %v232_v60 = vsel %vm228_vm0, %v221_v58, %v223_v57 }
  0xa3   :  { %v350_v61 = vsel %vm235_vm1, %v231_v59, 0  ;;  %v353_v62 = vsel %vm235_vm1, %v232_v60, 0 }
  0xa4   :  { %390 = vmatpush.bf16.msra.mxu2 %v350_v61  ;;  %403 = vmatpush.bf16.msra.mxu3 %v353_v62 }
  0xa8   :  { %v657_v0 = vpop.permute.xlu1 %92  ;;  %v661_v4 = vpop.permute.xlu2 %71 }
  0xa9   :  { %v91_v1 = vpop.permute.xlu0 %90 }
  0xaa   :  { %v103_v8 = vsel %vm102_vm6, %v89_v41, %v91_v1  ;;  %v104_v9 = vsel %vm102_vm6, %v91_v1, %v657_v0 }
  0xb0   :  { %v659_v2 = vpop.permute.xlu1 %113  ;;  %v137_v28 = vpop.permute.xlu2 %136 }
  0xb1   :  { %v112_v3 = vpop.permute.xlu0 %111 }
  0xb2   :  { %v124_v10 = vsel %vm123_vm7, %v110_v47, %v112_v3  ;;  %v125_v11 = vsel %vm123_vm7, %v112_v3, %v659_v2 }
  0xb3   :  { %v262_v12 = vsel %vm235_vm1, %v103_v8, %v124_v10  ;;  %v266_v13 = vsel %vm235_vm1, %v104_v9, %v125_v11  ;;  %v333_v10 = vld [vmem:[%s771_s3] sm:$0xff] }
  0xb4   :  { %367 = vmatpush.bf16.msra.mxu0 %v262_v12  ;;  %380 = vmatpush.bf16.msra.mxu1 %v266_v13 }
  0xb8   :  { %v200_v16 = vpop.permute.xlu1 %199  ;;  %v160_v34 = vpop.permute.xlu2 %159 }
  0xb9   :  { %v210_v18 = vsel %vm207_vm3, %v609_v25, %v200_v16  ;;  %v211_v19 = vsel %vm207_vm3, %v200_v16, %v655_v63  ;;  %v181_v21 = vpop.permute.xlu0 %180 }
  0xba   :  { %v190_v22 = vsel %vm186_vm2, %v179_v56, %v181_v21  ;;  %v318_v24 = vsel %vm235_vm1, %v189_v17, %v210_v18 }
  0xbb   :  { %391 = vmatpush.bf16.msra.mxu2 %v318_v24  ;;  %v322_v26 = vsel %vm235_vm1, %v190_v22, %v211_v19 }
  0xbc   :  { %404 = vmatpush.bf16.msra.mxu3 %v322_v26 }
  0xc0   :  { %v70_v30 = vpop.permute.xlu1 %69  ;;  %v204_v41 = vpop.permute.xlu2 %203 }
  0xc1   :  { %v83_v23 = vsel %vm81_vm8, %v70_v30, %v661_v4  ;;  %v68_v31 = vpop.permute.xlu0 %67  ;;  %v212_v49 = vsel %vm207_vm3, %v655_v63, %v204_v41 }
  0xc2   :  { %v82_v25 = vsel %vm81_vm8, %v68_v31, %v70_v30  ;;  %v242_v32 = vsel %vm235_vm1, %v521_v6, %v83_v23 }
  0xc3   :  { %v238_v33 = vsel %vm235_vm1, %v523_v7, %v82_v25  ;;  %381 = vmatpush.bf16.msra.mxu1 %v242_v32  ;;  %v147_v7 = vsel %vm144_vm4, %v615_v27, %v137_v28 }
  0xc4   :  { %368 = vmatpush.bf16.msra.mxu0 %v238_v33 }
  0xc6   :  { %463 = vmatmul.msk.bf16.vlgmr.msra.gmra.mxu1 %vm339_vm9, %v702_v48 }
  0xc7   :  { %462 = vmatmul.msk.bf16.vlgmr.msra.gmra.mxu0 %vm339_vm9, %v702_v48 }
  0xc8   :  { %v227_v35 = vpop.permute.xlu1 %226  ;;  %v97_v50 = vpop.permute.xlu2 %96 }
  0xc9   :  { %v225_v36 = vpop.permute.xlu0 %224 }
  0xca   :  { %v233_v37 = vsel %vm228_vm0, %v223_v57, %v225_v36  ;;  %v234_v38 = vsel %vm228_vm0, %v225_v36, %v227_v35 }
  0xcb   :  { %v356_v39 = vsel %vm235_vm1, %v233_v37, 0  ;;  %v359_v40 = vsel %vm235_vm1, %v234_v38, 0 }
  0xcc   :  { %416 = vmatpush.bf16.msrb.mxu0 %v356_v39  ;;  %429 = vmatpush.bf16.msrb.mxu1 %v359_v40 }
  0xd0   :  { %v158_v6 = vpop.permute.xlu1 %157  ;;  %v141_v58 = vpop.permute.xlu2 %140 }
  0xd1   :  { %v168_v42 = vsel %vm165_vm5, %v620_v29, %v158_v6  ;;  %v169_v43 = vsel %vm165_vm5, %v158_v6, %v160_v34  ;;  %v139_v44 = vpop.permute.xlu0 %138 }
  0xd2   :  { %v148_v45 = vsel %vm144_vm4, %v137_v28, %v139_v44  ;;  %v294_v46 = vsel %vm235_vm1, %v147_v7, %v168_v42  ;;  %v149_v12 = vsel %vm144_vm4, %v139_v44, %v141_v58 }
  0xd3   :  { %392 = vmatpush.bf16.msra.mxu2 %v294_v46  ;;  %v298_v47 = vsel %vm235_vm1, %v148_v45, %v169_v43 }
  0xd4   :  { %405 = vmatpush.bf16.msra.mxu3 %v298_v47 }
  0xd8   :  { %v185_v27 = vpop.permute.xlu1 %184  ;;  %v164_v9 = vpop.permute.xlu2 %163 }
  0xd9   :  { %v183_v29 = vpop.permute.xlu0 %182 }
  0xda   :  { %v191_v51 = vsel %vm186_vm2, %v181_v21, %v183_v29  ;;  %v192_v55 = vsel %vm186_vm2, %v183_v29, %v185_v27 }
  0xdb   :  { %v326_v52 = vsel %vm235_vm1, %v191_v51, %v212_v49 }
  0xdc   :  { %417 = vmatpush.bf16.msrb.mxu0 %v326_v52 }
  0xe0   :  { %v95_v53 = vpop.permute.xlu1 %94  ;;  %v99_v21 = vpop.permute.xlu2 %98 }
  0xe1   :  { %v206_v54 = vpop.permute.xlu0 %205  ;;  %v105_v61 = vsel %vm102_vm6, %v657_v0, %v95_v53  ;;  %v106_v62 = vsel %vm102_vm6, %v95_v53, %v97_v50  ;;  %v487_v0 = vmov 0  }
  0xe2   :  { %v213_v56 = vsel %vm207_vm3, %v204_v41, %v206_v54  ;;  %477 = vset.pattern.permute.xlu2 %v487_v0  ;;  %478 = vset.pattern.permute.xlu0 %v487_v0 }
  0xe3   :  { %v330_v57 = vsel %vm235_vm1, %v192_v55, %v213_v56  ;;  %336 = vperm.xlu2 %477, %v333_v10  }
  0xe4   :  { %430 = vmatpush.bf16.msrb.mxu1 %v330_v57 }
  0xe8   :  { %v118_v59 = vpop.permute.xlu1 %117  ;;  %v122_v31 = vpop.permute.xlu2 %121 }
  0xe9   :  { %v116_v60 = vpop.permute.xlu0 %115 }
  0xea   :  { %v126_v63 = vsel %vm123_vm7, %v659_v2, %v116_v60  ;;  %v127_v1 = vsel %vm123_vm7, %v116_v60, %v118_v59 }
  0xeb   :  { %v270_v3 = vsel %vm235_vm1, %v105_v61, %v126_v63  ;;  %v274_v8 = vsel %vm235_vm1, %v106_v62, %v127_v1 }
  0xec   :  { %393 = vmatpush.bf16.msra.mxu2 %v270_v3  ;;  %406 = vmatpush.bf16.msra.mxu3 %v274_v8 }
  0xf0   :  { %v162_v11 = vpop.permute.xlu1 %161 }
  0xf1   :  { %v170_v2 = vsel %vm165_vm5, %v160_v34, %v162_v11  ;;  %v171_v13 = vsel %vm165_vm5, %v162_v11, %v164_v9  ;;  %v143_v16 = vpop.permute.xlu0 %142 }
  0xf2   :  { %v150_v17 = vsel %vm144_vm4, %v141_v58, %v143_v16  ;;  %v302_v18 = vsel %vm235_vm1, %v149_v12, %v170_v2 }
  0xf3   :  { %418 = vmatpush.bf16.msrb.mxu0 %v302_v18  ;;  %v306_v19 = vsel %vm235_vm1, %v150_v17, %v171_v13 }
  0xf4   :  { %431 = vmatpush.bf16.msrb.mxu1 %v306_v19 }
  0xf8   :  { %v76_v22 = vpop.permute.xlu1 %75 }
  0xf9   :  { %v74_v24 = vpop.permute.xlu0 %73 }
  0xfa   :  { %v84_v26 = vsel %vm81_vm8, %v661_v4, %v74_v24  ;;  %v85_v28 = vsel %vm81_vm8, %v74_v24, %v76_v22  ;;  %v107_v4 = vsel %vm102_vm6, %v97_v50, %v99_v21 }
  0xfb   :  { %v246_v30 = vsel %vm235_vm1, %v519_v5, %v84_v26  ;;  %v250_v23 = vsel %vm235_vm1, %v557_v15, %v85_v28 }
  0xfc   :  { %394 = vmatpush.bf16.msra.mxu2 %v246_v30  ;;  %407 = vmatpush.bf16.msra.mxu3 %v250_v23 }
  0xff   :  { %464 = vmatmul.msk.bf16.vlgmr.msra.gmra.mxu2 %vm339_vm9, %v702_v48  ;;  %465 = vmatmul.msk.bf16.vlgmr.msra.gmra.mxu3 %vm339_vm9, %v702_v48 }
 0x100   :  { %v120_v25 = vpop.permute.xlu1 %119 }
 0x101   :  { %v128_v32 = vsel %vm123_vm7, %v118_v59, %v120_v25  ;;  %v129_v33 = vsel %vm123_vm7, %v120_v25, %v122_v31  ;;  %v101_v5 = vpop.permute.xlu0 %100 }
 0x102   :  { %v108_v34 = vsel %vm102_vm6, %v99_v21, %v101_v5  ;;  %v278_v15 = vsel %vm235_vm1, %v107_v4, %v128_v32 }
 0x103   :  { %419 = vmatpush.bf16.msrb.mxu0 %v278_v15  ;;  %v282_v35 = vsel %vm235_vm1, %v108_v34, %v129_v33 }
 0x104   :  { %432 = vmatpush.bf16.msrb.mxu1 %v282_v35 }
 0x108   :  { %v80_v36 = vpop.permute.xlu1 %79 }
 0x109   :  { %v78_v37 = vpop.permute.xlu0 %77 }
 0x10a   :  { %v86_v38 = vsel %vm81_vm8, %v76_v22, %v78_v37  ;;  %v87_v39 = vsel %vm81_vm8, %v78_v37, %v80_v36 }
 0x10b   :  { %v254_v40 = vsel %vm235_vm1, %v555_v14, %v86_v38  ;;  %v258_v41 = vsel %vm235_vm1, %v586_v20, %v87_v39 }
 0x10c   :  { %420 = vmatpush.bf16.msrb.mxu0 %v254_v40  ;;  %433 = vmatpush.bf16.msrb.mxu1 %v258_v41 }
 0x10f   :  { %466 = vmatmul.msk.bf16.vlgmr.msrb.gmra.mxu0 %vm339_vm9, %v702_v48  ;;  %467 = vmatmul.msk.bf16.vlgmr.msrb.gmra.mxu1 %vm339_vm9, %v702_v48 }
 0x13d   :  { %v337_v6 = vpop.permute.xlu2 %336 }
 0x143   :  { %v383_v42 = vpop.f32.mrf.mxu1 }
 0x144   :  { %v370_v7 = vpop.f32.mrf.mxu0  ;;  %v384_v44 = vadd.f32 %v383_v42, %v337_v6 }
 0x145   :  { %v371_v43 = vadd.f32 %v370_v7, %v337_v6 }
 0x146   :  { %v440_v46 = vmax.f32 %v384_v44, 0.0 }
 0x147   :  { %v439_v45 = vmax.f32 %v371_v43, 0.0 }
 0x149   :  { %v445_v47 = vpack.c.bf16 %v440_v46, %v439_v45 }
 0x14b   :  { %448 = vst [vmem:[%s772_s4] sm:$0xff] %v445_v47  ;;  %v385_v20 = vpop.f32.mrf.mxu1 }
 0x14c   :  { %v372_v14 = vpop.f32.mrf.mxu0 }
 0x182   :  { %v396_v27 = vpop.f32.mrf.mxu2  ;;  %v409_v29 = vpop.f32.mrf.mxu3 }
 0x183   :  { %v397_v49 = vadd.f32 %v396_v27, %v337_v6  ;;  %v410_v50 = vadd.f32 %v409_v29, %v337_v6 }
 0x185   :  { %v441_v51 = vmax.f32 %v397_v49, 0.0  ;;  %v442_v48 = vmax.f32 %v410_v50, 0.0 }
 0x187   :  { %v446_v52 = vpack.c.bf16 %v442_v48, %v441_v51 }
 0x189   :  { %449 = vst [vmem:[%s772_s4 + $0x8] sm:$0xff] %v446_v52 }
 0x18a   :  { %v398_v53 = vpop.f32.mrf.mxu2  ;;  %v411_v54 = vpop.f32.mrf.mxu3 }
 0x18c   :  { %v422_v55 = vpop.f32.mrf.mxu0  ;;  %v435_v56 = vpop.f32.mrf.mxu1 }
 0x18d   :  { %v423_v57 = vadd.f32 %v422_v55, %v337_v6  ;;  %v436_v58 = vadd.f32 %v435_v56, %v337_v6 }
 0x18f   :  { %v443_v59 = vmax.f32 %v423_v57, 0.0  ;;  %v444_v60 = vmax.f32 %v436_v58, 0.0 }
 0x191   :  { %v447_v61 = vpack.c.bf16 %v444_v60, %v443_v59 }
 0x193   :  { %450 = vst [vmem:[%s772_s4 + $0x10] sm:$0xff] %v447_v61 }
 0x194   :  { %v424_v62 = vpop.f32.mrf.mxu0  ;;  %v437_v63 = vpop.f32.mrf.mxu1 }

// kernel: expandmani_ae_spatial_interpolate_forward.5
= control target key start
LH: loop header
LB: loop body
LE: loop exit
PB: predicated region body
PF: predicated region fallthrough
CT: control target
= control target key end

     0   :  { %s617_s28 = smov 90   ;;  %s618_s29 = smov 92   ;;  %vm259_vm0 = vcmask 736256   ;;  %vm266_vm1 = vcmask 1043456   ;;  %vm238_vm2 = vcmask 744448   ;;  %vm217_vm3 = vcmask 752640   ;;  %s973_s0 = inlined_call_operand.vmem [shape: bf16[8,896], index: 0, kind: input, shape index: {}, may-alias: {0,1}]   ;;  %s974_s1 = inlined_call_operand.vmem [shape: bf16[8,896], index: 1, kind: input, shape index: {}, may-alias: {0,1}]   ;;  %s975_s6 = inlined_call_operand.vmem [shape: f32[8,1], index: 6, kind: input, shape index: {}]   ;;  %s976_s4 = inlined_call_operand.vmem [shape: bf16[8,72], index: 4, kind: input, shape index: {}]   ;;  %s977_s5 = inlined_call_operand.vmem [shape: f32[8,1], index: 5, kind: input, shape index: {}]   ;;  %s978_s2 = inlined_call_operand.vmem [shape: f32[8,896], index: 2, kind: input, shape index: {}, may-alias: {2,3}]   ;;  %s979_s3 = inlined_call_operand.vmem [shape: f32[8,896], index: 3, kind: input, shape index: {}, may-alias: {2,3}]   ;;  %s980_s7 = inlined_call_operand.vmem [shape: f32[8,768], index: 7, kind: output, shape index: {}]  }
   0x1   :  { %v72_v0 = vld [vmem:[%s973_s0 + $0x8] sm:$0xff]  ;;  %v71_v1 = vld [vmem:[%s973_s0] sm:$0xff]  ;;  %s619_s30 = smov 91   ;;  %s620_s8 = smov 109   ;;  %v73_v11 = vld [vmem:[%s973_s0 + $0x10] sm:$0xff]  ;;  %vm196_vm4 = vcmask 883712  }
   0x2   :  { %v80_v2 = vunpack.c.l.b16 %v72_v0  ;;  %v79_v3 = vunpack.c.h.b16 %v71_v1  ;;  %v78_v4 = vunpack.c.l.b16 %v71_v1  ;;  %s621_s11 = smov 108   ;;  %v82_v12 = vunpack.c.l.b16 %v73_v11  ;;  %s622_s12 = smov 126   ;;  %v596_v19 = vld [vmem:[%s974_s1 + $0x18] sm:$0xf] }
   0x3   :  { %v81_v13 = vunpack.c.h.b16 %v72_v0  ;;  %s623_s0 = smov 110   ;;  %s624_s13 = smov 127   ;;  %v83_v18 = vunpack.c.h.b16 %v73_v11  ;;  %v97_v24 = vrot.slane %v596_v19, 4  ;;  %vm175_vm5 = vcmask 891904  }
   0x4   :  { %v673_v5 = vpack.c.b16 %v80_v2, %v80_v2  ;;  %v675_v6 = vpack.c.b16 %v79_v3, %v79_v3  ;;  %v677_v7 = vpack.c.b16 %v78_v4, %v78_v4  ;;  %v709_v14 = vpack.c.b16 %v82_v12, %v82_v12 }
   0x5   :  { %v711_v15 = vpack.c.b16 %v81_v13, %v81_v13  ;;  %v740_v20 = vpack.c.b16 %v83_v18, %v83_v18  ;;  %vm133_vm6 = vcmask 1031168   ;;  %vm154_vm7 = vcmask 900096  }
   0x6   :  { %249 = vrot.lane.b32.xlu1 %v673_v5, %s617_s28  ;;  %205 = vrot.lane.b32.xlu2 %v675_v6, %s618_s29  ;;  %v93_v8 = vrot.slane %v673_v5, 4  ;;  %v92_v9 = vrot.slane %v675_v6, 4  ;;  %v91_v10 = vrot.slane %v677_v7, 4  ;;  %v95_v17 = vrot.slane %v709_v14, 4 }
   0x7   :  { %245 = vrot.lane.b32.xlu0 %v677_v7, %s617_s28  ;;  %v94_v16 = vrot.slane %v711_v15, 4  ;;  %v96_v22 = vrot.slane %v740_v20, 4  ;;  %vm112_vm8 = vcmask 1039360   ;;  %vm370_vm9 = vcmask 588800  }
   0x8   :  { %vm520_vm10 = vcmask 154624  }
   0xe   :  { %207 = vrot.lane.b32.xlu2 %v673_v5, %s618_s29  ;;  %203 = vrot.lane.b32.xlu1 %v677_v7, %s618_s29 }
   0xf   :  { %247 = vrot.lane.b32.xlu0 %v675_v6, %s617_s28 }
  0x16   :  { %228 = vrot.lane.b32.xlu2 %v93_v8, %s619_s30  ;;  %226 = vrot.lane.b32.xlu1 %v92_v9, %s619_s30 }
  0x17   :  { %224 = vrot.lane.b32.xlu0 %v91_v10, %s619_s30 }
  0x1e   :  { %165 = vrot.lane.b32.xlu2 %v673_v5, %s620_s8  ;;  %163 = vrot.lane.b32.xlu1 %v675_v6, %s620_s8 }
  0x1f   :  { %161 = vrot.lane.b32.xlu0 %v677_v7, %s620_s8 }
  0x26   :  { %186 = vrot.lane.b32.xlu2 %v93_v8, %s621_s11  ;;  %184 = vrot.lane.b32.xlu1 %v92_v9, %s621_s11 }
  0x27   :  { %182 = vrot.lane.b32.xlu0 %v91_v10, %s621_s11 }
  0x2e   :  { %119 = vrot.lane.b32.xlu2 %v677_v7, %s622_s12  ;;  %253 = vrot.lane.b32.xlu1 %v709_v14, %s617_s28 }
  0x2f   :  { %251 = vrot.lane.b32.xlu0 %v711_v15, %s617_s28 }
  0x36   :  { %123 = vrot.lane.b32.xlu1 %v673_v5, %s622_s12  ;;  %140 = vrot.lane.b32.xlu2 %v91_v10, %s623_s0 }
  0x37   :  { %121 = vrot.lane.b32.xlu0 %v675_v6, %s622_s12 }
  0x3e   :  { %144 = vrot.lane.b32.xlu1 %v93_v8, %s623_s0  ;;  %209 = vrot.lane.b32.xlu2 %v711_v15, %s618_s29 }
  0x3f   :  { %142 = vrot.lane.b32.xlu0 %v92_v9, %s623_s0 }
  0x46   :  { %230 = vrot.lane.b32.xlu1 %v94_v16, %s619_s30  ;;  %232 = vrot.lane.b32.xlu2 %v95_v17, %s619_s30 }
  0x47   :  { %211 = vrot.lane.b32.xlu0 %v709_v14, %s618_s29 }
  0x4e   :  { %100 = vrot.lane.b32.xlu1 %v92_v9, %s624_s13  ;;  %102 = vrot.lane.b32.xlu2 %v93_v8, %s624_s13 }
  0x4f   :  { %98 = vrot.lane.b32.xlu0 %v91_v10, %s624_s13 }
  0x56   :  { %257 = vrot.lane.b32.xlu1 %v596_v19, %s617_s28  ;;  %167 = vrot.lane.b32.xlu2 %v711_v15, %s620_s8 }
  0x57   :  { %255 = vrot.lane.b32.xlu0 %v740_v20, %s617_s28 }
  0x5e   :  { %188 = vrot.lane.b32.xlu1 %v94_v16, %s621_s11  ;;  %190 = vrot.lane.b32.xlu2 %v95_v17, %s621_s11 }
  0x5f   :  { %169 = vrot.lane.b32.xlu0 %v709_v14, %s620_s8 }
  0x60   :  { %v206_v21 = vpop.permute.xlu2 %205 }
  0x66   :  { %215 = vrot.lane.b32.xlu1 %v596_v19, %s618_s29  ;;  %234 = vrot.lane.b32.xlu2 %v96_v22, %s619_s30 }
  0x67   :  { %213 = vrot.lane.b32.xlu0 %v740_v20, %s618_s29 }
  0x68   :  { %v756_v23 = vpop.permute.xlu2 %207 }
  0x69   :  { %v219_v37 = vsel %vm217_vm3, %v206_v21, %v756_v23 }
  0x6e   :  { %125 = vrot.lane.b32.xlu1 %v711_v15, %s622_s12  ;;  %127 = vrot.lane.b32.xlu2 %v709_v14, %s622_s12 }
  0x6f   :  { %236 = vrot.lane.b32.xlu0 %v97_v24, %s619_s30 }
  0x70   :  { %v763_v25 = vpop.permute.xlu2 %228 }
  0x76   :  { %148 = vrot.lane.b32.xlu1 %v95_v17, %s623_s0  ;;  %171 = vrot.lane.b32.xlu2 %v740_v20, %s620_s8 }
  0x77   :  { %146 = vrot.lane.b32.xlu0 %v94_v16, %s623_s0 }
  0x78   :  { %v250_v26 = vpop.permute.xlu1 %249  ;;  %v769_v27 = vpop.permute.xlu2 %165 }
  0x79   :  { %v246_v28 = vpop.permute.xlu0 %245 }
  0x7e   :  { %192 = vrot.lane.b32.xlu1 %v96_v22, %s621_s11  ;;  %194 = vrot.lane.b32.xlu2 %v97_v24, %s621_s11 }
  0x7f   :  { %173 = vrot.lane.b32.xlu0 %v596_v19, %s620_s8 }
  0x80   :  { %v774_v29 = vpop.permute.xlu2 %186  ;;  %v204_v30 = vpop.permute.xlu1 %203 }
  0x81   :  { %v248_v31 = vpop.permute.xlu0 %247  ;;  %v218_v40 = vsel %vm217_vm3, %v204_v30, %v206_v21 }
  0x82   :  { %v260_v32 = vsel %vm259_vm0, %v246_v28, %v248_v31  ;;  %v261_v33 = vsel %vm259_vm0, %v248_v31, %v250_v26 }
  0x83   :  { %v375_v34 = vsel %vm266_vm1, %v260_v32, 0  ;;  %v378_v35 = vsel %vm266_vm1, %v261_v33, 0 }
  0x84   :  { %395 = vmatpush.bf16.msra.mxu0 %v375_v34  ;;  %408 = vmatpush.bf16.msra.mxu1 %v378_v35 }
  0x86   :  { %106 = vrot.lane.b32.xlu1 %v95_v17, %s624_s13  ;;  %129 = vrot.lane.b32.xlu2 %v740_v20, %s622_s12 }
  0x87   :  { %104 = vrot.lane.b32.xlu0 %v94_v16, %s624_s13 }
  0x88   :  { %v227_v36 = vpop.permute.xlu1 %226  ;;  %v120_v41 = vpop.permute.xlu2 %119 }
  0x89   :  { %v240_v38 = vsel %vm238_vm2, %v227_v36, %v763_v25  ;;  %v225_v39 = vpop.permute.xlu0 %224 }
  0x8a   :  { %v239_v42 = vsel %vm238_vm2, %v225_v39, %v227_v36  ;;  %v345_v43 = vsel %vm266_vm1, %v219_v37, %v240_v38  ;;  %v847_v36 = vld [vmem:[%s976_s4] sm:$0xf]  ;;  %v625_v37 = vmov 0  }
  0x8b   :  { %v341_v44 = vsel %vm266_vm1, %v218_v40, %v239_v42  ;;  %409 = vmatpush.bf16.msra.mxu1 %v345_v43  ;;  %615 = vset.pattern.permute.xlu0 %v625_v37 }
  0x8c   :  { %396 = vmatpush.bf16.msra.mxu0 %v341_v44  ;;  %614 = vset.pattern.permute.xlu2 %v625_v37 }
  0x8d   :  { %616 = vset.pattern.permute.xlu1 %v625_v37 }
  0x8e   :  { %150 = vrot.lane.b32.xlu1 %v96_v22, %s623_s0  ;;  %152 = vrot.lane.b32.xlu2 %v97_v24, %s623_s0 }
  0x8f   :  { %131 = vrot.lane.b32.xlu0 %v596_v19, %s622_s12 }
  0x90   :  { %v164_v45 = vpop.permute.xlu1 %163  ;;  %v141_v47 = vpop.permute.xlu2 %140 }
  0x91   :  { %v162_v46 = vpop.permute.xlu0 %161  ;;  %v177_v49 = vsel %vm175_vm5, %v164_v45, %v769_v27 }
  0x92   :  { %v176_v52 = vsel %vm175_vm5, %v162_v46, %v164_v45 }
  0x96   :  { %110 = vrot.lane.b32.xlu1 %v97_v24, %s624_s13 }
  0x97   :  { %108 = vrot.lane.b32.xlu0 %v96_v22, %s624_s13 }
  0x98   :  { %v185_v48 = vpop.permute.xlu1 %184  ;;  %v210_v56 = vpop.permute.xlu2 %209 }
  0x99   :  { %v198_v50 = vsel %vm196_vm4, %v185_v48, %v774_v29  ;;  %v183_v51 = vpop.permute.xlu0 %182  ;;  %v220_v17 = vsel %vm217_vm3, %v756_v23, %v210_v56 }
  0x9a   :  { %v197_v53 = vsel %vm196_vm4, %v183_v51, %v185_v48  ;;  %v321_v54 = vsel %vm266_vm1, %v177_v49, %v198_v50 }
  0x9b   :  { %v317_v55 = vsel %vm266_vm1, %v176_v52, %v197_v53  ;;  %410 = vmatpush.bf16.msra.mxu1 %v321_v54 }
  0x9c   :  { %397 = vmatpush.bf16.msra.mxu0 %v317_v55 }
  0xa0   :  { %v254_v57 = vpop.permute.xlu1 %253  ;;  %v809_v63 = vpop.permute.xlu2 %232 }
  0xa1   :  { %v252_v58 = vpop.permute.xlu0 %251 }
  0xa2   :  { %v262_v59 = vsel %vm259_vm0, %v250_v26, %v252_v58  ;;  %v263_v60 = vsel %vm259_vm0, %v252_v58, %v254_v57 }
  0xa3   :  { %v381_v61 = vsel %vm266_vm1, %v262_v59, 0  ;;  %v384_v62 = vsel %vm266_vm1, %v263_v60, 0 }
  0xa4   :  { %421 = vmatpush.bf16.msra.mxu2 %v381_v61  ;;  %434 = vmatpush.bf16.msra.mxu3 %v384_v62 }
  0xa8   :  { %v811_v0 = vpop.permute.xlu1 %123  ;;  %v815_v4 = vpop.permute.xlu2 %102 }
  0xa9   :  { %v122_v1 = vpop.permute.xlu0 %121 }
  0xaa   :  { %v134_v8 = vsel %vm133_vm6, %v120_v41, %v122_v1  ;;  %v135_v9 = vsel %vm133_vm6, %v122_v1, %v811_v0 }
  0xb0   :  { %v813_v2 = vpop.permute.xlu1 %144  ;;  %v168_v28 = vpop.permute.xlu2 %167 }
  0xb1   :  { %v143_v3 = vpop.permute.xlu0 %142  ;;  %v178_v45 = vsel %vm175_vm5, %v769_v27, %v168_v28  ;;  %v364_v27 = vld [vmem:[%s977_s5] sm:$0xff]  ;;  %s626_s5 = smov 19  }
  0xb2   :  { %v155_v10 = vsel %vm154_vm7, %v141_v47, %v143_v3  ;;  %v156_v11 = vsel %vm154_vm7, %v143_v3, %v813_v2  ;;  %367 = vperm.xlu2 %614, %v364_v27  }
  0xb3   :  { %v293_v12 = vsel %vm266_vm1, %v134_v8, %v155_v10  ;;  %v297_v13 = vsel %vm266_vm1, %v135_v9, %v156_v11 }
  0xb4   :  { %398 = vmatpush.bf16.msra.mxu0 %v293_v12  ;;  %411 = vmatpush.bf16.msra.mxu1 %v297_v13 }
  0xb8   :  { %v231_v16 = vpop.permute.xlu1 %230  ;;  %v191_v38 = vpop.permute.xlu2 %190 }
  0xb9   :  { %v241_v18 = vsel %vm238_vm2, %v763_v25, %v231_v16  ;;  %v242_v19 = vsel %vm238_vm2, %v231_v16, %v809_v63  ;;  %v212_v21 = vpop.permute.xlu0 %211  ;;  %v477_v25 = vld [vmem:[%s975_s6] sm:$0xff] }
  0xba   :  { %v221_v22 = vsel %vm217_vm3, %v210_v56, %v212_v21  ;;  %v349_v24 = vsel %vm266_vm1, %v220_v17, %v241_v18  ;;  %v490_v34 = vsub.f32 1.0, %v477_v25  ;;  %480 = vperm.xlu1 %616, %v477_v25  }
  0xbb   :  { %422 = vmatpush.bf16.msra.mxu2 %v349_v24  ;;  %v353_v26 = vsel %vm266_vm1, %v221_v22, %v242_v19 }
  0xbc   :  { %435 = vmatpush.bf16.msra.mxu3 %v353_v26  ;;  %493 = vperm.xlu0 %615, %v490_v34  }
  0xc0   :  { %v101_v30 = vpop.permute.xlu1 %100  ;;  %v235_v43 = vpop.permute.xlu2 %234 }
  0xc1   :  { %v114_v23 = vsel %vm112_vm8, %v101_v30, %v815_v4  ;;  %v99_v31 = vpop.permute.xlu0 %98 }
  0xc2   :  { %v113_v32 = vsel %vm112_vm8, %v99_v31, %v101_v30  ;;  %v273_v33 = vsel %vm266_vm1, %v675_v6, %v114_v23 }
  0xc3   :  { %v269_v35 = vsel %vm266_vm1, %v677_v7, %v113_v32  ;;  %412 = vmatpush.bf16.msra.mxu1 %v273_v33 }
  0xc4   :  { %399 = vmatpush.bf16.msra.mxu0 %v269_v35 }
  0xc6   :  { %598 = vmatmul.msk.bf16.vlgmr.msra.gmra.mxu1 %vm370_vm9, %v847_v36 }
  0xc7   :  { %597 = vmatmul.msk.bf16.vlgmr.msra.gmra.mxu0 %vm370_vm9, %v847_v36 }
  0xc8   :  { %v258_v6 = vpop.permute.xlu1 %257  ;;  %v128_v54 = vpop.permute.xlu2 %127 }
  0xc9   :  { %v256_v7 = vpop.permute.xlu0 %255 }
  0xca   :  { %v264_v39 = vsel %vm259_vm0, %v254_v57, %v256_v7  ;;  %v265_v40 = vsel %vm259_vm0, %v256_v7, %v258_v6 }
  0xcb   :  { %v387_v41 = vsel %vm266_vm1, %v264_v39, 0  ;;  %v390_v42 = vsel %vm266_vm1, %v265_v40, 0 }
  0xcc   :  { %447 = vmatpush.bf16.msrb.mxu0 %v387_v41  ;;  %460 = vmatpush.bf16.msrb.mxu1 %v390_v42 }
  0xd0   :  { %v189_v44 = vpop.permute.xlu1 %188  ;;  %v172_v62 = vpop.permute.xlu2 %171 }
  0xd1   :  { %v199_v46 = vsel %vm196_vm4, %v774_v29, %v189_v44  ;;  %v200_v47 = vsel %vm196_vm4, %v189_v44, %v191_v38  ;;  %v170_v48 = vpop.permute.xlu0 %169  ;;  %v243_v29 = vsel %vm238_vm2, %v809_v63, %v235_v43 }
  0xd2   :  { %v179_v49 = vsel %vm175_vm5, %v168_v28, %v170_v48  ;;  %v325_v50 = vsel %vm266_vm1, %v178_v45, %v199_v46  ;;  %v180_v17 = vsel %vm175_vm5, %v170_v48, %v172_v62 }
  0xd3   :  { %423 = vmatpush.bf16.msra.mxu2 %v325_v50  ;;  %v329_v51 = vsel %vm266_vm1, %v179_v49, %v200_v47 }
  0xd4   :  { %436 = vmatpush.bf16.msra.mxu3 %v329_v51 }
  0xd8   :  { %v216_v52 = vpop.permute.xlu1 %215  ;;  %v195_v13 = vpop.permute.xlu2 %194 }
  0xd9   :  { %v214_v53 = vpop.permute.xlu0 %213 }
  0xda   :  { %v222_v55 = vsel %vm217_vm3, %v212_v21, %v214_v53  ;;  %v223_v59 = vsel %vm217_vm3, %v214_v53, %v216_v52 }
  0xdb   :  { %v357_v56 = vsel %vm266_vm1, %v222_v55, %v243_v29 }
  0xdc   :  { %448 = vmatpush.bf16.msrb.mxu0 %v357_v56 }
  0xe0   :  { %v126_v57 = vpop.permute.xlu1 %125  ;;  %v130_v24 = vpop.permute.xlu2 %129 }
  0xe1   :  { %v237_v58 = vpop.permute.xlu0 %236  ;;  %v136_v63 = vsel %vm133_vm6, %v811_v0, %v126_v57  ;;  %v137_v8 = vsel %vm133_vm6, %v126_v57, %v128_v54 }
  0xe2   :  { %v244_v60 = vsel %vm238_vm2, %v235_v43, %v237_v58 }
  0xe3   :  { %v361_v61 = vsel %vm266_vm1, %v223_v59, %v244_v60 }
  0xe4   :  { %461 = vmatpush.bf16.msrb.mxu1 %v361_v61 }
  0xe8   :  { %v149_v1 = vpop.permute.xlu1 %148  ;;  %v153_v32 = vpop.permute.xlu2 %152 }
  0xe9   :  { %v147_v3 = vpop.permute.xlu0 %146 }
  0xea   :  { %v157_v9 = vsel %vm154_vm7, %v813_v2, %v147_v3  ;;  %v158_v10 = vsel %vm154_vm7, %v147_v3, %v149_v1  ;;  %v470_v3 = vld [vmem:[%s978_s2] sm:$0xff] }
  0xeb   :  { %v301_v11 = vsel %vm266_vm1, %v136_v63, %v157_v9  ;;  %v305_v12 = vsel %vm266_vm1, %v137_v8, %v158_v10 }
  0xec   :  { %424 = vmatpush.bf16.msra.mxu2 %v301_v11  ;;  %437 = vmatpush.bf16.msra.mxu3 %v305_v12  ;;  %v471_v11 = vld [vmem:[%s978_s2 + $0x8] sm:$0xff] }
  0xf0   :  { %v193_v16 = vpop.permute.xlu1 %192 }
  0xf1   :  { %v201_v18 = vsel %vm196_vm4, %v191_v38, %v193_v16  ;;  %v202_v0 = vsel %vm196_vm4, %v193_v16, %v195_v13  ;;  %v174_v19 = vpop.permute.xlu0 %173 }
  0xf2   :  { %v181_v21 = vsel %vm175_vm5, %v172_v62, %v174_v19  ;;  %v333_v2 = vsel %vm266_vm1, %v180_v17, %v201_v18  ;;  %v473_v18 = vld [vmem:[%s978_s2 + $0x18] sm:$0xff]  ;;  %v474_v19 = vld [vmem:[%s978_s2 + $0x20] sm:$0xff] }
  0xf3   :  { %449 = vmatpush.bf16.msrb.mxu0 %v333_v2  ;;  %v337_v22 = vsel %vm266_vm1, %v181_v21, %v202_v0  ;;  %v475_v21 = vld [vmem:[%s978_s2 + $0x28] sm:$0xff] }
  0xf4   :  { %462 = vmatpush.bf16.msrb.mxu1 %v337_v22 }
  0xf8   :  { %v107_v26 = vpop.permute.xlu1 %106 }
  0xf9   :  { %v105_v28 = vpop.permute.xlu0 %104 }
  0xfa   :  { %v115_v30 = vsel %vm112_vm8, %v815_v4, %v105_v28  ;;  %v116_v23 = vsel %vm112_vm8, %v105_v28, %v107_v26  ;;  %v138_v4 = vsel %vm133_vm6, %v128_v54, %v130_v24 }
  0xfb   :  { %v277_v31 = vsel %vm266_vm1, %v673_v5, %v115_v30  ;;  %v281_v25 = vsel %vm266_vm1, %v711_v15, %v116_v23 }
  0xfc   :  { %425 = vmatpush.bf16.msra.mxu2 %v277_v31  ;;  %438 = vmatpush.bf16.msra.mxu3 %v281_v25 }
  0xff   :  { %600 = vmatmul.msk.bf16.vlgmr.msra.gmra.mxu3 %vm370_vm9, %v847_v36  ;;  %599 = vmatmul.msk.bf16.vlgmr.msra.gmra.mxu2 %vm370_vm9, %v847_v36 }
 0x100   :  { %v151_v33 = vpop.permute.xlu1 %150 }
 0x101   :  { %v159_v34 = vsel %vm154_vm7, %v149_v1, %v151_v33  ;;  %v160_v35 = vsel %vm154_vm7, %v151_v33, %v153_v32  ;;  %v132_v5 = vpop.permute.xlu0 %131  ;;  %v603_v33 = vld [vmem:[%s979_s3 + $0x30] sm:$0xff] }
 0x102   :  { %v139_v37 = vsel %vm133_vm6, %v130_v24, %v132_v5  ;;  %v309_v15 = vsel %vm266_vm1, %v138_v4, %v159_v34  ;;  %v472_v24 = vld [vmem:[%s978_s2 + $0x10] sm:$0xff] }
 0x103   :  { %450 = vmatpush.bf16.msrb.mxu0 %v309_v15  ;;  %v313_v38 = vsel %vm266_vm1, %v139_v37, %v160_v35 }
 0x104   :  { %463 = vmatpush.bf16.msrb.mxu1 %v313_v38 }
 0x108   :  { %v111_v6 = vpop.permute.xlu1 %110 }
 0x109   :  { %v109_v7 = vpop.permute.xlu0 %108 }
 0x10a   :  { %v117_v39 = vsel %vm112_vm8, %v107_v26, %v109_v7  ;;  %v118_v40 = vsel %vm112_vm8, %v109_v7, %v111_v6 }
 0x10b   :  { %v285_v41 = vsel %vm266_vm1, %v709_v14, %v117_v39  ;;  %v289_v42 = vsel %vm266_vm1, %v740_v20, %v118_v40 }
 0x10c   :  { %451 = vmatpush.bf16.msrb.mxu0 %v285_v41  ;;  %464 = vmatpush.bf16.msrb.mxu1 %v289_v42  ;;  %v368_v43 = vpop.permute.xlu2 %367 }
 0x10f   :  { %601 = vmatmul.msk.bf16.vlgmr.msrb.gmra.mxu0 %vm370_vm9, %v847_v36  ;;  %602 = vmatmul.msk.bf16.vlgmr.msrb.gmra.mxu1 %vm370_vm9, %v847_v36 }
 0x12c   :  { %v481_v63 = vpop.permute.xlu1 %480 }
 0x12d   :  { %v483_v8 = vmul.f32 %v481_v63, %v470_v3  ;;  %v484_v12 = vmul.f32 %v481_v63, %v471_v11  ;;  %v486_v0 = vmul.f32 %v481_v63, %v473_v18  ;;  %v487_v2 = vmul.f32 %v481_v63, %v474_v19 }
 0x12e   :  { %v494_v45 = vpop.permute.xlu0 %493  ;;  %v488_v22 = vmul.f32 %v481_v63, %v475_v21  ;;  %v485_v26 = vmul.f32 %v481_v63, %v472_v24  ;;  %v489_v4 = vmul.f32 %v603_v33, %v481_v63 }
 0x143   :  { %v414_v44 = vpop.f32.mrf.mxu1 }
 0x144   :  { %v415_v46 = vadd.f32 %v414_v44, %v368_v43  ;;  %v401_v47 = vpop.f32.mrf.mxu0 }
 0x145   :  { %v402_v48 = vadd.f32 %v401_v47, %v368_v43 }
 0x146   :  { %v497_v49 = vmul.f32 %v494_v45, %v415_v46 }
 0x147   :  { %v496_v50 = vmul.f32 %v494_v45, %v402_v48 }
 0x148   :  { %510 = vrot.lane.b32.xlu1 %v497_v49, %s626_s5 }
 0x149   :  { %508 = vrot.lane.b32.xlu2 %v496_v50, %s626_s5 }
 0x14b   :  { %v416_v14 = vpop.f32.mrf.mxu1 }
 0x14c   :  { %v403_v20 = vpop.f32.mrf.mxu0 }
 0x182   :  { %v440_v51 = vpop.f32.mrf.mxu3  ;;  %v427_v52 = vpop.f32.mrf.mxu2 }
 0x183   :  { %v441_v53 = vadd.f32 %v440_v51, %v368_v43  ;;  %v428_v27 = vadd.f32 %v427_v52, %v368_v43 }
 0x185   :  { %v499_v29 = vmul.f32 %v494_v45, %v441_v53  ;;  %v498_v54 = vmul.f32 %v494_v45, %v428_v27 }
 0x187   :  { %514 = vrot.lane.b32.xlu0 %v499_v29, %s626_s5  ;;  %512 = vrot.lane.b32.xlu2 %v498_v54, %s626_s5 }
 0x18a   :  { %v442_v36 = vpop.f32.mrf.mxu3  ;;  %v429_v55 = vpop.f32.mrf.mxu2 }
 0x18c   :  { %v453_v56 = vpop.f32.mrf.mxu0  ;;  %v466_v57 = vpop.f32.mrf.mxu1 }
 0x18d   :  { %v454_v58 = vadd.f32 %v453_v56, %v368_v43  ;;  %v467_v59 = vadd.f32 %v466_v57, %v368_v43 }
 0x18f   :  { %v500_v60 = vmul.f32 %v494_v45, %v454_v58  ;;  %v501_v61 = vmul.f32 %v494_v45, %v467_v59 }
 0x191   :  { %516 = vrot.lane.b32.xlu1 %v500_v60, %s626_s5  ;;  %518 = vrot.lane.b32.xlu2 %v501_v61, %s626_s5 }
 0x194   :  { %v455_v62 = vpop.f32.mrf.mxu0  ;;  %v468_v1 = vpop.f32.mrf.mxu1 }
 0x1a3   :  { %v509_v9 = vpop.permute.xlu2 %508 }
 0x1a4   :  { %v533_v10 = vadd.f32 %v509_v9, %v483_v8 }
 0x1a6   :  { %547 = vrot.lane.b32.xlu0 %v533_v10, %s620_s8 }
 0x1ba   :  { %v511_v13 = vpop.permute.xlu1 %510 }
 0x1bb   :  { %v521_v16 = vsel %vm520_vm10, %v509_v9, %v511_v13 }
 0x1bc   :  { %v534_v17 = vadd.f32 %v521_v16, %v484_v12 }
 0x1be   :  { %549 = vrot.lane.b32.xlu1 %v534_v17, %s620_s8 }
 0x1e1   :  { %v513_v28 = vpop.permute.xlu2 %512 }
 0x1e2   :  { %v522_v30 = vsel %vm520_vm10, %v511_v13, %v513_v28 }
 0x1e3   :  { %v535_v23 = vadd.f32 %v522_v30, %v485_v26 }
 0x1e5   :  { %551 = vrot.lane.b32.xlu2 %v535_v23, %s620_s8 }
 0x1eb   :  { %v519_v34 = vpop.permute.xlu2 %518 }
 0x1ec   :  { %v539_v35 = vadd.f32 %v519_v34, %v489_v4 }
 0x1f9   :  { %v515_v31 = vpop.permute.xlu0 %514 }
 0x1fa   :  { %v523_v25 = vsel %vm520_vm10, %v513_v28, %v515_v31 }
 0x1fb   :  { %v536_v32 = vadd.f32 %v523_v25, %v486_v0 }
 0x1fd   :  { %553 = vrot.lane.b32.xlu0 %v536_v32, %s620_s8 }
 0x203   :  { %v517_v5 = vpop.permute.xlu1 %516 }
 0x204   :  { %v524_v37 = vsel %vm520_vm10, %v515_v31, %v517_v5  ;;  %v525_v15 = vsel %vm520_vm10, %v517_v5, %v519_v34 }
 0x205   :  { %v537_v38 = vadd.f32 %v524_v37, %v487_v2  ;;  %v538_v6 = vadd.f32 %v525_v15, %v488_v22  ;;  %559 = vrot.lane.b32.xlu0 %v539_v35, %s620_s8 }
 0x207   :  { %555 = vrot.lane.b32.xlu1 %v537_v38, %s620_s8  ;;  %557 = vrot.lane.b32.xlu2 %v538_v6, %s620_s8 }
 0x218   :  { %v548_v7 = vpop.permute.xlu0 %547 }
 0x230   :  { %v550_v39 = vpop.permute.xlu1 %549 }
 0x231   :  { %v562_v40 = vsel %vm175_vm5, %v548_v7, %v550_v39 }
 0x232   :  { %574 = vst [vmem:[%s980_s7] sm:$0xff] %v562_v40 }
 0x23f   :  { %v552_v41 = vpop.permute.xlu2 %551 }
 0x240   :  { %v563_v42 = vsel %vm175_vm5, %v550_v39, %v552_v41 }
 0x241   :  { %575 = vst [vmem:[%s980_s7 + $0x8] sm:$0xff] %v563_v42 }
 0x261   :  { %v558_v45 = vpop.permute.xlu2 %557 }
 0x26f   :  { %v554_v43 = vpop.permute.xlu0 %553 }
 0x270   :  { %v564_v44 = vsel %vm175_vm5, %v552_v41, %v554_v43 }
 0x271   :  { %576 = vst [vmem:[%s980_s7 + $0x10] sm:$0xff] %v564_v44 }
 0x277   :  { %v560_v46 = vpop.permute.xlu0 %559 }
 0x278   :  { %v567_v47 = vsel %vm175_vm5, %v558_v45, %v560_v46 }
 0x279   :  { %579 = vst [vmem:[%s980_s7 + $0x28] sm:$0xff] %v567_v47  ;;  %v556_v48 = vpop.permute.xlu1 %555 }
 0x27a   :  { %v565_v49 = vsel %vm175_vm5, %v554_v43, %v556_v48  ;;  %v566_v50 = vsel %vm175_vm5, %v556_v48, %v558_v45 }
 0x27b   :  { %577 = vst [vmem:[%s980_s7 + $0x18] sm:$0xff] %v565_v49 }
 0x27c   :  { %578 = vst [vmem:[%s980_s7 + $0x20] sm:$0xff] %v566_v50 }

// kernel: expandmani_ae_spatial_interpolate_forward.6
= control target key start
LH: loop header
LB: loop body
LE: loop exit
PB: predicated region body
PF: predicated region fallthrough
CT: control target
= control target key end

     0   :  { %s847_s21 = smov 127   ;;  %s849_s29 = smov 92   ;;  %vm112_vm0 = vcmask 1039360   ;;  %vm148_vm1 = vcmask 1031168   ;;  %vm364_vm2 = vcmask 736256   ;;  %vm376_vm3 = vcmask 1043456   ;;  %s1548_s0 = inlined_call_operand.vmem [shape: bf16[8,1536], index: 0, kind: input, shape index: {}, may-alias: {0,1}]   ;;  %s1549_s1 = inlined_call_operand.vmem [shape: bf16[8,1536], index: 1, kind: input, shape index: {}, may-alias: {0,1}]   ;;  %s1550_s2 = inlined_call_operand.vmem [shape: bf16[16,72], index: 2, kind: input, shape index: {}]   ;;  %s1551_s3 = inlined_call_operand.vmem [shape: f32[16,1], index: 3, kind: input, shape index: {}]   ;;  %s1552_s4 = inlined_call_operand.vmem [shape: bf16[16,1408], index: 4, kind: output, shape index: {}]  }
   0x1   :  { %v42_v0 = vld [vmem:[%s1548_s0 + $0x10] sm:$0xff]  ;;  %v41_v1 = vld [vmem:[%s1548_s0 + $0x8] sm:$0xff]  ;;  %v40_v2 = vld [vmem:[%s1548_s0] sm:$0xff]  ;;  %s850_s30 = smov 90   ;;  %s851_s5 = smov 91   ;;  %vm328_vm4 = vcmask 744448  }
   0x2   :  { %v57_v3 = vunpack.c.l.b16 %v42_v0  ;;  %v55_v4 = vunpack.c.l.b16 %v41_v1  ;;  %v53_v5 = vunpack.c.l.b16 %v40_v2  ;;  %v58_v6 = vunpack.c.h.b16 %v42_v0  ;;  %v44_v18 = vld [vmem:[%s1548_s0 + $0x20] sm:$0xff]  ;;  %v43_v19 = vld [vmem:[%s1548_s0 + $0x18] sm:$0xff]  ;;  %v45_v29 = vld [vmem:[%s1548_s0 + $0x28] sm:$0xf]  ;;  %s852_s6 = smov 109   ;;  %s853_s7 = smov 108  }
   0x3   :  { %v56_v10 = vunpack.c.h.b16 %v41_v1  ;;  %v54_v11 = vunpack.c.h.b16 %v40_v2  ;;  %v61_v22 = vunpack.c.l.b16 %v44_v18  ;;  %v60_v23 = vunpack.c.h.b16 %v43_v19  ;;  %v964_v36 = vld [vmem:[%s1549_s1 + $0x2c] sm:$0xf]  ;;  %s848_s1 = smov 126   ;;  %s854_s8 = smov 110  }
   0x4   :  { %v890_v7 = vpack.c.b16 %v57_v3, %v57_v3  ;;  %v892_v8 = vpack.c.b16 %v55_v4, %v55_v4  ;;  %v894_v9 = vpack.c.b16 %v53_v5, %v53_v5  ;;  %v909_v15 = vpack.c.b16 %v58_v6, %v58_v6 }
   0x5   :  { %v911_v16 = vpack.c.b16 %v56_v10, %v56_v10  ;;  %v915_v17 = vpack.c.b16 %v54_v11, %v54_v11  ;;  %v59_v25 = vunpack.c.l.b16 %v43_v19  ;;  %v933_v26 = vpack.c.b16 %v61_v22, %v61_v22 }
   0x6   :  { %v897_v12 = vrot.slane %v890_v7, 4  ;;  %v900_v13 = vrot.slane %v892_v8, 4  ;;  %v903_v14 = vrot.slane %v894_v9, 4  ;;  %v924_v20 = vrot.slane %v909_v15, 4 }
   0x7   :  { %v79_v21 = vrot.slane %v911_v16, 4  ;;  %v928_v24 = vrot.slane %v915_v17, 4  ;;  %v935_v27 = vpack.c.b16 %v60_v23, %v60_v23  ;;  %v939_v28 = vpack.c.b16 %v59_v25, %v59_v25 }
   0x8   :  { %96 = vrot.lane.b32.xlu2 %v897_v12, %s847_s21  ;;  %92 = vrot.lane.b32.xlu1 %v900_v13, %s847_s21  ;;  %v945_v30 = vrot.slane %v933_v26, 4  ;;  %v63_v32 = vunpack.c.l.b16 %v45_v29  ;;  %v62_v34 = vunpack.c.h.b16 %v44_v18  ;;  %v969_v38 = vrot.slane %v964_v36, 4 }
   0x9   :  { %88 = vrot.lane.b32.xlu0 %v903_v14, %s847_s21  ;;  %v948_v31 = vrot.slane %v935_v27, 4  ;;  %v951_v33 = vrot.slane %v939_v28, 4  ;;  %vm292_vm5 = vcmask 752640   ;;  %vm256_vm6 = vcmask 883712  }
   0xa   :  { %v957_v35 = vpack.c.b16 %v63_v32, %v63_v32  ;;  %v966_v37 = vpack.c.b16 %v62_v34, %v62_v34  ;;  %vm220_vm7 = vcmask 891904   ;;  %vm184_vm8 = vcmask 900096  }
   0xb   :  { %vm572_vm9 = vcmask 588800  }
   0xc   :  { %v972_v39 = vrot.slane %v957_v35, 4  ;;  %v975_v40 = vrot.slane %v966_v37, 4 }
  0x10   :  { %98 = vrot.lane.b32.xlu2 %v924_v20, %s847_s21  ;;  %94 = vrot.lane.b32.xlu1 %v79_v21, %s847_s21 }
  0x11   :  { %90 = vrot.lane.b32.xlu0 %v928_v24, %s847_s21 }
  0x18   :  { %104 = vrot.lane.b32.xlu2 %v945_v30, %s847_s21  ;;  %102 = vrot.lane.b32.xlu1 %v948_v31, %s847_s21 }
  0x19   :  { %100 = vrot.lane.b32.xlu0 %v951_v33, %s847_s21 }
  0x20   :  { %110 = vrot.lane.b32.xlu2 %v969_v38, %s847_s21  ;;  %108 = vrot.lane.b32.xlu1 %v972_v39, %s847_s21 }
  0x21   :  { %106 = vrot.lane.b32.xlu0 %v975_v40, %s847_s21 }
  0x28   :  { %128 = vrot.lane.b32.xlu2 %v892_v8, %s848_s1  ;;  %126 = vrot.lane.b32.xlu1 %v915_v17, %s848_s1 }
  0x29   :  { %124 = vrot.lane.b32.xlu0 %v894_v9, %s848_s1 }
  0x30   :  { %134 = vrot.lane.b32.xlu2 %v909_v15, %s848_s1  ;;  %132 = vrot.lane.b32.xlu1 %v890_v7, %s848_s1 }
  0x31   :  { %130 = vrot.lane.b32.xlu0 %v911_v16, %s848_s1 }
  0x38   :  { %140 = vrot.lane.b32.xlu2 %v933_v26, %s848_s1  ;;  %138 = vrot.lane.b32.xlu1 %v935_v27, %s848_s1 }
  0x39   :  { %136 = vrot.lane.b32.xlu0 %v939_v28, %s848_s1 }
  0x40   :  { %272 = vrot.lane.b32.xlu2 %v892_v8, %s849_s29  ;;  %346 = vrot.lane.b32.xlu1 %v911_v16, %s850_s30 }
  0x41   :  { %344 = vrot.lane.b32.xlu0 %v892_v8, %s850_s30 }
  0x48   :  { %310 = vrot.lane.b32.xlu2 %v79_v21, %s851_s5  ;;  %308 = vrot.lane.b32.xlu1 %v900_v13, %s851_s5 }
  0x49   :  { %274 = vrot.lane.b32.xlu0 %v911_v16, %s849_s29 }
  0x50   :  { %200 = vrot.lane.b32.xlu2 %v892_v8, %s852_s6  ;;  %342 = vrot.lane.b32.xlu1 %v915_v17, %s850_s30 }
  0x51   :  { %340 = vrot.lane.b32.xlu0 %v894_v9, %s850_s30 }
  0x58   :  { %238 = vrot.lane.b32.xlu2 %v79_v21, %s853_s7  ;;  %236 = vrot.lane.b32.xlu1 %v900_v13, %s853_s7 }
  0x59   :  { %202 = vrot.lane.b32.xlu0 %v911_v16, %s852_s6 }
  0x60   :  { %270 = vrot.lane.b32.xlu1 %v915_v17, %s849_s29  ;;  %304 = vrot.lane.b32.xlu2 %v903_v14, %s851_s5 }
  0x61   :  { %268 = vrot.lane.b32.xlu0 %v894_v9, %s849_s29 }
  0x62   :  { %v97_v41 = vpop.permute.xlu2 %96 }
  0x68   :  { %164 = vrot.lane.b32.xlu1 %v900_v13, %s854_s8  ;;  %166 = vrot.lane.b32.xlu2 %v79_v21, %s854_s8 }
  0x69   :  { %306 = vrot.lane.b32.xlu0 %v928_v24, %s851_s5 }
  0x6a   :  { %v99_v42 = vpop.permute.xlu2 %98 }
  0x6b   :  { %v1035_v43 = vsel %vm112_vm0, %v97_v41, %v99_v42 }
  0x70   :  { %198 = vrot.lane.b32.xlu1 %v915_v17, %s852_s6  ;;  %232 = vrot.lane.b32.xlu2 %v903_v14, %s853_s7 }
  0x71   :  { %196 = vrot.lane.b32.xlu0 %v894_v9, %s852_s6 }
  0x72   :  { %v105_v44 = vpop.permute.xlu2 %104 }
  0x78   :  { %348 = vrot.lane.b32.xlu1 %v890_v7, %s850_s30  ;;  %352 = vrot.lane.b32.xlu2 %v939_v28, %s850_s30 }
  0x79   :  { %234 = vrot.lane.b32.xlu0 %v928_v24, %s853_s7 }
  0x7a   :  { %v111_v45 = vpop.permute.xlu2 %110  ;;  %v93_v46 = vpop.permute.xlu1 %92 }
  0x7b   :  { %v89_v47 = vpop.permute.xlu0 %88 }
  0x80   :  { %160 = vrot.lane.b32.xlu1 %v903_v14, %s854_s8  ;;  %162 = vrot.lane.b32.xlu2 %v928_v24, %s854_s8 }
  0x81   :  { %354 = vrot.lane.b32.xlu0 %v935_v27, %s850_s30 }
  0x82   :  { %v1055_v48 = vpop.permute.xlu2 %128  ;;  %v95_v49 = vpop.permute.xlu1 %94 }
  0x83   :  { %v1058_v50 = vsel %vm112_vm0, %v93_v46, %v95_v49  ;;  %v1061_v51 = vsel %vm112_vm0, %v95_v49, %v97_v41  ;;  %v91_v52 = vpop.permute.xlu0 %90 }
  0x84   :  { %v1064_v53 = vsel %vm112_vm0, %v89_v47, %v91_v52  ;;  %v1067_v54 = vsel %vm112_vm0, %v91_v52, %v93_v46 }
  0x88   :  { %280 = vrot.lane.b32.xlu1 %v939_v28, %s849_s29  ;;  %282 = vrot.lane.b32.xlu2 %v935_v27, %s849_s29 }
  0x89   :  { %276 = vrot.lane.b32.xlu0 %v890_v7, %s849_s29 }
  0x8a   :  { %v135_v55 = vpop.permute.xlu2 %134  ;;  %v103_v56 = vpop.permute.xlu1 %102 }
  0x8b   :  { %v1076_v57 = vsel %vm112_vm0, %v103_v56, %v105_v44  ;;  %v101_v58 = vpop.permute.xlu0 %100 }
  0x8c   :  { %v1079_v59 = vsel %vm112_vm0, %v99_v42, %v101_v58  ;;  %v1082_v60 = vsel %vm112_vm0, %v101_v58, %v103_v56 }
  0x90   :  { %316 = vrot.lane.b32.xlu1 %v951_v33, %s851_s5  ;;  %318 = vrot.lane.b32.xlu2 %v948_v31, %s851_s5 }
  0x91   :  { %312 = vrot.lane.b32.xlu0 %v897_v12, %s851_s5 }
  0x92   :  { %v1090_v61 = vpop.permute.xlu2 %140  ;;  %v109_v62 = vpop.permute.xlu1 %108 }
  0x93   :  { %v1093_v63 = vsel %vm112_vm0, %v109_v62, %v111_v45  ;;  %v107_v0 = vpop.permute.xlu0 %106 }
  0x94   :  { %v1096_v1 = vsel %vm112_vm0, %v105_v44, %v107_v0  ;;  %v1099_v2 = vsel %vm112_vm0, %v107_v0, %v109_v62 }
  0x98   :  { %204 = vrot.lane.b32.xlu1 %v890_v7, %s852_s6  ;;  %208 = vrot.lane.b32.xlu2 %v939_v28, %s852_s6 }
  0x99   :  { %350 = vrot.lane.b32.xlu0 %v909_v15, %s850_s30 }
  0x9a   :  { %v1107_v3 = vpop.permute.xlu2 %272  ;;  %v127_v4 = vpop.permute.xlu1 %126 }
  0x9b   :  { %v1111_v5 = vsel %vm148_vm1, %v127_v4, %v1055_v48  ;;  %v125_v6 = vpop.permute.xlu0 %124 }
  0x9c   :  { %v1114_v10 = vsel %vm148_vm1, %v125_v6, %v127_v4 }
  0xa0   :  { %240 = vrot.lane.b32.xlu1 %v897_v12, %s853_s7  ;;  %244 = vrot.lane.b32.xlu2 %v951_v33, %s853_s7 }
  0xa1   :  { %210 = vrot.lane.b32.xlu0 %v935_v27, %s852_s6 }
  0xa2   :  { %v1122_v11 = vpop.permute.xlu2 %310  ;;  %v133_v13 = vpop.permute.xlu1 %132 }
  0xa3   :  { %v1125_v14 = vsel %vm148_vm1, %v133_v13, %v135_v55  ;;  %v1127_v18 = vpop.permute.xlu0 %130 }
  0xa4   :  { %v1131_v19 = vsel %vm148_vm1, %v1127_v18, %v133_v13 }
  0xa8   :  { %278 = vrot.lane.b32.xlu1 %v909_v15, %s849_s29  ;;  %314 = vrot.lane.b32.xlu2 %v924_v20, %s851_s5 }
  0xa9   :  { %246 = vrot.lane.b32.xlu0 %v948_v31, %s853_s7 }
  0xaa   :  { %v1139_v21 = vpop.permute.xlu2 %200  ;;  %v1141_v22 = vpop.permute.xlu1 %138 }
  0xab   :  { %v137_v23 = vpop.permute.xlu0 %136 }
  0xac   :  { %v1144_v24 = vsel %vm148_vm1, %v135_v55, %v137_v23  ;;  %v1148_v25 = vsel %vm148_vm1, %v137_v23, %v1141_v22 }
  0xb0   :  { %172 = vrot.lane.b32.xlu1 %v951_v33, %s854_s8  ;;  %174 = vrot.lane.b32.xlu2 %v948_v31, %s854_s8 }
  0xb1   :  { %168 = vrot.lane.b32.xlu0 %v897_v12, %s854_s8 }
  0xb2   :  { %v1156_v29 = vpop.permute.xlu2 %238  ;;  %v1158_v32 = vpop.permute.xlu1 %346 }
  0xb3   :  { %v345_v34 = vpop.permute.xlu0 %344 }
  0xb4   :  { %v367_v41 = vsel %vm364_vm2, %v345_v34, %v1158_v32 }
  0xb5   :  { %v583_v42 = vsel %vm376_vm3, %v367_v41, 0 }
  0xb6   :  { %640 = vmatpush.bf16.msra.mxu2 %v583_v42 }
  0xb8   :  { %242 = vrot.lane.b32.xlu1 %v924_v20, %s853_s7  ;;  %356 = vrot.lane.b32.xlu2 %v933_v26, %s850_s30 }
  0xb9   :  { %206 = vrot.lane.b32.xlu0 %v909_v15, %s852_s6 }
  0xba   :  { %v309_v12 = vpop.permute.xlu1 %308  ;;  %v305_v31 = vpop.permute.xlu2 %304 }
  0xbb   :  { %v331_v33 = vsel %vm328_vm4, %v309_v12, %v1122_v11  ;;  %v1171_v44 = vpop.permute.xlu0 %274 }
  0xbc   :  { %v295_v45 = vsel %vm292_vm5, %v1107_v3, %v1171_v44 }
  0xbd   :  { %v519_v46 = vsel %vm376_vm3, %v295_v45, %v331_v33 }
  0xbe   :  { %641 = vmatpush.bf16.msra.mxu2 %v519_v46  ;;  %v151_v46 = vsel %vm148_vm1, %v1055_v48, %v1127_v18  ;;  %v387_v48 = vsel %vm376_vm3, %v892_v8, %v1058_v50 }
  0xc0   :  { %362 = vrot.lane.b32.xlu1 %v964_v36, %s850_s30  ;;  %170 = vrot.lane.b32.xlu2 %v924_v20, %s854_s8 }
  0xc1   :  { %360 = vrot.lane.b32.xlu0 %v957_v35, %s850_s30 }
  0xc2   :  { %v343_v47 = vpop.permute.xlu1 %342  ;;  %v1183_v49 = vpop.permute.xlu2 %166 }
  0xc3   :  { %v341_v52 = vpop.permute.xlu0 %340  ;;  %v366_v55 = vsel %vm364_vm2, %v343_v47, %v345_v34 }
  0xc4   :  { %v365_v56 = vsel %vm364_vm2, %v341_v52, %v343_v47  ;;  %v580_v58 = vsel %vm376_vm3, %v366_v55, 0 }
  0xc5   :  { %v577_v62 = vsel %vm376_vm3, %v365_v56, 0  ;;  %626 = vmatpush.bf16.msra.mxu1 %v580_v58 }
  0xc6   :  { %612 = vmatpush.bf16.msra.mxu0 %v577_v62 }
  0xc8   :  { %288 = vrot.lane.b32.xlu1 %v957_v35, %s849_s29  ;;  %290 = vrot.lane.b32.xlu2 %v964_v36, %s849_s29 }
  0xc9   :  { %284 = vrot.lane.b32.xlu0 %v933_v26, %s849_s29 }
  0xca   :  { %v237_v20 = vpop.permute.xlu1 %236  ;;  %v233_v0 = vpop.permute.xlu2 %232 }
  0xcb   :  { %v259_v4 = vsel %vm256_vm6, %v237_v20, %v1156_v29  ;;  %v1197_v6 = vpop.permute.xlu0 %202 }
  0xcc   :  { %v223_v13 = vsel %vm220_vm7, %v1139_v21, %v1197_v6 }
  0xcd   :  { %v475_v23 = vsel %vm376_vm3, %v223_v13, %v259_v4 }
  0xce   :  { %642 = vmatpush.bf16.msra.mxu2 %v475_v23 }
  0xd0   :  { %324 = vrot.lane.b32.xlu1 %v972_v39, %s851_s5  ;;  %326 = vrot.lane.b32.xlu2 %v969_v38, %s851_s5 }
  0xd1   :  { %320 = vrot.lane.b32.xlu0 %v945_v30, %s851_s5 }
  0xd2   :  { %v271_v34 = vpop.permute.xlu1 %270  ;;  %v1209_v41 = vpop.permute.xlu2 %352 }
  0xd3   :  { %v269_v42 = vpop.permute.xlu0 %268  ;;  %v294_v47 = vsel %vm292_vm5, %v271_v34, %v1107_v3 }
  0xd4   :  { %v293_v56 = vsel %vm292_vm5, %v269_v42, %v271_v34 }
  0xd8   :  { %212 = vrot.lane.b32.xlu1 %v933_v26, %s852_s6  ;;  %216 = vrot.lane.b32.xlu2 %v957_v35, %s852_s6 }
  0xd9   :  { %358 = vrot.lane.b32.xlu0 %v966_v37, %s850_s30 }
  0xda   :  { %v165_v33 = vpop.permute.xlu1 %164  ;;  %v163_v45 = vpop.permute.xlu2 %162 }
  0xdb   :  { %v187_v52 = vsel %vm184_vm8, %v165_v33, %v1183_v49  ;;  %v307_v55 = vpop.permute.xlu0 %306 }
  0xdc   :  { %v329_v58 = vsel %vm328_vm4, %v305_v31, %v307_v55  ;;  %v330_v62 = vsel %vm328_vm4, %v307_v55, %v309_v12  ;;  %v431_v4 = vsel %vm376_vm3, %v151_v46, %v187_v52 }
  0xdd   :  { %v511_v13 = vsel %vm376_vm3, %v293_v56, %v329_v58  ;;  %v515_v23 = vsel %vm376_vm3, %v294_v47, %v330_v62  ;;  %643 = vmatpush.bf16.msra.mxu2 %v431_v4  ;;  %v186_v62 = vsel %vm184_vm8, %v163_v45, %v165_v33 }
  0xde   :  { %613 = vmatpush.bf16.msra.mxu0 %v511_v13  ;;  %627 = vmatpush.bf16.msra.mxu1 %v515_v23 }
  0xe0   :  { %248 = vrot.lane.b32.xlu1 %v945_v30, %s853_s7  ;;  %252 = vrot.lane.b32.xlu2 %v972_v39, %s853_s7 }
  0xe1   :  { %218 = vrot.lane.b32.xlu0 %v964_v36, %s852_s6  ;;  %644 = vmatpush.bf16.msra.mxu2 %v387_v48 }
  0xe2   :  { %v199_v3 = vpop.permute.xlu1 %198  ;;  %v1239_v18 = vpop.permute.xlu2 %282 }
  0xe3   :  { %v197_v12 = vpop.permute.xlu0 %196  ;;  %v222_v8 = vsel %vm220_vm7, %v199_v3, %v1139_v21  ;;  %v427_v21 = vsel %vm376_vm3, %v1111_v5, %v186_v62  ;;  %v383_v5 = vsel %vm376_vm3, %v915_v17, %v1067_v54 }
  0xe4   :  { %v221_v46 = vsel %vm220_vm7, %v197_v12, %v199_v3 }
  0xe8   :  { %286 = vrot.lane.b32.xlu1 %v966_v37, %s849_s29  ;;  %322 = vrot.lane.b32.xlu2 %v975_v40, %s851_s5 }
  0xe9   :  { %254 = vrot.lane.b32.xlu0 %v969_v38, %s853_s7 }
  0xea   :  { %v349_v31 = vpop.permute.xlu1 %348  ;;  %v1247_v34 = vpop.permute.xlu2 %318 }
  0xeb   :  { %v235_v50 = vpop.permute.xlu0 %234  ;;  %v368_v42 = vsel %vm364_vm2, %v1158_v32, %v349_v31 }
  0xec   :  { %v257_v47 = vsel %vm256_vm6, %v233_v0, %v235_v50  ;;  %v258_v52 = vsel %vm256_vm6, %v235_v50, %v237_v20  ;;  %v586_v55 = vsel %vm376_vm3, %v368_v42, 0 }
  0xed   :  { %v467_v56 = vsel %vm376_vm3, %v221_v46, %v257_v47  ;;  %v471_v58 = vsel %vm376_vm3, %v222_v8, %v258_v52  ;;  %654 = vmatpush.bf16.msra.mxu3 %v586_v55 }
  0xee   :  { %614 = vmatpush.bf16.msra.mxu0 %v467_v56  ;;  %628 = vmatpush.bf16.msra.mxu1 %v471_v58 }
  0xf0   :  { %146 = vrot.lane.b32.xlu1 %v964_v36, %s848_s1  ;;  %176 = vrot.lane.b32.xlu2 %v945_v30, %s854_s8 }
  0xf1   :  { %144 = vrot.lane.b32.xlu0 %v957_v35, %s848_s1 }
  0xf2   :  { %629 = vmatpush.bf16.msra.mxu1 %v427_v21  ;;  %v161_v32 = vpop.permute.xlu1 %160  ;;  %v1268_v20 = vpop.permute.xlu2 %208 }
  0xf3   :  { %v185_v0 = vsel %vm184_vm8, %v161_v32, %v163_v45  ;;  %v1271_v33 = vpop.permute.xlu0 %354 }
  0xf4   :  { %v423_v36 = vsel %vm376_vm3, %v1114_v10, %v185_v0  ;;  %v371_v30 = vsel %vm364_vm2, %v1209_v41, %v1271_v33  ;;  %v379_v10 = vsel %vm376_vm3, %v894_v9, %v1064_v53 }
  0xf5   :  { %615 = vmatpush.bf16.msra.mxu0 %v423_v36  ;;  %v595_v4 = vsel %vm376_vm3, %v371_v30, 0 }
  0xf6   :  { %630 = vmatpush.bf16.msra.mxu1 %v383_v5  ;;  %696 = vmatpush.bf16.msrb.mxu2 %v595_v4 }
  0xf8   :  { %182 = vrot.lane.b32.xlu1 %v969_v38, %s854_s8  ;;  %214 = vrot.lane.b32.xlu2 %v966_v37, %s852_s6 }
  0xf9   :  { %180 = vrot.lane.b32.xlu0 %v972_v39, %s854_s8  ;;  %616 = vmatpush.bf16.msra.mxu0 %v379_v10 }
  0xfa   :  { %v281_v45 = vpop.permute.xlu1 %280  ;;  %v1291_v17 = vpop.permute.xlu2 %244 }
  0xfb   :  { %v277_v54 = vpop.permute.xlu0 %276  ;;  %v299_v9 = vsel %vm292_vm5, %v281_v45, %v1239_v18 }
  0xfc   :  { %v296_v23 = vsel %vm292_vm5, %v1171_v44, %v277_v54 }
 0x100   :  { %142 = vrot.lane.b32.xlu1 %v966_v37, %s848_s1  ;;  %178 = vrot.lane.b32.xlu2 %v975_v40, %s854_s8 }
 0x101   :  { %250 = vrot.lane.b32.xlu0 %v975_v40, %s853_s7 }
 0x102   :  { %v317_v38 = vpop.permute.xlu1 %316  ;;  %v315_v13 = vpop.permute.xlu2 %314 }
 0x103   :  { %v335_v39 = vsel %vm328_vm4, %v317_v38, %v1247_v34  ;;  %v313_v53 = vpop.permute.xlu0 %312  ;;  %v334_v62 = vsel %vm328_vm4, %v315_v13, %v317_v38 }
 0x104   :  { %v332_v48 = vsel %vm328_vm4, %v1122_v11, %v313_v53  ;;  %v535_v3 = vsel %vm376_vm3, %v299_v9, %v335_v39  ;;  %v333_v21 = vsel %vm328_vm4, %v313_v53, %v315_v13 }
 0x105   :  { %v523_v12 = vsel %vm376_vm3, %v296_v23, %v332_v48  ;;  %697 = vmatpush.bf16.msrb.mxu2 %v535_v3  ;;  %v403_v3 = vsel %vm376_vm3, %v939_v28, %v1082_v60 }
 0x106   :  { %655 = vmatpush.bf16.msra.mxu3 %v523_v12 }
 0x10a   :  { %v205_v40 = vpop.permute.xlu1 %204  ;;  %v1309_v8 = vpop.permute.xlu2 %174 }
 0x10b   :  { %v351_v50 = vpop.permute.xlu0 %350  ;;  %v224_v55 = vsel %vm220_vm7, %v1197_v6, %v205_v40 }
 0x10c   :  { %v369_v42 = vsel %vm364_vm2, %v349_v31, %v351_v50  ;;  %v370_v46 = vsel %vm364_vm2, %v351_v50, %v1209_v41  ;;  %v1328_v41 = vld [vmem:[%s1550_s2] sm:$0xff] }
 0x10d   :  { %v589_v44 = vsel %vm376_vm3, %v369_v42, 0  ;;  %v592_v47 = vsel %vm376_vm3, %v370_v46, 0  ;;  %826 = vmatmul.msk.bf16.vlgmr.msra.gmra.mxu2 %vm572_vm9, %v1328_v41  ;;  %824 = vmatmul.msk.bf16.vlgmr.msra.gmra.mxu0 %vm572_vm9, %v1328_v41 }
 0x10e   :  { %668 = vmatpush.bf16.msrb.mxu0 %v589_v44  ;;  %682 = vmatpush.bf16.msrb.mxu1 %v592_v47 }
 0x10f   :  { %825 = vmatmul.msk.bf16.vlgmr.msra.gmra.mxu1 %vm572_vm9, %v1328_v41 }
 0x112   :  { %v241_v11 = vpop.permute.xlu1 %240  ;;  %v1316_v52 = vpop.permute.xlu2 %356 }
 0x113   :  { %v260_v56 = vsel %vm256_vm6, %v1156_v29, %v241_v11  ;;  %v1322_v58 = vpop.permute.xlu0 %210  ;;  %v372_v48 = vsel %vm364_vm2, %v1271_v33, %v1316_v52 }
 0x114   :  { %v479_v31 = vsel %vm376_vm3, %v224_v55, %v260_v56  ;;  %v227_v30 = vsel %vm220_vm7, %v1268_v20, %v1322_v58 }
 0x115   :  { %656 = vmatpush.bf16.msra.mxu3 %v479_v31  ;;  %v395_v31 = vsel %vm376_vm3, %v890_v7, %v1035_v43 }
 0x11a   :  { %v279_v29 = vpop.permute.xlu1 %278  ;;  %v171_v6 = vpop.permute.xlu2 %170 }
 0x11b   :  { %v297_v32 = vsel %vm292_vm5, %v277_v54, %v279_v29  ;;  %v298_v0 = vsel %vm292_vm5, %v279_v29, %v281_v45  ;;  %v1340_v36 = vpop.permute.xlu0 %246 }
 0x11c   :  { %v263_v5 = vsel %vm256_vm6, %v1291_v17, %v1340_v36  ;;  %v527_v4 = vsel %vm376_vm3, %v297_v32, %v333_v21  ;;  %v531_v10 = vsel %vm376_vm3, %v298_v0, %v334_v62 }
 0x11d   :  { %669 = vmatpush.bf16.msrb.mxu0 %v527_v4  ;;  %683 = vmatpush.bf16.msrb.mxu1 %v531_v10  ;;  %v491_v54 = vsel %vm376_vm3, %v227_v30, %v263_v5  ;;  %v855_v5 = vmov 0  }
 0x11e   :  { %698 = vmatpush.bf16.msrb.mxu2 %v491_v54  ;;  %846 = vset.pattern.permute.xlu1 %v855_v5  ;;  %v156_v54 = vsel %vm148_vm1, %v1141_v22, %v1090_v61  ;;  %v555_v22 = vld [vmem:[%s1551_s3] sm:$0xff] }
 0x11f   :  { %845 = vset.pattern.permute.xlu0 %v855_v5 }
 0x120   :  { %559 = vperm.xlu0 %845, %v555_v22  }
 0x122   :  { %v173_v45 = vpop.permute.xlu1 %172  ;;  %v291_v38 = vpop.permute.xlu2 %290 }
 0x123   :  { %v191_v13 = vsel %vm184_vm8, %v173_v45, %v1309_v8  ;;  %v169_v9 = vpop.permute.xlu0 %168  ;;  %v190_v60 = vsel %vm184_vm8, %v171_v6, %v173_v45 }
 0x124   :  { %v188_v39 = vsel %vm184_vm8, %v1183_v49, %v169_v9  ;;  %v447_v53 = vsel %vm376_vm3, %v1148_v25, %v191_v13  ;;  %v391_v49 = vsel %vm376_vm3, %v911_v16, %v1061_v51 }
 0x125   :  { %v435_v23 = vsel %vm376_vm3, %v1131_v19, %v188_v39  ;;  %699 = vmatpush.bf16.msrb.mxu2 %v447_v53  ;;  %v598_v19 = vsel %vm376_vm3, %v372_v48, 0 }
 0x126   :  { %657 = vmatpush.bf16.msra.mxu3 %v435_v23 }
 0x129   :  { %700 = vmatpush.bf16.msrb.mxu2 %v403_v3 }
 0x12a   :  { %658 = vmatpush.bf16.msra.mxu3 %v391_v49  ;;  %v243_v25 = vpop.permute.xlu1 %242  ;;  %v327_v12 = vpop.permute.xlu2 %326 }
 0x12b   :  { %v261_v50 = vsel %vm256_vm6, %v241_v11, %v243_v25  ;;  %v262_v42 = vsel %vm256_vm6, %v243_v25, %v1291_v17  ;;  %v207_v33 = vpop.permute.xlu0 %206  ;;  %v189_v17 = vsel %vm184_vm8, %v169_v9, %v171_v6  ;;  %v556_v9 = vld [vmem:[%s1551_s3 + $0x8] sm:$0xff]  ;;  %v407_v25 = vsel %vm376_vm3, %v935_v27, %v1076_v57 }
 0x12c   :  { %v225_v46 = vsel %vm220_vm7, %v205_v40, %v207_v33  ;;  %v226_v28 = vsel %vm220_vm7, %v207_v33, %v1268_v20  ;;  %830 = vmatmul.msk.bf16.vlgmr.msrb.gmra.mxu2 %vm572_vm9, %v1328_v41  ;;  %v439_v40 = vsel %vm376_vm3, %v1125_v14, %v189_v17  ;;  %v443_v20 = vsel %vm376_vm3, %v1144_v24, %v190_v60 }
 0x12d   :  { %v483_v16 = vsel %vm376_vm3, %v225_v46, %v261_v50  ;;  %v487_v51 = vsel %vm376_vm3, %v226_v28, %v262_v42  ;;  %827 = vmatmul.msk.bf16.vlgmr.msra.gmra.mxu3 %vm572_vm9, %v1328_v41  ;;  %v399_v14 = vsel %vm376_vm3, %v909_v15, %v1079_v59  ;;  %564 = vperm.xlu1 %846, %v556_v9  }
 0x12e   :  { %710 = vmatpush.bf16.msrb.mxu3 %v598_v19  ;;  %670 = vmatpush.bf16.msrb.mxu0 %v483_v16 }
 0x12f   :  { %684 = vmatpush.bf16.msrb.mxu1 %v487_v51 }
 0x132   :  { %671 = vmatpush.bf16.msrb.mxu0 %v439_v40  ;;  %v363_v44 = vpop.permute.xlu1 %362  ;;  %v1387_v47 = vpop.permute.xlu2 %216 }
 0x133   :  { %685 = vmatpush.bf16.msrb.mxu1 %v443_v20  ;;  %v361_v11 = vpop.permute.xlu0 %360 }
 0x134   :  { %v375_v55 = vsel %vm364_vm2, %v361_v11, %v363_v44 }
 0x135   :  { %v607_v56 = vsel %vm376_vm3, %v375_v55, 0 }
 0x136   :  { %672 = vmatpush.bf16.msrb.mxu0 %v395_v31  ;;  %752 = vmatpush.bf16.msra.mxu2 %v607_v56 }
 0x137   :  { %686 = vmatpush.bf16.msrb.mxu1 %v399_v14 }
 0x139   :  { %828 = vmatmul.msk.bf16.vlgmr.msrb.gmra.mxu0 %vm572_vm9, %v1328_v41 }
 0x13a   :  { %829 = vmatmul.msk.bf16.vlgmr.msrb.gmra.mxu1 %vm572_vm9, %v1328_v41  ;;  %v289_v24 = vpop.permute.xlu1 %288  ;;  %v1401_v29 = vpop.permute.xlu2 %252 }
 0x13b   :  { %v285_v6 = vpop.permute.xlu0 %284  ;;  %v303_v7 = vsel %vm292_vm5, %v289_v24, %v291_v38 }
 0x13c   :  { %v300_v59 = vsel %vm292_vm5, %v1239_v18, %v285_v6 }
 0x142   :  { %v325_v62 = vpop.permute.xlu1 %324  ;;  %v323_v21 = vpop.permute.xlu2 %322 }
 0x143   :  { %v339_v43 = vsel %vm328_vm4, %v325_v62, %v327_v12  ;;  %v321_v15 = vpop.permute.xlu0 %320  ;;  %v338_v12 = vsel %vm328_vm4, %v323_v21, %v325_v62 }
 0x144   :  { %v336_v32 = vsel %vm328_vm4, %v1247_v34, %v321_v15  ;;  %v551_v0 = vsel %vm376_vm3, %v303_v7, %v339_v43  ;;  %v337_v19 = vsel %vm328_vm4, %v321_v15, %v323_v21 }
 0x145   :  { %v539_v30 = vsel %vm376_vm3, %v300_v59, %v336_v32  ;;  %753 = vmatpush.bf16.msra.mxu2 %v551_v0  ;;  %v411_v59 = vsel %vm376_vm3, %v933_v26, %v1096_v1 }
 0x146   :  { %711 = vmatpush.bf16.msrb.mxu3 %v539_v30 }
 0x14a   :  { %v213_v4 = vpop.permute.xlu1 %212  ;;  %v1411_v10 = vpop.permute.xlu2 %176 }
 0x14b   :  { %v192_v18 = vsel %vm184_vm8, %v1309_v8, %v1411_v10  ;;  %v359_v34 = vpop.permute.xlu0 %358  ;;  %v228_v53 = vsel %vm220_vm7, %v1322_v58, %v213_v4 }
 0x14c   :  { %v373_v45 = vsel %vm364_vm2, %v1316_v52, %v359_v34  ;;  %v374_v38 = vsel %vm364_vm2, %v359_v34, %v361_v11  ;;  %v451_v13 = vsel %vm376_vm3, %v156_v54, %v192_v18  ;;  %v419_v11 = vsel %vm376_vm3, %v957_v35, %v1093_v63 }
 0x14d   :  { %v601_v39 = vsel %vm376_vm3, %v373_v45, 0  ;;  %v604_v8 = vsel %vm376_vm3, %v374_v38, 0 }
 0x14e   :  { %724 = vmatpush.bf16.msra.mxu0 %v601_v39  ;;  %738 = vmatpush.bf16.msra.mxu1 %v604_v8 }
 0x152   :  { %v249_v52 = vpop.permute.xlu1 %248  ;;  %v215_v20 = vpop.permute.xlu2 %214 }
 0x153   :  { %v264_v23 = vsel %vm256_vm6, %v1340_v36, %v249_v52  ;;  %v219_v48 = vpop.permute.xlu0 %218  ;;  %v229_v31 = vsel %vm220_vm7, %v213_v4, %v215_v20  ;;  %v230_v14 = vsel %vm220_vm7, %v215_v20, %v1387_v47 }
 0x154   :  { %v495_v3 = vsel %vm376_vm3, %v228_v53, %v264_v23  ;;  %v231_v36 = vsel %vm220_vm7, %v1387_v47, %v219_v48 }
 0x155   :  { %712 = vmatpush.bf16.msrb.mxu3 %v495_v3 }
 0x159   :  { %713 = vmatpush.bf16.msrb.mxu3 %v451_v13 }
 0x15a   :  { %v287_v49 = vpop.permute.xlu1 %286  ;;  %v179_v62 = vpop.permute.xlu2 %178 }
 0x15b   :  { %v301_v50 = vsel %vm292_vm5, %v285_v6, %v287_v49  ;;  %v302_v58 = vsel %vm292_vm5, %v287_v49, %v289_v24  ;;  %v255_v42 = vpop.permute.xlu0 %254  ;;  %v193_v47 = vsel %vm184_vm8, %v1411_v10, %v179_v62 }
 0x15c   :  { %v267_v33 = vsel %vm256_vm6, %v1401_v29, %v255_v42  ;;  %v543_v46 = vsel %vm376_vm3, %v301_v50, %v337_v19  ;;  %v547_v28 = vsel %vm376_vm3, %v302_v58, %v338_v12 }
 0x15d   :  { %714 = vmatpush.bf16.msrb.mxu3 %v407_v25  ;;  %725 = vmatpush.bf16.msra.mxu0 %v543_v46  ;;  %v507_v27 = vsel %vm376_vm3, %v231_v36, %v267_v33 }
 0x15e   :  { %739 = vmatpush.bf16.msra.mxu1 %v547_v28  ;;  %754 = vmatpush.bf16.msra.mxu2 %v507_v27 }
 0x160   :  { %831 = vmatmul.msk.bf16.vlgmr.msrb.gmra.mxu3 %vm572_vm9, %v1328_v41 }
 0x162   :  { %v147_v57 = vpop.permute.xlu1 %146 }
 0x163   :  { %v145_v16 = vpop.permute.xlu0 %144 }
 0x164   :  { %v159_v17 = vsel %vm148_vm1, %v145_v16, %v147_v57 }
 0x16a   :  { %v183_v51 = vpop.permute.xlu1 %182 }
 0x16b   :  { %v181_v60 = vpop.permute.xlu0 %180 }
 0x16c   :  { %v195_v40 = vsel %vm184_vm8, %v181_v60, %v183_v51 }
 0x16d   :  { %v463_v44 = vsel %vm376_vm3, %v159_v17, %v195_v40 }
 0x16e   :  { %755 = vmatpush.bf16.msra.mxu2 %v463_v44 }
 0x172   :  { %756 = vmatpush.bf16.msra.mxu2 %v419_v11  ;;  %v143_v55 = vpop.permute.xlu1 %142 }
 0x173   :  { %v251_v56 = vpop.permute.xlu0 %250  ;;  %v157_v63 = vsel %vm148_vm1, %v1090_v61, %v143_v55  ;;  %v158_v7 = vsel %vm148_vm1, %v143_v55, %v145_v16  ;;  %v415_v61 = vsel %vm376_vm3, %v966_v37, %v1099_v2 }
 0x174   :  { %v265_v24 = vsel %vm256_vm6, %v249_v52, %v251_v56  ;;  %v266_v6 = vsel %vm256_vm6, %v251_v56, %v1401_v29  ;;  %v194_v29 = vsel %vm184_vm8, %v179_v62, %v181_v60  ;;  %v455_v43 = vsel %vm376_vm3, %v157_v63, %v193_v47 }
 0x175   :  { %834 = vmatmul.msk.bf16.vlgmr.msra.gmra.mxu2 %vm572_vm9, %v1328_v41  ;;  %v499_v21 = vsel %vm376_vm3, %v229_v31, %v265_v24  ;;  %v503_v35 = vsel %vm376_vm3, %v230_v14, %v266_v6  ;;  %v459_v15 = vsel %vm376_vm3, %v158_v7, %v194_v29 }
 0x176   :  { %726 = vmatpush.bf16.msra.mxu0 %v499_v21  ;;  %740 = vmatpush.bf16.msra.mxu1 %v503_v35 }
 0x17a   :  { %727 = vmatpush.bf16.msra.mxu0 %v455_v43  ;;  %741 = vmatpush.bf16.msra.mxu1 %v459_v15 }
 0x17e   :  { %728 = vmatpush.bf16.msra.mxu0 %v411_v59  ;;  %742 = vmatpush.bf16.msra.mxu1 %v415_v61 }
 0x181   :  { %832 = vmatmul.msk.bf16.vlgmr.msra.gmra.mxu0 %vm572_vm9, %v1328_v41  ;;  %833 = vmatmul.msk.bf16.vlgmr.msra.gmra.mxu1 %vm572_vm9, %v1328_v41 }
 0x18a   :  { %v618_v32 = vpop.f32.mrf.mxu0 }
 0x18c   :  { %v632_v0 = vpop.f32.mrf.mxu1 }
 0x190   :  { %v646_v30 = vpop.f32.mrf.mxu2 }
 0x192   :  { %v620_v4 = vpop.f32.mrf.mxu0  ;;  %v1488_v18 = vpop.permute.xlu0 %559 }
 0x193   :  { %v619_v13 = vadd.f32 %v618_v32, %v1488_v18  ;;  %v633_v9 = vadd.f32 %v632_v0, %v1488_v18  ;;  %v647_v22 = vadd.f32 %v646_v30, %v1488_v18 }
 0x194   :  { %v634_v10 = vpop.f32.mrf.mxu1 }
 0x195   :  { %v763_v48 = vmax.f32 %v619_v13, 0.0  ;;  %v764_v3 = vmax.f32 %v633_v9, 0.0  ;;  %v765_v49 = vmax.f32 %v647_v22, 0.0 }
 0x197   :  { %v785_v42 = vpack.c.bf16 %v764_v3, %v763_v48 }
 0x198   :  { %v648_v54 = vpop.f32.mrf.mxu2 }
 0x199   :  { %797 = vst [vmem:[%s1552_s4] sm:$0xff] %v785_v42 }
 0x19f   :  { %v1486_v1 = vpop.permute.xlu1 %564 }
 0x1a0   :  { %v621_v37 = vadd.f32 %v620_v4, %v1486_v1  ;;  %v635_v2 = vadd.f32 %v634_v10, %v1486_v1  ;;  %v649_v34 = vadd.f32 %v648_v54, %v1486_v1 }
 0x1a2   :  { %v774_v8 = vmax.f32 %v621_v37, 0.0  ;;  %v775_v52 = vmax.f32 %v635_v2, 0.0  ;;  %v776_v53 = vmax.f32 %v649_v34, 0.0 }
 0x1a4   :  { %v791_v12 = vpack.c.bf16 %v775_v52, %v774_v8 }
 0x1a6   :  { %803 = vst [vmem:[%s1552_s4 + $0x2c] sm:$0xff] %v791_v12 }
 0x1af   :  { %v702_v20 = vpop.f32.mrf.mxu2 }
 0x1b0   :  { %v660_v5 = vpop.f32.mrf.mxu3  ;;  %v703_v44 = vadd.f32 %v702_v20, %v1488_v18 }
 0x1b1   :  { %v661_v39 = vadd.f32 %v660_v5, %v1488_v18 }
 0x1b2   :  { %v769_v55 = vmax.f32 %v703_v44, 0.0 }
 0x1b3   :  { %v766_v25 = vmax.f32 %v661_v39, 0.0 }
 0x1b5   :  { %v786_v36 = vpack.c.bf16 %v766_v25, %v765_v49 }
 0x1b6   :  { %v674_v45 = vpop.f32.mrf.mxu0 }
 0x1b7   :  { %v688_v38 = vpop.f32.mrf.mxu1  ;;  %v675_v50 = vadd.f32 %v674_v45, %v1488_v18  ;;  %798 = vst [vmem:[%s1552_s4 + $0x8] sm:$0xff] %v786_v36  ;;  %v704_v31 = vpop.f32.mrf.mxu2 }
 0x1b8   :  { %v662_v26 = vpop.f32.mrf.mxu3  ;;  %v689_v58 = vadd.f32 %v688_v38, %v1488_v18  ;;  %v705_v6 = vadd.f32 %v704_v31, %v1486_v1 }
 0x1b9   :  { %v663_v41 = vadd.f32 %v662_v26, %v1486_v1  ;;  %v767_v33 = vmax.f32 %v675_v50, 0.0 }
 0x1ba   :  { %v768_v46 = vmax.f32 %v689_v58, 0.0  ;;  %v780_v21 = vmax.f32 %v705_v6, 0.0 }
 0x1bb   :  { %v777_v23 = vmax.f32 %v663_v41, 0.0 }
 0x1bc   :  { %v787_v28 = vpack.c.bf16 %v768_v46, %v767_v33 }
 0x1bd   :  { %v792_v19 = vpack.c.bf16 %v777_v23, %v776_v53 }
 0x1be   :  { %799 = vst [vmem:[%s1552_s4 + $0x10] sm:$0xff] %v787_v28  ;;  %v676_v27 = vpop.f32.mrf.mxu0 }
 0x1bf   :  { %804 = vst [vmem:[%s1552_s4 + $0x34] sm:$0xff] %v792_v19  ;;  %v690_v57 = vpop.f32.mrf.mxu1  ;;  %v677_v16 = vadd.f32 %v676_v27, %v1486_v1 }
 0x1c0   :  { %v691_v51 = vadd.f32 %v690_v57, %v1486_v1 }
 0x1c1   :  { %v778_v60 = vmax.f32 %v677_v16, 0.0 }
 0x1c2   :  { %v779_v17 = vmax.f32 %v691_v51, 0.0 }
 0x1c4   :  { %v793_v40 = vpack.c.bf16 %v779_v17, %v778_v60 }
 0x1c6   :  { %805 = vst [vmem:[%s1552_s4 + $0x3c] sm:$0xff] %v793_v40 }
 0x1e3   :  { %v716_v11 = vpop.f32.mrf.mxu3 }
 0x1e4   :  { %v717_v56 = vadd.f32 %v716_v11, %v1488_v18 }
 0x1e6   :  { %v770_v14 = vmax.f32 %v717_v56, 0.0 }
 0x1e8   :  { %v788_v24 = vpack.c.bf16 %v770_v14, %v769_v55 }
 0x1ea   :  { %800 = vst [vmem:[%s1552_s4 + $0x18] sm:$0xff] %v788_v24 }
 0x1eb   :  { %v718_v62 = vpop.f32.mrf.mxu3 }
 0x1ec   :  { %v719_v35 = vadd.f32 %v718_v62, %v1486_v1 }
 0x1ee   :  { %v781_v63 = vmax.f32 %v719_v35, 0.0 }
 0x1f0   :  { %v794_v7 = vpack.c.bf16 %v781_v63, %v780_v21 }
 0x1f2   :  { %806 = vst [vmem:[%s1552_s4 + $0x44] sm:$0xff] %v794_v7 }
 0x1f8   :  { %v758_v47 = vpop.f32.mrf.mxu2 }
 0x1f9   :  { %v759_v29 = vadd.f32 %v758_v47, %v1488_v18 }
 0x1fb   :  { %v773_v43 = vmax.f32 %v759_v29, 0.0 }
 0x1fd   :  { %v790_v15 = vpack.c.bf16 %v773_v43, %v773_v43 }
 0x1fe   :  { %v730_v59 = vpop.f32.mrf.mxu0  ;;  %v744_v61 = vpop.f32.mrf.mxu1 }
 0x1ff   :  { %802 = vst [vmem:[%s1552_s4 + $0x28] sm:$0xf] %v790_v15  ;;  %v731_v32 = vadd.f32 %v730_v59, %v1488_v18  ;;  %v745_v0 = vadd.f32 %v744_v61, %v1488_v18 }
 0x200   :  { %v760_v30 = vpop.f32.mrf.mxu2 }
 0x201   :  { %v771_v5 = vmax.f32 %v731_v32, 0.0  ;;  %v772_v4 = vmax.f32 %v745_v0, 0.0  ;;  %v761_v10 = vadd.f32 %v760_v30, %v1486_v1 }
 0x203   :  { %v789_v54 = vpack.c.bf16 %v772_v4, %v771_v5  ;;  %v784_v26 = vmax.f32 %v761_v10, 0.0 }
 0x205   :  { %801 = vst [vmem:[%s1552_s4 + $0x20] sm:$0xff] %v789_v54  ;;  %v796_v37 = vpack.c.bf16 %v784_v26, %v784_v26 }
 0x206   :  { %v732_v2 = vpop.f32.mrf.mxu0  ;;  %v746_v34 = vpop.f32.mrf.mxu1 }
 0x207   :  { %808 = vst [vmem:[%s1552_s4 + $0x54] sm:$0xf] %v796_v37  ;;  %v733_v18 = vadd.f32 %v732_v2, %v1486_v1  ;;  %v747_v41 = vadd.f32 %v746_v34, %v1486_v1 }
 0x209   :  { %v782_v45 = vmax.f32 %v733_v18, 0.0  ;;  %v783_v38 = vmax.f32 %v747_v41, 0.0 }
 0x20b   :  { %v795_v13 = vpack.c.bf16 %v783_v38, %v782_v45 }
 0x20d   :  { %807 = vst [vmem:[%s1552_s4 + $0x4c] sm:$0xff] %v795_v13 }

// kernel: expandmani_ae_spatial_interpolate_forward.7
= control target key start
LH: loop header
LB: loop body
LE: loop exit
PB: predicated region body
PF: predicated region fallthrough
CT: control target
= control target key end

     0   :  { %s989_s5 = smov 127   ;;  %s990_s6 = smov 91   ;;  %vm221_vm0 = vcmask 1039360   ;;  %vm503_vm1 = vcmask 744448   ;;  %vm456_vm2 = vcmask 752640   ;;  %vm409_vm3 = vcmask 883712   ;;  %s1605_s0 = inlined_call_operand.vmem [shape: bf16[16,1536], index: 0, kind: input, shape index: {}, may-alias: {0,1}]   ;;  %s1606_s1 = inlined_call_operand.vmem [shape: bf16[16,1536], index: 1, kind: input, shape index: {}, may-alias: {0,1}]   ;;  %s1607_s2 = inlined_call_operand.vmem [shape: bf16[8,144], index: 2, kind: input, shape index: {}]   ;;  %s1608_s3 = inlined_call_operand.vmem [shape: f32[8,1], index: 3, kind: input, shape index: {}]   ;;  %s1609_s4 = inlined_call_operand.vmem [shape: f32[8,1408], index: 4, kind: output, shape index: {}]  }
   0x1   :  { %v29_v0 = vld [vmem:[%s1605_s0 + $0x10] sm:$0xff]  ;;  %v39_v1 = vld [vmem:[%s1605_s0 + $0x40] sm:$0xff]  ;;  %v27_v2 = vld [vmem:[%s1605_s0 + $0x8] sm:$0xff]  ;;  %s991_s7 = smov 92   ;;  %s992_s8 = smov 108   ;;  %vm550_vm4 = vcmask 736256  }
   0x2   :  { %30 = vst [vmem:[#allocation2 + $0x10] sm:$0xff] %v29_v0  ;;  %v37_v3 = vld [vmem:[%s1605_s0 + $0x38] sm:$0xff]  ;;  %v25_v4 = vld [vmem:[%s1605_s0] sm:$0xff]  ;;  %v35_v5 = vld [vmem:[%s1605_s0 + $0x30] sm:$0xff]  ;;  %s993_s9 = smov 109   ;;  %s994_s10 = smov 90  }
   0x3   :  { %40 = vst [vmem:[#allocation2 + $0x3c] sm:$0xff] %v39_v1  ;;  %v31_v6 = vld [vmem:[%s1605_s0 + $0x18] sm:$0xff]  ;;  %v41_v7 = vld [vmem:[%s1605_s0 + $0x48] sm:$0xff]  ;;  %s995_s11 = smov 110   ;;  %s996_s12 = smov 126   ;;  %v33_v33 = vld [vmem:[%s1605_s0 + $0x20] sm:$0xff] }
   0x4   :  { %28 = vst [vmem:[#allocation2 + $0x8] sm:$0xff] %v27_v2  ;;  %v43_v34 = vld [vmem:[%s1605_s0 + $0x50] sm:$0xff]  ;;  %vm362_vm5 = vcmask 891904   ;;  %vm315_vm6 = vcmask 900096   ;;  %vm268_vm7 = vcmask 1031168   ;;  %vm586_vm8 = vcmask 130048  }
   0x5   :  { %38 = vst [vmem:[#allocation2 + $0x34] sm:$0xff] %v37_v3  ;;  %v904_v3 = vld [vmem:[%s1605_s0 + $0x28] sm:$0xf] }
   0x6   :  { %26 = vst [vmem:[#allocation2] sm:$0xff] %v25_v4  ;;  %v905_v4 = vld [vmem:[%s1605_s0 + $0x58] sm:$0xf] }
   0x7   :  { %36 = vst [vmem:[#allocation2 + $0x2c] sm:$0xff] %v35_v5 }
   0x8   :  { %32 = vst [vmem:[#allocation2 + $0x18] sm:$0xff] %v31_v6 }
   0x9   :  { %v926_v8 = vld [vmem:[#allocation2 + $0x10] sm:$0xf]  ;;  %42 = vst [vmem:[#allocation2 + $0x44] sm:$0xff] %v41_v7  ;;  %v969_v16 = vld [vmem:[#allocation2 + $0x14] sm:$0xf] }
   0xa   :  { %v974_v9 = vld [vmem:[#allocation2 + $0x38] sm:$0xf0]  ;;  %v928_v17 = vld [vmem:[#allocation2 + $0x3c] sm:$0xf0]  ;;  %34 = vst [vmem:[#allocation2 + $0x20] sm:$0xff] %v33_v33 }
   0xb   :  { %v1047_v10 = vor.u32 %v974_v9, %v926_v8  ;;  %v918_v11 = vld [vmem:[#allocation2 + $0x8] sm:$0xf]  ;;  %v968_v19 = vld [vmem:[#allocation2 + $0xc] sm:$0xf]  ;;  %v1059_v21 = vor.u32 %v969_v16, %v928_v17  ;;  %44 = vst [vmem:[#allocation2 + $0x4c] sm:$0xff] %v43_v34 }
   0xc   :  { %v973_v12 = vld [vmem:[#allocation2 + $0x30] sm:$0xf0]  ;;  %v920_v20 = vld [vmem:[#allocation2 + $0x34] sm:$0xf0]  ;;  %56 = vst [vmem:[#allocation2 + $0x28] sm:$0xf] %v904_v3 }
   0xd   :  { %205 = vrot.lane.b32.xlu2 %v1047_v10, %s989_s5  ;;  %v1051_v13 = vor.u32 %v973_v12, %v918_v11  ;;  %v910_v14 = vld [vmem:[#allocation2] sm:$0xf]  ;;  %v967_v22 = vld [vmem:[#allocation2 + $0x4] sm:$0xf]  ;;  %v1061_v24 = vor.u32 %v968_v19, %v920_v20  ;;  %58 = vst [vmem:[#allocation2 + $0x54] sm:$0xf] %v905_v4 }
   0xe   :  { %v972_v15 = vld [vmem:[#allocation2 + $0x28] sm:$0xf0]  ;;  %v912_v23 = vld [vmem:[#allocation2 + $0x2c] sm:$0xf0]  ;;  %v907_v12 = vld [vmem:[%s1606_s1 + $0x5c] sm:$0xf] }
   0xf   :  { %201 = vrot.lane.b32.xlu1 %v1051_v13, %s989_s5  ;;  %v1055_v18 = vor.u32 %v972_v15, %v910_v14  ;;  %v1065_v25 = vor.u32 %v967_v22, %v912_v23  ;;  %v934_v26 = vld [vmem:[#allocation2 + $0x18] sm:$0xf]  ;;  %v970_v36 = vld [vmem:[#allocation2 + $0x1c] sm:$0xf]  ;;  %v906_v11 = vld [vmem:[%s1606_s1 + $0x2c] sm:$0xf] }
  0x10   :  { %v975_v27 = vld [vmem:[#allocation2 + $0x40] sm:$0xf0]  ;;  %v936_v37 = vld [vmem:[#allocation2 + $0x44] sm:$0xf0]  ;;  %83 = vst [vmem:[#allocation3] sm:$0xf] %v906_v11 }
  0x11   :  { %197 = vrot.lane.b32.xlu0 %v1055_v18, %s989_s5  ;;  %v1073_v28 = vor.u32 %v975_v27, %v934_v26  ;;  %v1165_v40 = vor.u32 %v970_v36, %v936_v37  ;;  %v971_v58 = vld [vmem:[#allocation2 + $0x24] sm:$0xf]  ;;  %v942_v62 = vld [vmem:[#allocation2 + $0x20] sm:$0xf]  ;;  %85 = vst [vmem:[#allocation3 + $0x4] sm:$0xf] %v907_v12 }
  0x12   :  { %v944_v59 = vld [vmem:[#allocation2 + $0x4c] sm:$0xf0]  ;;  %v976_v63 = vld [vmem:[#allocation2 + $0x48] sm:$0xf0] }
  0x13   :  { %v1221_v1 = vor.u32 %v971_v58, %v944_v59  ;;  %v1225_v2 = vor.u32 %v976_v63, %v942_v62 }
  0x15   :  { %207 = vrot.lane.b32.xlu2 %v1059_v21, %s989_s5 }
  0x17   :  { %203 = vrot.lane.b32.xlu1 %v1061_v24, %s989_s5 }
  0x18   :  { %v1323_v62 = vld [vmem:[#allocation3] sm:$0xff] }
  0x19   :  { %199 = vrot.lane.b32.xlu0 %v1065_v25, %s989_s5 }
  0x1d   :  { %483 = vrot.lane.b32.xlu2 %v1051_v13, %s990_s6 }
  0x1f   :  { %481 = vrot.lane.b32.xlu1 %v1065_v25, %s990_s6 }
  0x21   :  { %209 = vrot.lane.b32.xlu0 %v1073_v28, %s989_s5 }
  0x25   :  { %479 = vrot.lane.b32.xlu2 %v1055_v18, %s990_s6 }
  0x27   :  { %436 = vrot.lane.b32.xlu1 %v1051_v13, %s991_s7 }
  0x29   :  { %434 = vrot.lane.b32.xlu0 %v1065_v25, %s991_s7 }
  0x2d   :  { %389 = vrot.lane.b32.xlu2 %v1051_v13, %s992_s8 }
  0x2f   :  { %387 = vrot.lane.b32.xlu1 %v1065_v25, %s992_s8 }
  0x31   :  { %485 = vrot.lane.b32.xlu0 %v1061_v24, %s990_s6 }
  0x35   :  { %340 = vrot.lane.b32.xlu2 %v1065_v25, %s993_s9 }
  0x37   :  { %438 = vrot.lane.b32.xlu1 %v1061_v24, %s991_s7 }
  0x39   :  { %432 = vrot.lane.b32.xlu0 %v1055_v18, %s991_s7 }
  0x3d   :  { %530 = vrot.lane.b32.xlu2 %v1051_v13, %s994_s10 }
  0x3f   :  { %528 = vrot.lane.b32.xlu1 %v1065_v25, %s994_s10 }
  0x41   :  { %342 = vrot.lane.b32.xlu0 %v1051_v13, %s993_s9 }
  0x45   :  { %293 = vrot.lane.b32.xlu2 %v1065_v25, %s995_s11 }
  0x47   :  { %391 = vrot.lane.b32.xlu1 %v1061_v24, %s992_s8 }
  0x49   :  { %385 = vrot.lane.b32.xlu0 %v1055_v18, %s992_s8 }
  0x4d   :  { %489 = vrot.lane.b32.xlu2 %v1059_v21, %s990_s6 }
  0x4f   :  { %487 = vrot.lane.b32.xlu1 %v1047_v10, %s990_s6 }
  0x51   :  { %295 = vrot.lane.b32.xlu0 %v1051_v13, %s995_s11 }
  0x55   :  { %526 = vrot.lane.b32.xlu2 %v1055_v18, %s994_s10 }
  0x57   :  { %344 = vrot.lane.b32.xlu1 %v1061_v24, %s993_s9 }
  0x59   :  { %338 = vrot.lane.b32.xlu0 %v1055_v18, %s993_s9 }
  0x5d   :  { %440 = vrot.lane.b32.xlu2 %v1047_v10, %s991_s7 }
  0x5f   :  { %248 = vrot.lane.b32.xlu1 %v1051_v13, %s996_s12 }
  0x61   :  { %246 = vrot.lane.b32.xlu0 %v1065_v25, %s996_s12 }
  0x65   :  { %297 = vrot.lane.b32.xlu2 %v1061_v24, %s995_s11 }
  0x67   :  { %291 = vrot.lane.b32.xlu1 %v1055_v18, %s995_s11  ;;  %v206_v29 = vpop.permute.xlu2 %205 }
  0x69   :  { %442 = vrot.lane.b32.xlu0 %v1059_v21, %s991_s7 }
  0x6d   :  { %244 = vrot.lane.b32.xlu2 %v1055_v18, %s996_s12 }
  0x6f   :  { %395 = vrot.lane.b32.xlu1 %v1059_v21, %s992_s8  ;;  %v1137_v30 = vpop.permute.xlu2 %207 }
  0x70   :  { %v1141_v31 = vsel %vm221_vm0, %v206_v29, %v1137_v30 }
  0x71   :  { %393 = vrot.lane.b32.xlu0 %v1047_v10, %s992_s8 }
  0x75   :  { %348 = vrot.lane.b32.xlu2 %v1059_v21, %s993_s9 }
  0x77   :  { %346 = vrot.lane.b32.xlu1 %v1047_v10, %s993_s9  ;;  %v1149_v32 = vpop.permute.xlu2 %483 }
  0x79   :  { %250 = vrot.lane.b32.xlu0 %v1061_v24, %s996_s12 }
  0x7d   :  { %301 = vrot.lane.b32.xlu2 %v1059_v21, %s995_s11 }
  0x7f   :  { %299 = vrot.lane.b32.xlu1 %v1047_v10, %s995_s11  ;;  %v480_v35 = vpop.permute.xlu2 %479 }
  0x81   :  { %532 = vrot.lane.b32.xlu0 %v1061_v24, %s994_s10  ;;  %v202_v38 = vpop.permute.xlu1 %201 }
  0x83   :  { %v198_v39 = vpop.permute.xlu0 %197 }
  0x85   :  { %252 = vrot.lane.b32.xlu2 %v1047_v10, %s996_s12 }
  0x87   :  { %493 = vrot.lane.b32.xlu1 %v1165_v40, %s990_s6  ;;  %v1171_v41 = vpop.permute.xlu2 %389 }
  0x89   :  { %491 = vrot.lane.b32.xlu0 %v1073_v28, %s990_s6  ;;  %v204_v42 = vpop.permute.xlu1 %203 }
  0x8a   :  { %v1176_v43 = vsel %vm221_vm0, %v202_v38, %v204_v42  ;;  %v1179_v44 = vsel %vm221_vm0, %v204_v42, %v206_v29 }
  0x8b   :  { %v200_v45 = vpop.permute.xlu0 %199 }
  0x8c   :  { %v1182_v46 = vsel %vm221_vm0, %v200_v45, %v202_v38  ;;  %v1185_v47 = vsel %vm221_vm0, %v198_v39, %v200_v45  ;;  %v950_v38 = vld [vmem:[#allocation2 + $0x28] sm:$0xf]  ;;  %v977_v39 = vld [vmem:[#allocation2 + $0x50] sm:$0xf0] }
  0x8d   :  { %446 = vrot.lane.b32.xlu2 %v1165_v40, %s991_s7  ;;  %v1299_v45 = vor.u32 %v977_v39, %v950_v38 }
  0x8f   :  { %444 = vrot.lane.b32.xlu1 %v1073_v28, %s991_s7  ;;  %v1191_v48 = vpop.permute.xlu2 %340 }
  0x91   :  { %254 = vrot.lane.b32.xlu0 %v1059_v21, %s996_s12  ;;  %v482_v49 = vpop.permute.xlu1 %481 }
  0x92   :  { %v504_v50 = vsel %vm503_vm1, %v480_v35, %v482_v49  ;;  %v505_v51 = vsel %vm503_vm1, %v482_v49, %v1149_v32 }
  0x93   :  { %v1198_v52 = vpop.permute.xlu0 %209  ;;  %590 = vmatpush.bf16.msra.mxu0 %v504_v50  ;;  %616 = vmatpush.bf16.msra.mxu2 %v505_v51 }
  0x95   :  { %350 = vrot.lane.b32.xlu2 %v1073_v28, %s993_s9 }
  0x97   :  { %399 = vrot.lane.b32.xlu1 %v1165_v40, %s992_s8  ;;  %v1204_v53 = vpop.permute.xlu2 %530 }
  0x99   :  { %397 = vrot.lane.b32.xlu0 %v1073_v28, %s992_s8  ;;  %v437_v54 = vpop.permute.xlu1 %436 }
  0x9b   :  { %v435_v55 = vpop.permute.xlu0 %434 }
  0x9c   :  { %v458_v56 = vsel %vm456_vm2, %v435_v55, %v437_v54 }
  0x9d   :  { %617 = vmatpush.bf16.msra.mxu2 %v458_v56  ;;  %305 = vrot.lane.b32.xlu2 %v1165_v40, %s995_s11 }
  0x9f   :  { %303 = vrot.lane.b32.xlu1 %v1073_v28, %s995_s11  ;;  %v1213_v57 = vpop.permute.xlu2 %293 }
  0xa1   :  { %352 = vrot.lane.b32.xlu0 %v1165_v40, %s993_s9  ;;  %v388_v60 = vpop.permute.xlu1 %387 }
  0xa2   :  { %v411_v61 = vsel %vm409_vm3, %v388_v60, %v1171_v41 }
  0xa3   :  { %v1219_v0 = vpop.permute.xlu0 %485  ;;  %618 = vmatpush.bf16.msra.mxu2 %v411_v61 }
  0xa4   :  { %v506_v19 = vsel %vm503_vm1, %v1149_v32, %v1219_v0 }
  0xa5   :  { %534 = vrot.lane.b32.xlu2 %v1047_v10, %s994_s10 }
  0xa7   :  { %497 = vrot.lane.b32.xlu1 %v1221_v1, %s990_s6  ;;  %v1235_v5 = vpop.permute.xlu2 %489 }
  0xa9   :  { %495 = vrot.lane.b32.xlu0 %v1225_v2, %s990_s6  ;;  %v439_v6 = vpop.permute.xlu1 %438 }
  0xaa   :  { %v459_v22 = vsel %vm456_vm2, %v437_v54, %v439_v6 }
  0xab   :  { %v433_v7 = vpop.permute.xlu0 %432 }
  0xac   :  { %v457_v8 = vsel %vm456_vm2, %v433_v7, %v435_v55 }
  0xad   :  { %591 = vmatpush.bf16.msra.mxu0 %v457_v8  ;;  %258 = vrot.lane.b32.xlu2 %v1165_v40, %s996_s12 }
  0xaf   :  { %256 = vrot.lane.b32.xlu1 %v1073_v28, %s996_s12  ;;  %v527_v9 = vpop.permute.xlu2 %526 }
  0xb1   :  { %536 = vrot.lane.b32.xlu0 %v1059_v21, %s994_s10  ;;  %v529_v14 = vpop.permute.xlu1 %528 }
  0xb2   :  { %v551_v15 = vsel %vm550_vm4, %v527_v9, %v529_v14  ;;  %v552_v16 = vsel %vm550_vm4, %v529_v14, %v1204_v53 }
  0xb3   :  { %v343_v17 = vpop.permute.xlu0 %342  ;;  %610 = vmatpush.bf16.msra.mxu1 %v551_v15  ;;  %636 = vmatpush.bf16.msra.mxu3 %v552_v16 }
  0xb4   :  { %v364_v20 = vsel %vm362_vm5, %v1191_v48, %v343_v17 }
  0xb5   :  { %619 = vmatpush.bf16.msra.mxu2 %v364_v20  ;;  %211 = vrot.lane.b32.xlu2 %v1165_v40, %s989_s5 }
  0xb7   :  { %642 = vmatpush.bf16.msrb.mxu1 %v506_v19  ;;  %450 = vrot.lane.b32.xlu1 %v1221_v1, %s991_s7  ;;  %v1265_v23 = vpop.permute.xlu2 %440 }
  0xb8   :  { %v1269_v26 = vsel %vm456_vm2, %v439_v6, %v1265_v23 }
  0xb9   :  { %448 = vrot.lane.b32.xlu0 %v1225_v2, %s991_s7  ;;  %v1273_v27 = vpop.permute.xlu1 %391 }
  0xba   :  { %v412_v29 = vsel %vm409_vm3, %v1171_v41, %v1273_v27 }
  0xbb   :  { %643 = vmatpush.bf16.msrb.mxu1 %v459_v22  ;;  %v386_v32 = vpop.permute.xlu0 %385 }
  0xbc   :  { %v410_v33 = vsel %vm409_vm3, %v386_v32, %v388_v60 }
  0xbd   :  { %592 = vmatpush.bf16.msra.mxu0 %v410_v33  ;;  %354 = vrot.lane.b32.xlu2 %v1225_v2, %s993_s9 }
  0xbf   :  { %644 = vmatpush.bf16.msrb.mxu1 %v412_v29  ;;  %403 = vrot.lane.b32.xlu1 %v1221_v1, %s992_s8  ;;  %v1283_v34 = vpop.permute.xlu2 %297 }
  0xc1   :  { %401 = vrot.lane.b32.xlu0 %v1225_v2, %s992_s8  ;;  %v1287_v35 = vpop.permute.xlu1 %487 }
  0xc2   :  { %v508_v7 = vsel %vm503_vm1, %v1287_v35, %v1235_v5  ;;  %v507_v32 = vsel %vm503_vm1, %v1219_v0, %v1287_v35 }
  0xc3   :  { %v296_v36 = vpop.permute.xlu0 %295 }
  0xc4   :  { %v317_v37 = vsel %vm315_vm6, %v1213_v57, %v296_v36  ;;  %v318_v54 = vsel %vm315_vm6, %v296_v36, %v1283_v34 }
  0xc5   :  { %620 = vmatpush.bf16.msra.mxu2 %v317_v37  ;;  %540 = vrot.lane.b32.xlu2 %v1165_v40, %s994_s10 }
  0xc7   :  { %538 = vrot.lane.b32.xlu1 %v1073_v28, %s994_s10  ;;  %v245_v41 = vpop.permute.xlu2 %244 }
  0xc9   :  { %356 = vrot.lane.b32.xlu0 %v1221_v1, %s993_s9  ;;  %v1297_v42 = vpop.permute.xlu1 %344 }
  0xca   :  { %v365_v49 = vsel %vm362_vm5, %v343_v17, %v1297_v42 }
  0xcb   :  { %v339_v50 = vpop.permute.xlu0 %338  ;;  %645 = vmatpush.bf16.msrb.mxu1 %v365_v49 }
  0xcc   :  { %v363_v51 = vsel %vm362_vm5, %v339_v50, %v1191_v48  ;;  %v573_v48 = vld [vmem:[%s1607_s2] sm:$0xff] }
  0xcd   :  { %593 = vmatpush.bf16.msra.mxu0 %v363_v51  ;;  %499 = vrot.lane.b32.xlu2 %v1299_v45, %s990_s6  ;;  %v582_v58 = vunpack.c.h.b16 %v573_v48  ;;  %v581_v9 = vunpack.c.l.b16 %v573_v48 }
  0xcf   :  { %309 = vrot.lane.b32.xlu1 %v1221_v1, %s995_s11  ;;  %646 = vmatpush.bf16.msrb.mxu1 %v318_v54  ;;  %v1311_v55 = vpop.permute.xlu2 %348  ;;  %v1319_v61 = vpack.c.b16 %v582_v58, %v582_v58  ;;  %v1363_v14 = vpack.c.b16 %v581_v9, %v581_v9 }
  0xd1   :  { %307 = vrot.lane.b32.xlu0 %v1225_v2, %s995_s11  ;;  %v249_v56 = vpop.permute.xlu1 %248  ;;  %957 = vmatmul.msk.bf16.vlgmr.msra.gmra.mxu3 %vm586_vm8, %v1319_v61 }
  0xd2   :  { %956 = vmatmul.msk.bf16.vlgmr.msra.gmra.mxu1 %vm586_vm8, %v1319_v61 }
  0xd3   :  { %v247_v59 = vpop.permute.xlu0 %246 }
  0xd4   :  { %v270_v60 = vsel %vm268_vm7, %v247_v59, %v249_v56  ;;  %v269_v8 = vsel %vm268_vm7, %v245_v41, %v247_v59 }
  0xd5   :  { %621 = vmatpush.bf16.msra.mxu2 %v270_v60  ;;  %262 = vrot.lane.b32.xlu2 %v1221_v1, %s996_s12  ;;  %v574_v60 = vld [vmem:[%s1608_s3] sm:$0xff] }
  0xd7   :  { %260 = vrot.lane.b32.xlu1 %v1225_v2, %s996_s12  ;;  %v1331_v63 = vpop.permute.xlu2 %301 }
  0xd9   :  { %501 = vrot.lane.b32.xlu0 %v1323_v62, %s990_s6  ;;  %622 = vmatpush.bf16.msra.mxu2 %v1182_v46  ;;  %v292_v3 = vpop.permute.xlu1 %291 }
  0xda   :  { %v316_v4 = vsel %vm315_vm6, %v292_v3, %v1213_v57 }
  0xdb   :  { %v1338_v6 = vpop.permute.xlu0 %442  ;;  %594 = vmatpush.bf16.msra.mxu0 %v316_v4 }
  0xdd   :  { %623 = vmatpush.bf16.msra.mxu2 %v1065_v25  ;;  %213 = vrot.lane.b32.xlu2 %v1225_v2, %s989_s5  ;;  %v461_v25 = vsel %vm456_vm2, %v1265_v23, %v1338_v6 }
  0xdf   :  { %454 = vrot.lane.b32.xlu1 %v1323_v62, %s991_s7  ;;  %595 = vmatpush.bf16.msra.mxu0 %v269_v8  ;;  %v1349_v46 = vpop.permute.xlu2 %252 }
  0xe0   :  { %624 = vmatmul.bf16.vlgmr.msra.gmra.mxu2 %v1363_v14 }
  0xe1   :  { %694 = vmatpush.bf16.msrb.mxu2 %v508_v7  ;;  %452 = vrot.lane.b32.xlu0 %v1299_v45, %s991_s7  ;;  %v1356_v57 = vpop.permute.xlu1 %395 }
  0xe3   :  { %v394_v11 = vpop.permute.xlu0 %393  ;;  %596 = vmatpush.bf16.msra.mxu0 %v1185_v47 }
  0xe4   :  { %v414_v12 = vsel %vm409_vm3, %v394_v11, %v1356_v57 }
  0xe5   :  { %695 = vmatpush.bf16.msrb.mxu2 %v461_v25  ;;  %407 = vrot.lane.b32.xlu2 %v1323_v62, %s992_s8 }
  0xe7   :  { %405 = vrot.lane.b32.xlu1 %v1299_v45, %s992_s8  ;;  %v1367_v15 = vpop.permute.xlu2 %446  ;;  %597 = vmatpush.bf16.msra.mxu0 %v1055_v18 }
  0xe9   :  { %696 = vmatpush.bf16.msrb.mxu2 %v414_v12  ;;  %215 = vrot.lane.b32.xlu0 %v1221_v1, %s989_s5  ;;  %v347_v47 = vpop.permute.xlu1 %346 }
  0xea   :  { %v367_v16 = vsel %vm362_vm5, %v347_v47, %v1311_v55  ;;  %598 = vmatmul.bf16.vlgmr.msra.gmra.mxu0 %v1363_v14 }
  0xeb   :  { %v251_v17 = vpop.permute.xlu0 %250 }
  0xec   :  { %v271_v19 = vsel %vm268_vm7, %v249_v56, %v251_v17 }
  0xed   :  { %697 = vmatpush.bf16.msrb.mxu2 %v367_v16  ;;  %647 = vmatpush.bf16.msrb.mxu1 %v271_v19 }
  0xee   :  { %542 = vrot.lane.b32.xlu2 %v1225_v2, %s994_s10 }
  0xef   :  { %360 = vrot.lane.b32.xlu1 %v1323_v62, %s993_s9  ;;  %v1381_v18 = vpop.permute.xlu2 %350 }
  0xf1   :  { %358 = vrot.lane.b32.xlu0 %v1299_v45, %s993_s9  ;;  %648 = vmatpush.bf16.msrb.mxu1 %v1176_v43  ;;  %v300_v20 = vpop.permute.xlu1 %299 }
  0xf2   :  { %v320_v22 = vsel %vm315_vm6, %v300_v20, %v1331_v63 }
  0xf3   :  { %v533_v23 = vpop.permute.xlu0 %532  ;;  %698 = vmatpush.bf16.msrb.mxu2 %v320_v22 }
  0xf4   :  { %v553_v29 = vsel %vm550_vm4, %v1204_v53, %v533_v23 }
  0xf5   :  { %662 = vmatpush.bf16.msrb.mxu3 %v553_v29  ;;  %649 = vmatpush.bf16.msrb.mxu1 %v1051_v13  ;;  %v413_v13 = vsel %vm409_vm3, %v1273_v27, %v394_v11 }
  0xf6   :  { %313 = vrot.lane.b32.xlu2 %v1323_v62, %s995_s11 }
  0xf7   :  { %311 = vrot.lane.b32.xlu1 %v1299_v45, %s995_s11  ;;  %v1398_v43 = vpop.permute.xlu2 %305 }
  0xf8   :  { %958 = vmatmul.msk.bf16.vlgmr.msrb.gmra.mxu3 %vm586_vm8, %v1319_v61  ;;  %650 = vmatmul.bf16.vlgmr.msrb.gmra.mxu1 %v1363_v14 }
  0xf9   :  { %668 = vmatpush.bf16.msra.mxu3 %v507_v32  ;;  %544 = vrot.lane.b32.xlu0 %v1221_v1, %s994_s10  ;;  %v1404_v53 = vpop.permute.xlu1 %493 }
  0xfb   :  { %v492_v0 = vpop.permute.xlu0 %491 }
  0xfc   :  { %v509_v36 = vsel %vm503_vm1, %v1235_v5, %v492_v0  ;;  %v319_v5 = vsel %vm315_vm6, %v1283_v34, %v300_v20  ;;  %v272_v34 = vsel %vm268_vm7, %v251_v17, %v1349_v46  ;;  %v510_v56 = vsel %vm503_vm1, %v492_v0, %v1404_v53 }
  0xfd   :  { %669 = vmatpush.bf16.msra.mxu3 %v1269_v26  ;;  %v366_v26 = vsel %vm362_vm5, %v1297_v42, %v347_v47 }
  0xfe   :  { %217 = vrot.lane.b32.xlu2 %v1299_v45, %s989_s5 }
  0xff   :  { %266 = vrot.lane.b32.xlu1 %v1323_v62, %s996_s12  ;;  %v1414_v33 = vpop.permute.xlu2 %534 }
 0x100   :  { %v554_v35 = vsel %vm550_vm4, %v533_v23, %v1414_v33 }
 0x101   :  { %670 = vmatpush.bf16.msra.mxu3 %v413_v13  ;;  %264 = vrot.lane.b32.xlu0 %v1299_v45, %s996_s12  ;;  %v445_v27 = vpop.permute.xlu1 %444 }
 0x102   :  { %688 = vmatpush.bf16.msrb.mxu0 %v554_v35  ;;  %v462_v39 = vsel %vm456_vm2, %v1338_v6, %v445_v27 }
 0x103   :  { %v255_v37 = vpop.permute.xlu0 %254 }
 0x104   :  { %v273_v38 = vsel %vm268_vm7, %v1349_v46, %v255_v37 }
 0x105   :  { %671 = vmatpush.bf16.msra.mxu3 %v366_v26  ;;  %959 = vmatmul.msk.bf16.vlgmr.msrb.gmra.mxu0 %vm586_vm8, %v1319_v61 }
 0x106   :  { %720 = vmatpush.bf16.msra.mxu0 %v509_v36  ;;  %699 = vmatpush.bf16.msrb.mxu2 %v273_v38 }
 0x107   :  { %548 = vrot.lane.b32.xlu2 %v1323_v62, %s994_s10  ;;  %546 = vrot.lane.b32.xlu1 %v1299_v45, %s994_s10  ;;  %v1436_v41 = vpop.permute.xlu2 %258 }
 0x109   :  { %672 = vmatpush.bf16.msra.mxu3 %v319_v5  ;;  %219 = vrot.lane.b32.xlu0 %v1323_v62, %s989_s5  ;;  %v1443_v42 = vpop.permute.xlu1 %399  ;;  %v997_v62 = vmov 0  }
 0x10a   :  { %721 = vmatpush.bf16.msra.mxu0 %v462_v39  ;;  %700 = vmatpush.bf16.msrb.mxu2 %v1141_v31  ;;  %v368_v31 = vsel %vm362_vm5, %v1311_v55, %v1381_v18  ;;  %v463_v55 = vsel %vm456_vm2, %v445_v27, %v1367_v15 }
 0x10b   :  { %v398_v49 = vpop.permute.xlu0 %397  ;;  %988 = vset.pattern.permute.xlu0 %v997_v62 }
 0x10c   :  { %v415_v50 = vsel %vm409_vm3, %v1356_v57, %v398_v49  ;;  %v227_v57 = vsel %vm221_vm0, %v1137_v30, %v1198_v52 }
 0x10d   :  { %673 = vmatpush.bf16.msra.mxu3 %v272_v34 }
 0x10e   :  { %722 = vmatpush.bf16.msra.mxu0 %v415_v50  ;;  %701 = vmatpush.bf16.msrb.mxu2 %v1047_v10 }
 0x10f   :  { %v1449_v51 = vpop.permute.xlu2 %211 }
 0x110   :  { %v228_v12 = vsel %vm221_vm0, %v1198_v52, %v1449_v51 }
 0x111   :  { %674 = vmatpush.bf16.msra.mxu3 %v1179_v44  ;;  %702 = vmatmul.bf16.vlgmr.msrb.gmra.mxu2 %v1363_v14  ;;  %v304_v54 = vpop.permute.xlu1 %303 }
 0x112   :  { %723 = vmatpush.bf16.msra.mxu0 %v368_v31  ;;  %v321_v10 = vsel %vm315_vm6, %v1331_v63, %v304_v54  ;;  %577 = vperm.xlu0 %988, %v574_v60   ;;  %v322_v6 = vsel %vm315_vm6, %v304_v54, %v1398_v43 }
 0x113   :  { %v1460_v44 = vpop.permute.xlu0 %352 }
 0x114   :  { %v369_v63 = vsel %vm362_vm5, %v1381_v18, %v1460_v44 }
 0x115   :  { %675 = vmatpush.bf16.msra.mxu3 %v1061_v24  ;;  %v416_v24 = vsel %vm409_vm3, %v398_v49, %v1443_v42 }
 0x116   :  { %724 = vmatpush.bf16.msra.mxu0 %v321_v10 }
 0x117   :  { %v1465_v48 = vpop.permute.xlu2 %354 }
 0x118   :  { %676 = vmatmul.bf16.vlgmr.msra.gmra.mxu3 %v1363_v14  ;;  %v370_v35 = vsel %vm362_vm5, %v1460_v44, %v1465_v48 }
 0x119   :  { %746 = vmatpush.bf16.msrb.mxu3 %v510_v56  ;;  %v1467_v58 = vpop.permute.xlu1 %497 }
 0x11b   :  { %v496_v59 = vpop.permute.xlu0 %495 }
 0x11c   :  { %v511_v22 = vsel %vm503_vm1, %v1404_v53, %v496_v59 }
 0x11d   :  { %747 = vmatpush.bf16.msrb.mxu3 %v463_v55 }
 0x11f   :  { %v541_v3 = vpop.permute.xlu2 %540 }
 0x121   :  { %748 = vmatpush.bf16.msrb.mxu3 %v416_v24  ;;  %v257_v4 = vpop.permute.xlu1 %256 }
 0x122   :  { %v274_v7 = vsel %vm268_vm7, %v255_v37, %v257_v4  ;;  %v275_v25 = vsel %vm268_vm7, %v257_v4, %v1436_v41 }
 0x123   :  { %v537_v8 = vpop.permute.xlu0 %536  ;;  %725 = vmatpush.bf16.msra.mxu0 %v274_v7 }
 0x124   :  { %v555_v46 = vsel %vm550_vm4, %v1414_v33, %v537_v8 }
 0x125   :  { %749 = vmatpush.bf16.msrb.mxu3 %v369_v63  ;;  %714 = vmatpush.bf16.msra.mxu1 %v555_v46 }
 0x127   :  { %726 = vmatpush.bf16.msra.mxu0 %v227_v57  ;;  %v1487_v9 = vpop.permute.xlu2 %499 }
 0x128   :  { %960 = vmatmul.msk.bf16.vlgmr.msra.gmra.mxu1 %vm586_vm8, %v1319_v61  ;;  %v513_v27 = vsel %vm503_vm1, %v1467_v58, %v1487_v9 }
 0x129   :  { %750 = vmatpush.bf16.msrb.mxu3 %v322_v6  ;;  %v451_v11 = vpop.permute.xlu1 %450 }
 0x12b   :  { %v449_v47 = vpop.permute.xlu0 %448  ;;  %727 = vmatpush.bf16.msra.mxu0 %v1059_v21  ;;  %v512_v21 = vsel %vm503_vm1, %v496_v59, %v1467_v58 }
 0x12c   :  { %v465_v29 = vsel %vm456_vm2, %v449_v47, %v451_v11 }
 0x12d   :  { %751 = vmatpush.bf16.msrb.mxu3 %v275_v25 }
 0x12e   :  { %728 = vmatmul.bf16.vlgmr.msra.gmra.mxu0 %v1363_v14 }
 0x12f   :  { %v1496_v16 = vpop.permute.xlu2 %262 }
 0x131   :  { %752 = vmatpush.bf16.msrb.mxu3 %v228_v12  ;;  %v404_v30 = vpop.permute.xlu1 %403 }
 0x133   :  { %v402_v17 = vpop.permute.xlu0 %401 }
 0x134   :  { %v417_v13 = vsel %vm409_vm3, %v1443_v42, %v402_v17  ;;  %v418_v33 = vsel %vm409_vm3, %v402_v17, %v404_v30 }
 0x135   :  { %753 = vmatpush.bf16.msrb.mxu3 %v1073_v28  ;;  %v464_v28 = vsel %vm456_vm2, %v1367_v15, %v449_v47 }
 0x137   :  { %v214_v19 = vpop.permute.xlu2 %213 }
 0x138   :  { %754 = vmatmul.bf16.vlgmr.msrb.gmra.mxu3 %v1363_v14 }
 0x139   :  { %v539_v18 = vpop.permute.xlu1 %538 }
 0x13a   :  { %v556_v20 = vsel %vm550_vm4, %v537_v8, %v539_v18  ;;  %v557_v52 = vsel %vm550_vm4, %v539_v18, %v541_v3 }
 0x13b   :  { %v357_v23 = vpop.permute.xlu0 %356  ;;  %740 = vmatpush.bf16.msrb.mxu1 %v556_v20  ;;  %766 = vmatpush.bf16.msra.mxu2 %v557_v52 }
 0x13c   :  { %v371_v15 = vsel %vm362_vm5, %v1465_v48, %v357_v23 }
 0x13e   :  { %962 = vmatmul.msk.bf16.vlgmr.msra.gmra.mxu2 %vm586_vm8, %v1319_v61  ;;  %961 = vmatmul.msk.bf16.vlgmr.msrb.gmra.mxu1 %vm586_vm8, %v1319_v61 }
 0x13f   :  { %772 = vmatpush.bf16.msra.mxu1 %v511_v22  ;;  %798 = vmatpush.bf16.msrb.mxu2 %v512_v21  ;;  %v1513_v32 = vpop.permute.xlu2 %407 }
 0x141   :  { %v310_v53 = vpop.permute.xlu1 %309 }
 0x143   :  { %773 = vmatpush.bf16.msra.mxu1 %v464_v28  ;;  %799 = vmatpush.bf16.msrb.mxu2 %v465_v29  ;;  %v308_v0 = vpop.permute.xlu0 %307 }
 0x144   :  { %v323_v5 = vsel %vm315_vm6, %v1398_v43, %v308_v0  ;;  %v324_v39 = vsel %vm315_vm6, %v308_v0, %v310_v53  ;;  %v229_v43 = vsel %vm221_vm0, %v1449_v51, %v214_v19 }
 0x147   :  { %774 = vmatpush.bf16.msra.mxu1 %v417_v13  ;;  %800 = vmatpush.bf16.msrb.mxu2 %v418_v33 }
 0x148   :  { %v543_v36 = vpop.permute.xlu2 %542 }
 0x149   :  { %v558_v26 = vsel %vm550_vm4, %v541_v3, %v543_v36  ;;  %v261_v37 = vpop.permute.xlu1 %260 }
 0x14a   :  { %792 = vmatpush.bf16.msrb.mxu0 %v558_v26  ;;  %v277_v34 = vsel %vm268_vm7, %v261_v37, %v1496_v16  ;;  %v276_v42 = vsel %vm268_vm7, %v1436_v41, %v261_v37 }
 0x14b   :  { %775 = vmatpush.bf16.msra.mxu1 %v370_v35  ;;  %801 = vmatpush.bf16.msrb.mxu2 %v371_v15  ;;  %v502_v38 = vpop.permute.xlu0 %501 }
 0x14c   :  { %v514_v60 = vsel %vm503_vm1, %v1487_v9, %v502_v38 }
 0x14d   :  { %963 = vmatmul.msk.bf16.vlgmr.msrb.gmra.mxu0 %vm586_vm8, %v1319_v61 }
 0x14e   :  { %824 = vmatpush.bf16.msra.mxu0 %v513_v27 }
 0x14f   :  { %776 = vmatpush.bf16.msra.mxu1 %v323_v5  ;;  %802 = vmatpush.bf16.msrb.mxu2 %v324_v39  ;;  %v612_v25 = vpop.f32.mrf.mxu1 }
 0x150   :  { %v314_v48 = vpop.permute.xlu2 %313 }
 0x151   :  { %v455_v49 = vpop.permute.xlu1 %454 }
 0x153   :  { %777 = vmatpush.bf16.msra.mxu1 %v276_v42  ;;  %803 = vmatpush.bf16.msrb.mxu2 %v277_v34  ;;  %v453_v50 = vpop.permute.xlu0 %452 }
 0x154   :  { %v466_v31 = vsel %vm456_vm2, %v451_v11, %v453_v50  ;;  %v638_v62 = vpop.f32.mrf.mxu3  ;;  %v467_v3 = vsel %vm456_vm2, %v453_v50, %v455_v49 }
 0x155   :  { %825 = vmatpush.bf16.msra.mxu0 %v466_v31 }
 0x157   :  { %778 = vmatpush.bf16.msra.mxu1 %v229_v43  ;;  %v614_v18 = vpop.f32.mrf.mxu1 }
 0x158   :  { %v218_v63 = vpop.permute.xlu2 %217 }
 0x159   :  { %v406_v54 = vpop.permute.xlu1 %405 }
 0x15a   :  { %v419_v56 = vsel %vm409_vm3, %v404_v30, %v406_v54  ;;  %v420_v8 = vsel %vm409_vm3, %v406_v54, %v1513_v32 }
 0x15b   :  { %779 = vmatpush.bf16.msra.mxu1 %v1165_v40  ;;  %v216_v10 = vpop.permute.xlu0 %215  ;;  %826 = vmatpush.bf16.msra.mxu0 %v419_v56 }
 0x15c   :  { %v230_v41 = vsel %vm221_vm0, %v214_v19, %v216_v10  ;;  %v640_v46 = vpop.f32.mrf.mxu3  ;;  %v231_v12 = vsel %vm221_vm0, %v216_v10, %v218_v63 }
 0x15d   :  { %804 = vmatpush.bf16.msrb.mxu2 %v230_v41 }
 0x15e   :  { %780 = vmatmul.bf16.vlgmr.msra.gmra.mxu1 %v1363_v14 }
 0x161   :  { %v361_v44 = vpop.permute.xlu1 %360  ;;  %805 = vmatpush.bf16.msrb.mxu2 %v1225_v2  ;;  %v549_v11 = vpop.permute.xlu2 %548 }
 0x163   :  { %v359_v51 = vpop.permute.xlu0 %358  ;;  %v625_v2 = vpop.f32.mrf.mxu2 }
 0x164   :  { %v372_v55 = vsel %vm362_vm5, %v357_v23, %v359_v51  ;;  %806 = vmatmul.bf16.vlgmr.msrb.gmra.mxu2 %v1363_v14  ;;  %v373_v47 = vsel %vm362_vm5, %v359_v51, %v361_v44 }
 0x165   :  { %827 = vmatpush.bf16.msra.mxu0 %v372_v55 }
 0x167   :  { %v599_v57 = vpop.f32.mrf.mxu0 }
 0x169   :  { %v312_v40 = vpop.permute.xlu1 %311 }
 0x16a   :  { %v325_v58 = vsel %vm315_vm6, %v310_v53, %v312_v40  ;;  %v326_v19 = vsel %vm315_vm6, %v312_v40, %v314_v48 }
 0x16b   :  { %v545_v24 = vpop.permute.xlu0 %544  ;;  %828 = vmatpush.bf16.msra.mxu0 %v325_v58  ;;  %v627_v9 = vpop.f32.mrf.mxu2 }
 0x16c   :  { %v559_v59 = vsel %vm550_vm4, %v543_v36, %v545_v24 }
 0x16d   :  { %818 = vmatpush.bf16.msra.mxu3 %v559_v59 }
 0x16f   :  { %v601_v52 = vpop.f32.mrf.mxu0 }
 0x170   :  { %964 = vmatmul.msk.bf16.vlgmr.msra.gmra.mxu3 %vm586_vm8, %v1319_v61 }
 0x171   :  { %850 = vmatpush.bf16.msrb.mxu3 %v514_v60  ;;  %v267_v4 = vpop.permute.xlu1 %266 }
 0x173   :  { %v265_v6 = vpop.permute.xlu0 %264 }
 0x174   :  { %v278_v7 = vsel %vm268_vm7, %v1496_v16, %v265_v6  ;;  %v279_v22 = vsel %vm268_vm7, %v265_v6, %v267_v4 }
 0x175   :  { %851 = vmatpush.bf16.msrb.mxu3 %v467_v3  ;;  %829 = vmatpush.bf16.msra.mxu0 %v278_v7  ;;  %v651_v28 = vpop.f32.mrf.mxu1 }
 0x179   :  { %852 = vmatpush.bf16.msrb.mxu3 %v420_v8  ;;  %830 = vmatpush.bf16.msra.mxu0 %v231_v12  ;;  %v547_v30 = vpop.permute.xlu1 %546 }
 0x17a   :  { %v560_v17 = vsel %vm550_vm4, %v545_v24, %v547_v30  ;;  %v561_v16 = vsel %vm550_vm4, %v547_v30, %v549_v11 }
 0x17b   :  { %844 = vmatpush.bf16.msrb.mxu1 %v560_v17  ;;  %870 = vmatpush.bf16.msra.mxu2 %v561_v16  ;;  %v664_v20 = vpop.f32.mrf.mxu3  ;;  %v220_v21 = vpop.permute.xlu0 %219 }
 0x17c   :  { %v232_v23 = vsel %vm221_vm0, %v218_v63, %v220_v21 }
 0x17d   :  { %853 = vmatpush.bf16.msrb.mxu3 %v373_v47  ;;  %831 = vmatpush.bf16.msra.mxu0 %v1221_v1  ;;  %v653_v32 = vpop.f32.mrf.mxu1 }
 0x17e   :  { %966 = vmatmul.msk.bf16.vlgmr.msra.gmra.mxu2 %vm586_vm8, %v1319_v61  ;;  %965 = vmatmul.msk.bf16.vlgmr.msrb.gmra.mxu1 %vm586_vm8, %v1319_v61 }
 0x180   :  { %832 = vmatmul.bf16.vlgmr.msra.gmra.mxu0 %v1363_v14 }
 0x181   :  { %854 = vmatpush.bf16.msrb.mxu3 %v326_v19 }
 0x182   :  { %v690_v29 = vpop.f32.mrf.mxu0 }
 0x183   :  { %v666_v1 = vpop.f32.mrf.mxu3 }
 0x184   :  { %v578_v0 = vpop.permute.xlu0 %577 }
 0x185   :  { %855 = vmatpush.bf16.msrb.mxu3 %v279_v22  ;;  %v626_v61 = vadd.f32 %v625_v2, %v578_v0  ;;  %v600_v13 = vadd.f32 %v599_v57, %v578_v0  ;;  %v652_v33 = vadd.f32 %v651_v28, %v578_v0 }
 0x187   :  { %v639_v35 = vadd.f32 %v638_v62, %v626_v61  ;;  %v613_v15 = vadd.f32 %v612_v25, %v600_v13  ;;  %v665_v36 = vadd.f32 %v664_v20, %v652_v33 }
 0x189   :  { %856 = vmatpush.bf16.msrb.mxu3 %v232_v23  ;;  %877 = vst [vmem:[%s1609_s4 + $0x8] sm:$0xff] %v639_v35 }
 0x18a   :  { %v692_v53 = vpop.f32.mrf.mxu0  ;;  %876 = vst [vmem:[%s1609_s4] sm:$0xff] %v613_v15 }
 0x18b   :  { %878 = vst [vmem:[%s1609_s4 + $0x10] sm:$0xff] %v665_v36 }
 0x18d   :  { %857 = vmatpush.bf16.msrb.mxu3 %v1299_v45 }
 0x190   :  { %858 = vmatmul.bf16.vlgmr.msrb.gmra.mxu3 %v1363_v14 }
 0x194   :  { %v703_v26 = vpop.f32.mrf.mxu2 }
 0x195   :  { %v704_v5 = vadd.f32 %v703_v26, %v578_v0 }
 0x19b   :  { %v677_v45 = vpop.f32.mrf.mxu3 }
 0x19c   :  { %v678_v14 = vadd.f32 %v677_v45, %v578_v0  ;;  %v705_v37 = vpop.f32.mrf.mxu2 }
 0x19e   :  { %v691_v27 = vadd.f32 %v690_v29, %v678_v14 }
 0x1a0   :  { %879 = vst [vmem:[%s1609_s4 + $0x18] sm:$0xff] %v691_v27 }
 0x1a3   :  { %v679_v38 = vpop.f32.mrf.mxu3 }
 0x1a5   :  { %v716_v39 = vpop.f32.mrf.mxu1 }
 0x1a6   :  { %v717_v34 = vadd.f32 %v716_v39, %v704_v5 }
 0x1a8   :  { %880 = vst [vmem:[%s1609_s4 + $0x20] sm:$0xff] %v717_v34 }
 0x1ab   :  { %v729_v42 = vpop.f32.mrf.mxu0 }
 0x1ac   :  { %v730_v31 = vadd.f32 %v729_v42, %v578_v0 }
 0x1ad   :  { %v718_v49 = vpop.f32.mrf.mxu1 }
 0x1b3   :  { %v731_v50 = vpop.f32.mrf.mxu0 }
 0x1bb   :  { %v755_v43 = vpop.f32.mrf.mxu3  ;;  %v742_v54 = vpop.f32.mrf.mxu1 }
 0x1bc   :  { %v743_v56 = vadd.f32 %v742_v54, %v730_v31  ;;  %v756_v41 = vadd.f32 %v755_v43, %v578_v0 }
 0x1be   :  { %881 = vst [vmem:[%s1609_s4 + $0x28] sm:$0xff] %v743_v56 }
 0x1c1   :  { %v768_v44 = vpop.f32.mrf.mxu2 }
 0x1c2   :  { %v769_v51 = vadd.f32 %v768_v44, %v756_v41 }
 0x1c3   :  { %v757_v10 = vpop.f32.mrf.mxu3  ;;  %v744_v55 = vpop.f32.mrf.mxu1 }
 0x1c4   :  { %882 = vst [vmem:[%s1609_s4 + $0x30] sm:$0xff] %v769_v51 }
 0x1c9   :  { %v770_v48 = vpop.f32.mrf.mxu2 }
 0x1ca   :  { %v794_v40 = vpop.f32.mrf.mxu0 }
 0x1d2   :  { %v796_v58 = vpop.f32.mrf.mxu0 }
 0x1db   :  { %v781_v24 = vpop.f32.mrf.mxu1 }
 0x1dc   :  { %v782_v59 = vadd.f32 %v781_v24, %v578_v0 }
 0x1de   :  { %v795_v60 = vadd.f32 %v794_v40, %v782_v59 }
 0x1e0   :  { %883 = vst [vmem:[%s1609_s4 + $0x38] sm:$0xff] %v795_v60 }
 0x1e3   :  { %v783_v62 = vpop.f32.mrf.mxu1 }
 0x1e7   :  { %v807_v2 = vpop.f32.mrf.mxu2 }
 0x1e8   :  { %v808_v3 = vadd.f32 %v807_v2, %v578_v0 }
 0x1ef   :  { %v809_v63 = vpop.f32.mrf.mxu2 }
 0x1f3   :  { %v820_v4 = vpop.f32.mrf.mxu3 }
 0x1f4   :  { %v821_v6 = vadd.f32 %v820_v4, %v808_v3 }
 0x1f6   :  { %884 = vst [vmem:[%s1609_s4 + $0x40] sm:$0xff] %v821_v6 }
 0x1fb   :  { %v822_v7 = vpop.f32.mrf.mxu3  ;;  %v846_v8 = vpop.f32.mrf.mxu1 }
 0x1fd   :  { %v833_v46 = vpop.f32.mrf.mxu0 }
 0x1fe   :  { %v834_v25 = vadd.f32 %v833_v46, %v578_v0 }
 0x200   :  { %v847_v57 = vadd.f32 %v846_v8, %v834_v25 }
 0x201   :  { %v872_v9 = vpop.f32.mrf.mxu2 }
 0x202   :  { %885 = vst [vmem:[%s1609_s4 + $0x48] sm:$0xff] %v847_v57 }
 0x203   :  { %v848_v11 = vpop.f32.mrf.mxu1 }
 0x205   :  { %v835_v12 = vpop.f32.mrf.mxu0 }
 0x209   :  { %v874_v47 = vpop.f32.mrf.mxu2 }
 0x213   :  { %v859_v30 = vpop.f32.mrf.mxu3 }
 0x214   :  { %v860_v17 = vadd.f32 %v859_v30, %v578_v0 }
 0x216   :  { %v873_v16 = vadd.f32 %v872_v9, %v860_v17 }
 0x218   :  { %886 = vst [vmem:[%s1609_s4 + $0x50] sm:$0xff] %v873_v16 }
 0x21b   :  { %v861_v19 = vpop.f32.mrf.mxu3 }

</bundles_post_ra>
